<compile_context>
chip_gen: v7x
topology: tpu7x:2x2x1
jax: 0.10.0
libtpu: 0.0.40
codegen_flags: <defaults>
</compile_context>

<pallas_src>
import functools

import jax
import jax.numpy as jnp
from jax.experimental import pallas as pl
from jax.experimental.pallas import tpu as pltpu


def _round_up(n, m):
    return ((n + m - 1) // m) * m


# ----------------------------- Pallas kernels -----------------------------

def _conv_kernel(*refs, K, s, Cin, Cout, tl, L, pad_left,
                 has_pre, need_mask, post_relu, has_res):
    """Fused 1-D conv tile.

    Refs (in order): x_slab, [pre_scale, pre_shift], w, post_scale, post_shift, [res], out
      x_slab : (rows, s*Cin) f32   phase-merged padded activations of one batch element
      w      : (K, Cin, Cout) bf16 block-diagonal (groups merged) per-tap weights
      pre_*  : (1, Cin)  f32       BN1 scale/shift applied (with ReLU) before the conv
      post_* : (1, Cout) f32       conv-bias (+BN2) folded scale/shift
      res    : (tl, Cout) f32      shortcut to add in the epilogue
      out    : (tl, Cout) f32
    """
    it = iter(refs)
    x_ref = next(it)
    if has_pre:
        ps_ref = next(it)
        pt_ref = next(it)
    w_ref = next(it)
    sc_ref = next(it)
    sh_ref = next(it)
    r_ref = next(it) if has_res else None
    o_ref = next(it)

    i = pl.program_id(1)
    row0 = i * tl                                   # first output row of this tile
    acc = jnp.zeros((tl, Cout), jnp.float32)
    for k in range(K):                              # static unroll over taps
        dr, ph = k // s, k % s
        xk = x_ref[pl.ds(row0 + dr, tl), ph * Cin:(ph + 1) * Cin]   # (tl, Cin) f32
        if has_pre:
            xk = jnp.maximum(xk * ps_ref[...] + pt_ref[...], 0.0)
            if need_mask:
                # "same" padding happens AFTER bn/relu in the reference -> pads must stay 0
                m = (jax.lax.broadcasted_iota(jnp.int32, (tl, Cin), 0) + row0) * s + k
                xk = jnp.where((m >= pad_left) & (m < pad_left + L), xk, 0.0)
        acc = acc + jnp.dot(xk.astype(jnp.bfloat16), w_ref[k],
                            preferred_element_type=jnp.float32)
    y = acc * sc_ref[...] + sh_ref[...]
    if post_relu:
        y = jnp.maximum(y, 0.0)
    if has_res:
        y = y + r_ref[...]
    o_ref[...] = y


def _maxpool_kernel(x_ref, o_ref, *, k, C):
    # x: (tl, k*C) phase-merged windows -> elementwise max over the k lane blocks
    m = x_ref[:, 0:C]
    for j in range(1, k):
        m = jnp.maximum(m, x_ref[:, j * C:(j + 1) * C])
    o_ref[...] = m


def _head_kernel(x_ref, s_ref, t_ref, w_ref, b_ref, o_ref):
    # (optional final BN) -> ReLU -> mean over length -> Linear
    h = jnp.maximum(x_ref[...] * s_ref[...] + t_ref[...], 0.0)      # (B, L, C)
    h = jnp.mean(h, axis=1)                                         # (B, C)
    o_ref[...] = jnp.dot(h, w_ref[...], preferred_element_type=jnp.float32) + b_ref[...]


# ----------------------------- Pallas wrappers -----------------------------

def _row_tiling(Lo):
    if Lo <= 512:
        lo_pad = _round_up(Lo, 8)
        return lo_pad, lo_pad
    tl = 512
    return _round_up(Lo, tl), tl


def conv1d_same_fused(x, w, b, *, stride, groups,
                      pre_scale=None, pre_shift=None,
                      post_scale=None, post_shift=None,
                      post_relu=False, residual=None):
    """MyConv1dPadSame + fused (pre BN/ReLU) prologue, (bias/BN/ReLU/residual) epilogue.

    x: (B, L, Cin) f32,  w: (Cout, Cin//groups, K) torch layout,  b: (Cout,)
    Returns (B, Lo, Cout) f32 with Lo = ceil(L / stride).
    """
    B, L, Cin = x.shape
    Cout, Cin_g, K = w.shape
    assert Cin_g * groups == Cin and Cout % groups == 0
    s = stride
    Lo = -(-L // s)
    p = max(0, (Lo - 1) * s + K - L)
    pad_left = p // 2

    Lo_pad, tl = _row_tiling(Lo)
    n_tiles = Lo_pad // tl

    # padded slab + phase-merge reshape (row-major, no data movement needed)
    rows = Lo_pad + (K - 1) // s
    slab = rows * s
    pad_right = slab - L - pad_left
    assert pad_right >= 0
    xp = jnp.pad(x, ((0, 0), (pad_left, pad_right), (0, 0)))
    xr = xp.reshape(B, rows, s * Cin)

    # merge groups into one dense block-diagonal weight (K, Cin, Cout), cast to bf16
    Cout_g = Cout // groups
    wd = jnp.zeros((K, Cin, Cout), jnp.float32)
    for g in range(groups):
        wg = jnp.transpose(w[g * Cout_g:(g + 1) * Cout_g], (2, 1, 0))   # (K, Cin_g, Cout_g)
        wd = wd.at[:, g * Cin_g:(g + 1) * Cin_g, g * Cout_g:(g + 1) * Cout_g].set(wg)
    wd = wd.astype(jnp.bfloat16)

    # fold conv bias (and optional post-BN) into the epilogue scale/shift
    if post_scale is None:
        sc = jnp.ones((Cout,), jnp.float32)
        sh = b.astype(jnp.float32)
    else:
        sc = post_scale.astype(jnp.float32)
        sh = b.astype(jnp.float32) * sc + post_shift.astype(jnp.float32)
    sc = sc.reshape(1, Cout)
    sh = sh.reshape(1, Cout)

    has_pre = pre_scale is not None
    has_res = residual is not None
    need_mask = (pad_left > 0) or ((Lo_pad - 1) * s + (K - 1) >= pad_left + L)

    inputs = [xr]
    in_specs = [pl.BlockSpec((None, rows, s * Cin), lambda bb, ii: (bb, 0, 0))]
    if has_pre:
        inputs += [pre_scale.reshape(1, Cin).astype(jnp.float32),
                   pre_shift.reshape(1, Cin).astype(jnp.float32)]
        in_specs += [pl.BlockSpec((1, Cin), lambda bb, ii: (0, 0)),
                     pl.BlockSpec((1, Cin), lambda bb, ii: (0, 0))]
    inputs += [wd, sc, sh]
    in_specs += [pl.BlockSpec((K, Cin, Cout), lambda bb, ii: (0, 0, 0)),
                 pl.BlockSpec((1, Cout), lambda bb, ii: (0, 0)),
                 pl.BlockSpec((1, Cout), lambda bb, ii: (0, 0))]
    if has_res:
        r = residual.astype(jnp.float32)
        if r.shape[1] != Lo_pad:
            r = jnp.pad(r, ((0, 0), (0, Lo_pad - r.shape[1]), (0, 0)))
        inputs.append(r)
        in_specs.append(pl.BlockSpec((None, tl, Cout), lambda bb, ii: (bb, ii, 0)))

    kernel = functools.partial(
        _conv_kernel, K=K, s=s, Cin=Cin, Cout=Cout, tl=tl, L=L, pad_left=pad_left,
        has_pre=has_pre, need_mask=need_mask, post_relu=post_relu, has_res=has_res)

    out = pl.pallas_call(
        kernel,
        grid=(B, n_tiles),
        in_specs=in_specs,
        out_specs=pl.BlockSpec((None, tl, Cout), lambda bb, ii: (bb, ii, 0)),
        out_shape=jax.ShapeDtypeStruct((B, Lo_pad, Cout), jnp.float32),
        compiler_params=pltpu.CompilerParams(
            dimension_semantics=("parallel", "parallel")),
    )(*inputs)
    return out[:, :Lo, :] if Lo_pad != Lo else out


def maxpool1d_same(x, k):
    """MyMaxPool1dPadSame: ConstantPad1d((k-1 split), 0) + MaxPool1d(kernel=k, stride=k)."""
    B, L, C = x.shape
    Lo = (L - 1) // k + 1
    pad_left = (k - 1) // 2
    Lo_pad, tl = _row_tiling(Lo)
    n_tiles = Lo_pad // tl
    total = Lo_pad * k
    xp = jnp.pad(x, ((0, 0), (pad_left, max(0, total - L - pad_left)), (0, 0)))[:, :total, :]
    xr = xp.reshape(B, Lo_pad, k * C)                       # free row-major reshape

    out = pl.pallas_call(
        functools.partial(_maxpool_kernel, k=k, C=C),
        grid=(B, n_tiles),
        in_specs=[pl.BlockSpec((None, tl, k * C), lambda bb, ii: (bb, ii, 0))],
        out_specs=pl.BlockSpec((None, tl, C), lambda bb, ii: (bb, ii, 0)),
        out_shape=jax.ShapeDtypeStruct((B, Lo_pad, C), jnp.float32),
        compiler_params=pltpu.CompilerParams(
            dimension_semantics=("parallel", "parallel")),
    )(xr)
    return out[:, :Lo, :] if Lo_pad != Lo else out


def head_fused(x, scale, shift, w, b):
    """(final BN scale/shift) -> ReLU -> mean over length -> Linear, one kernel."""
    B, L, C = x.shape
    N = w.shape[1]
    return pl.pallas_call(
        _head_kernel,
        grid=(1,),
        in_specs=[pl.BlockSpec((B, L, C), lambda i: (0, 0, 0)),
                  pl.BlockSpec((1, 1, C), lambda i: (0, 0, 0)),
                  pl.BlockSpec((1, 1, C), lambda i: (0, 0, 0)),
                  pl.BlockSpec((C, N), lambda i: (0, 0)),
                  pl.BlockSpec((1, N), lambda i: (0, 0))],
        out_specs=pl.BlockSpec((B, N), lambda i: (0, 0)),
        out_shape=jax.ShapeDtypeStruct((B, N), jnp.float32),
    )(x, scale.reshape(1, 1, C).astype(jnp.float32),
      shift.reshape(1, 1, C).astype(jnp.float32),
      w.astype(jnp.float32), b.reshape(1, N).astype(jnp.float32))


# ----------------------------- parameters & model -----------------------------

def make_model(key, *, in_channels, base_filters, first_kernel_size, kernel_size,
               stride, groups, n_block, output_size, downsample_gap, increasefilter_gap):
    keys = iter(jax.random.split(key, 256))

    def conv_p(cin, cout, k, g):
        return {"w": 0.1 * jax.random.normal(next(keys), (cout, cin // g, k), jnp.float32),
                "b": 0.05 * jax.random.normal(next(keys), (cout,), jnp.float32)}

    def bn_p(c):  # eval-mode BN folded into per-channel scale/shift
        gamma = 1.0 + 0.1 * jax.random.normal(next(keys), (c,), jnp.float32)
        beta = 0.05 * jax.random.normal(next(keys), (c,), jnp.float32)
        mean = 0.02 * jax.random.normal(next(keys), (c,), jnp.float32)
        var = 1.0 + 0.1 * jnp.abs(jax.random.normal(next(keys), (c,), jnp.float32))
        scale = gamma / jnp.sqrt(var + 1e-5)
        return {"scale": scale, "shift": beta - mean * scale}

    params = {"first_conv": conv_p(in_channels, base_filters, first_kernel_size, 1),
              "first_bn": bn_p(base_filters)}
    arch_blocks, prm_blocks = [], []
    out_channels = base_filters
    for i_block in range(n_block):
        is_first = (i_block == 0)
        downsample = (i_block % downsample_gap == 1)
        if is_first:
            bin_ch = base_filters
            bout_ch = bin_ch
        else:
            bin_ch = int(base_filters * 2 ** ((i_block - 1) // increasefilter_gap))
            bout_ch = bin_ch * 2 if (i_block % increasefilter_gap == 0 and i_block != 0) else bin_ch
        arch_blocks.append({"is_first": is_first, "downsample": downsample,
                            "in_ch": bin_ch, "out_ch": bout_ch,
                            "stride": stride if downsample else 1})
        prm_blocks.append({"bn1": bn_p(bin_ch),
                           "conv1": conv_p(bin_ch, bout_ch, kernel_size, groups),
                           "bn2": bn_p(bout_ch),
                           "conv2": conv_p(bout_ch, bout_ch, kernel_size, groups)})
        out_channels = bout_ch
    params["blocks"] = prm_blocks
    params["final_bn"] = bn_p(out_channels)
    params["clf"] = {"w": 0.1 * jax.random.normal(next(keys), (out_channels, output_size), jnp.float32),
                     "b": 0.05 * jax.random.normal(next(keys), (output_size,), jnp.float32)}
    arch = {"stride": stride, "groups": groups, "blocks": arch_blocks}
    return params, arch


def resnet1d_forward(params, x_ncl, arch):
    """x_ncl: PyTorch layout (B, Cin, L). Returns (B, output_size)."""
    x = jnp.transpose(x_ncl, (0, 2, 1)).astype(jnp.float32)   # -> (B, L, C) channels-last
    batch = x.shape[0]
    use_bn_outer = batch >= 4   # mirrors `if x.shape[0] < 4: self.use_bn = False`

    # first block: conv (+ outer BN if batch>=4) + ReLU fused, then maxpool(stride)
    fc = params["first_conv"]
    out = conv1d_same_fused(
        x, fc["w"], fc["b"], stride=1, groups=1,
        post_scale=params["first_bn"]["scale"] if use_bn_outer else None,
        post_shift=params["first_bn"]["shift"] if use_bn_outer else None,
        post_relu=True)
    out = maxpool1d_same(out, arch["stride"])

    # basic blocks (block BNs always on, eval-mode; dropout = identity)
    for cfg_b, prm in zip(arch["blocks"], params["blocks"]):
        identity = out
        if cfg_b["downsample"]:
            identity = maxpool1d_same(identity, cfg_b["stride"])
        if cfg_b["out_ch"] != cfg_b["in_ch"]:
            ch1 = (cfg_b["out_ch"] - cfg_b["in_ch"]) // 2
            ch2 = cfg_b["out_ch"] - cfg_b["in_ch"] - ch1
            identity = jnp.pad(identity, ((0, 0), (0, 0), (ch1, ch2)))

        # conv1: [BN1+ReLU prologue unless first block] + bias/BN2/ReLU epilogue
        pre_s = None if cfg_b["is_first"] else prm["bn1"]["scale"]
        pre_t = None if cfg_b["is_first"] else prm["bn1"]["shift"]
        h = conv1d_same_fused(out, prm["conv1"]["w"], prm["conv1"]["b"],
                              stride=cfg_b["stride"], groups=arch["groups"],
                              pre_scale=pre_s, pre_shift=pre_t,
                              post_scale=prm["bn2"]["scale"],
                              post_shift=prm["bn2"]["shift"],
                              post_relu=True)
        # conv2: bias + shortcut add fused into the epilogue
        out = conv1d_same_fused(h, prm["conv2"]["w"], prm["conv2"]["b"],
                                stride=1, groups=arch["groups"],
                                residual=identity)

    # final: (final BN if batch>=4) -> ReLU -> mean(-1) -> Linear, fused
    C = out.shape[-1]
    if use_bn_outer:
        fscale, fshift = params["final_bn"]["scale"], params["final_bn"]["shift"]
    else:
        fscale = jnp.ones((C,), jnp.float32)
        fshift = jnp.zeros((C,), jnp.float32)
    return head_fused(out, fscale, fshift, params["clf"]["w"], params["clf"]["b"])


# ----------------------------- main -----------------------------

if __name__ == "__main__":
    cfg = dict(in_channels=4, base_filters=32, first_kernel_size=5, kernel_size=3,
               stride=4, groups=2, n_block=4, output_size=2,
               downsample_gap=2, increasefilter_gap=2)
    B, Cin, L = 2, cfg["in_channels"], 256

    key = jax.random.PRNGKey(0)
    kx, kp = jax.random.split(key)
    x = jax.random.normal(kx, (B, Cin, L), jnp.float32)       # PyTorch-style (B, C, L)
    params, arch = make_model(kp, **cfg)

    fwd = jax.jit(functools.partial(resnet1d_forward, arch=arch))
    out = jax.block_until_ready(fwd(params, x))
    assert out.shape == (B, cfg["output_size"])
    assert bool(jnp.all(jnp.isfinite(out)))
    print("KERNEL_OK")
</pallas_src>

<mosaic_0001>
module attributes {stable_mosaic.version = 11 : i64} {
  func.func @_conv_kernel(%arg0: i32, %arg1: i32, %arg2: memref<1x260x4xf32, #tpu.memory_space<vmem>>, %arg3: memref<5x4x32xbf16, #tpu.memory_space<vmem>>, %arg4: memref<1x32xf32, #tpu.memory_space<vmem>>, %arg5: memref<1x32xf32, #tpu.memory_space<vmem>>, %arg6: memref<1x256x32xf32, #tpu.memory_space<vmem>>) attributes {dimension_semantics = [#tpu.dimension_semantics<parallel>, #tpu.dimension_semantics<parallel>], iteration_bounds = array<i64: 2, 1>, scalar_prefetch = 0 : i64, scratch_operands = 0 : i64, tpu.core_type = #tpu.core_type<tc>, window_params = [{transform_indices = @transform_0, window_bounds = array<i64: 1, 260, 4>}, {pipeline_mode = #tpu.pipeline_mode<synchronous>, transform_indices = @transform_1, window_bounds = array<i64: 5, 4, 32>}, {pipeline_mode = #tpu.pipeline_mode<synchronous>, transform_indices = @transform_2, window_bounds = array<i64: 1, 32>}, {pipeline_mode = #tpu.pipeline_mode<synchronous>, transform_indices = @transform_3, window_bounds = array<i64: 1, 32>}, {transform_indices = @transform_4, window_bounds = array<i64: 1, 256, 32>}]} {
    %c256_i32 = arith.constant 256 : i32
    %0 = arith.muli %arg1, %c256_i32 : i32
    %cst = arith.constant 0.000000e+00 : f32
    %1 = vector.broadcast %cst : f32 to vector<256x32xf32>
    %c0_i32 = arith.constant 0 : i32
    %2 = arith.addi %0, %c0_i32 : i32
    %c0 = arith.constant 0 : index
    %3 = arith.index_cast %2 : i32 to index
    %c0_0 = arith.constant 0 : index
    %4 = vector.load %arg2[%c0, %3, %c0_0] : memref<1x260x4xf32, #tpu.memory_space<vmem>>, vector<1x256x4xf32>
    %5 = vector.shape_cast %4 : vector<1x256x4xf32> to vector<256x4xf32>
    %6 = arith.truncf %5 : vector<256x4xf32> to vector<256x4xbf16>
    %c0_1 = arith.constant 0 : index
    %c0_2 = arith.constant 0 : index
    %c0_3 = arith.constant 0 : index
    %7 = vector.load %arg3[%c0_1, %c0_2, %c0_3] : memref<5x4x32xbf16, #tpu.memory_space<vmem>>, vector<1x4x32xbf16>
    %8 = vector.shape_cast %7 : vector<1x4x32xbf16> to vector<4x32xbf16>
    %cst_4 = arith.constant dense<0.000000e+00> : vector<256x32xf32>
    %9 = tpu.matmul %6, %8, %cst_4 {dimension_numbers = #tpu.dot_dimension_numbers<[1], [0], [0], [1], [0, 0, 1, 1], [], []>} : vector<256x4xbf16>, vector<4x32xbf16>, vector<256x32xf32> -> vector<256x32xf32>
    %10 = arith.addf %1, %9 : vector<256x32xf32>
    %c1_i32 = arith.constant 1 : i32
    %11 = arith.addi %0, %c1_i32 : i32
    %c0_5 = arith.constant 0 : index
    %12 = arith.index_cast %11 : i32 to index
    %c0_6 = arith.constant 0 : index
    %13 = vector.load %arg2[%c0_5, %12, %c0_6] : memref<1x260x4xf32, #tpu.memory_space<vmem>>, vector<1x256x4xf32>
    %14 = vector.shape_cast %13 : vector<1x256x4xf32> to vector<256x4xf32>
    %15 = arith.truncf %14 : vector<256x4xf32> to vector<256x4xbf16>
    %c1 = arith.constant 1 : index
    %c0_7 = arith.constant 0 : index
    %c0_8 = arith.constant 0 : index
    %16 = vector.load %arg3[%c1, %c0_7, %c0_8] : memref<5x4x32xbf16, #tpu.memory_space<vmem>>, vector<1x4x32xbf16>
    %17 = vector.shape_cast %16 : vector<1x4x32xbf16> to vector<4x32xbf16>
    %cst_9 = arith.constant dense<0.000000e+00> : vector<256x32xf32>
    %18 = tpu.matmul %15, %17, %cst_9 {dimension_numbers = #tpu.dot_dimension_numbers<[1], [0], [0], [1], [0, 0, 1, 1], [], []>} : vector<256x4xbf16>, vector<4x32xbf16>, vector<256x32xf32> -> vector<256x32xf32>
    %19 = arith.addf %10, %18 : vector<256x32xf32>
    %c2_i32 = arith.constant 2 : i32
    %20 = arith.addi %0, %c2_i32 : i32
    %c0_10 = arith.constant 0 : index
    %21 = arith.index_cast %20 : i32 to index
    %c0_11 = arith.constant 0 : index
    %22 = vector.load %arg2[%c0_10, %21, %c0_11] : memref<1x260x4xf32, #tpu.memory_space<vmem>>, vector<1x256x4xf32>
    %23 = vector.shape_cast %22 : vector<1x256x4xf32> to vector<256x4xf32>
    %24 = arith.truncf %23 : vector<256x4xf32> to vector<256x4xbf16>
    %c2 = arith.constant 2 : index
    %c0_12 = arith.constant 0 : index
    %c0_13 = arith.constant 0 : index
    %25 = vector.load %arg3[%c2, %c0_12, %c0_13] : memref<5x4x32xbf16, #tpu.memory_space<vmem>>, vector<1x4x32xbf16>
    %26 = vector.shape_cast %25 : vector<1x4x32xbf16> to vector<4x32xbf16>
    %cst_14 = arith.constant dense<0.000000e+00> : vector<256x32xf32>
    %27 = tpu.matmul %24, %26, %cst_14 {dimension_numbers = #tpu.dot_dimension_numbers<[1], [0], [0], [1], [0, 0, 1, 1], [], []>} : vector<256x4xbf16>, vector<4x32xbf16>, vector<256x32xf32> -> vector<256x32xf32>
    %28 = arith.addf %19, %27 : vector<256x32xf32>
    %c3_i32 = arith.constant 3 : i32
    %29 = arith.addi %0, %c3_i32 : i32
    %c0_15 = arith.constant 0 : index
    %30 = arith.index_cast %29 : i32 to index
    %c0_16 = arith.constant 0 : index
    %31 = vector.load %arg2[%c0_15, %30, %c0_16] : memref<1x260x4xf32, #tpu.memory_space<vmem>>, vector<1x256x4xf32>
    %32 = vector.shape_cast %31 : vector<1x256x4xf32> to vector<256x4xf32>
    %33 = arith.truncf %32 : vector<256x4xf32> to vector<256x4xbf16>
    %c3 = arith.constant 3 : index
    %c0_17 = arith.constant 0 : index
    %c0_18 = arith.constant 0 : index
    %34 = vector.load %arg3[%c3, %c0_17, %c0_18] : memref<5x4x32xbf16, #tpu.memory_space<vmem>>, vector<1x4x32xbf16>
    %35 = vector.shape_cast %34 : vector<1x4x32xbf16> to vector<4x32xbf16>
    %cst_19 = arith.constant dense<0.000000e+00> : vector<256x32xf32>
    %36 = tpu.matmul %33, %35, %cst_19 {dimension_numbers = #tpu.dot_dimension_numbers<[1], [0], [0], [1], [0, 0, 1, 1], [], []>} : vector<256x4xbf16>, vector<4x32xbf16>, vector<256x32xf32> -> vector<256x32xf32>
    %37 = arith.addf %28, %36 : vector<256x32xf32>
    %c4_i32 = arith.constant 4 : i32
    %38 = arith.addi %0, %c4_i32 : i32
    %c0_20 = arith.constant 0 : index
    %39 = arith.index_cast %38 : i32 to index
    %c0_21 = arith.constant 0 : index
    %40 = vector.load %arg2[%c0_20, %39, %c0_21] : memref<1x260x4xf32, #tpu.memory_space<vmem>>, vector<1x256x4xf32>
    %41 = vector.shape_cast %40 : vector<1x256x4xf32> to vector<256x4xf32>
    %42 = arith.truncf %41 : vector<256x4xf32> to vector<256x4xbf16>
    %c4 = arith.constant 4 : index
    %c0_22 = arith.constant 0 : index
    %c0_23 = arith.constant 0 : index
    %43 = vector.load %arg3[%c4, %c0_22, %c0_23] : memref<5x4x32xbf16, #tpu.memory_space<vmem>>, vector<1x4x32xbf16>
    %44 = vector.shape_cast %43 : vector<1x4x32xbf16> to vector<4x32xbf16>
    %cst_24 = arith.constant dense<0.000000e+00> : vector<256x32xf32>
    %45 = tpu.matmul %42, %44, %cst_24 {dimension_numbers = #tpu.dot_dimension_numbers<[1], [0], [0], [1], [0, 0, 1, 1], [], []>} : vector<256x4xbf16>, vector<4x32xbf16>, vector<256x32xf32> -> vector<256x32xf32>
    %46 = arith.addf %37, %45 : vector<256x32xf32>
    %c0_25 = arith.constant 0 : index
    %c0_26 = arith.constant 0 : index
    %47 = vector.load %arg4[%c0_25, %c0_26] : memref<1x32xf32, #tpu.memory_space<vmem>>, vector<1x32xf32>
    %48 = vector.broadcast %47 : vector<1x32xf32> to vector<256x32xf32>
    %49 = arith.mulf %46, %48 : vector<256x32xf32>
    %c0_27 = arith.constant 0 : index
    %c0_28 = arith.constant 0 : index
    %50 = vector.load %arg5[%c0_27, %c0_28] : memref<1x32xf32, #tpu.memory_space<vmem>>, vector<1x32xf32>
    %51 = vector.broadcast %50 : vector<1x32xf32> to vector<256x32xf32>
    %52 = arith.addf %49, %51 : vector<256x32xf32>
    %cst_29 = arith.constant 0.000000e+00 : f32
    %53 = vector.broadcast %cst_29 : f32 to vector<256x32xf32>
    %54 = arith.maximumf %52, %53 : vector<256x32xf32>
    %c0_30 = arith.constant 0 : index
    %c0_31 = arith.constant 0 : index
    %c0_32 = arith.constant 0 : index
    %55 = vector.load %arg6[%c0_30, %c0_31, %c0_32] : memref<1x256x32xf32, #tpu.memory_space<vmem>>, vector<1x256x32xf32>
    %56 = vector.shape_cast %55 : vector<1x256x32xf32> to vector<256x32xf32>
    %57 = vector.shape_cast %54 : vector<256x32xf32> to vector<1x256x32xf32>
    tpu.vector_store %arg6[%c0_30, %c0_31, %c0_32], %57 {strides = array<i32>} : memref<1x256x32xf32, #tpu.memory_space<vmem>>, vector<1x256x32xf32>,
    return
  }
  func.func @transform_0(%arg0: i32, %arg1: i32) -> (i32, i32, i32) {
    %c0_i32 = arith.constant 0 : i32
    %c0_i32_0 = arith.constant 0 : i32
    %c0_i32_1 = arith.constant 0 : i32
    return %arg0, %c0_i32, %c0_i32_0 : i32, i32, i32
  }
  func.func @transform_1(%arg0: i32, %arg1: i32) -> (i32, i32, i32) {
    %c0_i32 = arith.constant 0 : i32
    %c0_i32_0 = arith.constant 0 : i32
    %c0_i32_1 = arith.constant 0 : i32
    %c0_i32_2 = arith.constant 0 : i32
    return %c0_i32, %c0_i32_0, %c0_i32_1 : i32, i32, i32
  }
  func.func @transform_2(%arg0: i32, %arg1: i32) -> (i32, i32) {
    %c0_i32 = arith.constant 0 : i32
    %c0_i32_0 = arith.constant 0 : i32
    %c0_i32_1 = arith.constant 0 : i32
    return %c0_i32, %c0_i32_0 : i32, i32
  }
  func.func @transform_3(%arg0: i32, %arg1: i32) -> (i32, i32) {
    %c0_i32 = arith.constant 0 : i32
    %c0_i32_0 = arith.constant 0 : i32
    %c0_i32_1 = arith.constant 0 : i32
    return %c0_i32, %c0_i32_0 : i32, i32
  }
  func.func @transform_4(%arg0: i32, %arg1: i32) -> (i32, i32, i32) {
    %c0_i32 = arith.constant 0 : i32
    %c0_i32_0 = arith.constant 0 : i32
    return %arg0, %arg1, %c0_i32 : i32, i32, i32
  }
}

module attributes {stable_mosaic.version = 11 : i64} {
  func.func @_maxpool_kernel(%arg0: i32, %arg1: i32, %arg2: memref<1x64x128xf32, #tpu.memory_space<vmem>>, %arg3: memref<1x64x32xf32, #tpu.memory_space<vmem>>) attributes {dimension_semantics = [#tpu.dimension_semantics<parallel>, #tpu.dimension_semantics<parallel>], iteration_bounds = array<i64: 2, 1>, scalar_prefetch = 0 : i64, scratch_operands = 0 : i64, tpu.core_type = #tpu.core_type<tc>, window_params = [{transform_indices = @transform_0, window_bounds = array<i64: 1, 64, 128>}, {transform_indices = @transform_1, window_bounds = array<i64: 1, 64, 32>}]} {
    %c0 = arith.constant 0 : index
    %c0_0 = arith.constant 0 : index
    %c0_1 = arith.constant 0 : index
    %0 = vector.load %arg2[%c0, %c0_0, %c0_1] : memref<1x64x128xf32, #tpu.memory_space<vmem>>, vector<1x64x32xf32>
    %1 = vector.shape_cast %0 : vector<1x64x32xf32> to vector<64x32xf32>
    %c0_2 = arith.constant 0 : index
    %c0_3 = arith.constant 0 : index
    %c32 = arith.constant 32 : index
    %2 = vector.load %arg2[%c0_2, %c0_3, %c32] : memref<1x64x128xf32, #tpu.memory_space<vmem>>, vector<1x64x32xf32>
    %3 = vector.shape_cast %2 : vector<1x64x32xf32> to vector<64x32xf32>
    %4 = arith.maximumf %1, %3 : vector<64x32xf32>
    %c0_4 = arith.constant 0 : index
    %c0_5 = arith.constant 0 : index
    %c64 = arith.constant 64 : index
    %5 = vector.load %arg2[%c0_4, %c0_5, %c64] : memref<1x64x128xf32, #tpu.memory_space<vmem>>, vector<1x64x32xf32>
    %6 = vector.shape_cast %5 : vector<1x64x32xf32> to vector<64x32xf32>
    %7 = arith.maximumf %4, %6 : vector<64x32xf32>
    %c0_6 = arith.constant 0 : index
    %c0_7 = arith.constant 0 : index
    %c96 = arith.constant 96 : index
    %8 = vector.load %arg2[%c0_6, %c0_7, %c96] : memref<1x64x128xf32, #tpu.memory_space<vmem>>, vector<1x64x32xf32>
    %9 = vector.shape_cast %8 : vector<1x64x32xf32> to vector<64x32xf32>
    %10 = arith.maximumf %7, %9 : vector<64x32xf32>
    %c0_8 = arith.constant 0 : index
    %c0_9 = arith.constant 0 : index
    %c0_10 = arith.constant 0 : index
    %11 = vector.load %arg3[%c0_8, %c0_9, %c0_10] : memref<1x64x32xf32, #tpu.memory_space<vmem>>, vector<1x64x32xf32>
    %12 = vector.shape_cast %11 : vector<1x64x32xf32> to vector<64x32xf32>
    %13 = vector.shape_cast %10 : vector<64x32xf32> to vector<1x64x32xf32>
    tpu.vector_store %arg3[%c0_8, %c0_9, %c0_10], %13 {strides = array<i32>} : memref<1x64x32xf32, #tpu.memory_space<vmem>>, vector<1x64x32xf32>,
    return
  }
  func.func @transform_0(%arg0: i32, %arg1: i32) -> (i32, i32, i32) {
    %c0_i32 = arith.constant 0 : i32
    %c0_i32_0 = arith.constant 0 : i32
    return %arg0, %arg1, %c0_i32 : i32, i32, i32
  }
  func.func @transform_1(%arg0: i32, %arg1: i32) -> (i32, i32, i32) {
    %c0_i32 = arith.constant 0 : i32
    %c0_i32_0 = arith.constant 0 : i32
    return %arg0, %arg1, %c0_i32 : i32, i32, i32
  }
}

module attributes {stable_mosaic.version = 11 : i64} {
  func.func @_conv_kernel(%arg0: i32, %arg1: i32, %arg2: memref<1x66x32xf32, #tpu.memory_space<vmem>>, %arg3: memref<3x32x32xbf16, #tpu.memory_space<vmem>>, %arg4: memref<1x32xf32, #tpu.memory_space<vmem>>, %arg5: memref<1x32xf32, #tpu.memory_space<vmem>>, %arg6: memref<1x64x32xf32, #tpu.memory_space<vmem>>) attributes {dimension_semantics = [#tpu.dimension_semantics<parallel>, #tpu.dimension_semantics<parallel>], iteration_bounds = array<i64: 2, 1>, scalar_prefetch = 0 : i64, scratch_operands = 0 : i64, tpu.core_type = #tpu.core_type<tc>, window_params = [{transform_indices = @transform_0, window_bounds = array<i64: 1, 66, 32>}, {pipeline_mode = #tpu.pipeline_mode<synchronous>, transform_indices = @transform_1, window_bounds = array<i64: 3, 32, 32>}, {pipeline_mode = #tpu.pipeline_mode<synchronous>, transform_indices = @transform_2, window_bounds = array<i64: 1, 32>}, {pipeline_mode = #tpu.pipeline_mode<synchronous>, transform_indices = @transform_3, window_bounds = array<i64: 1, 32>}, {transform_indices = @transform_4, window_bounds = array<i64: 1, 64, 32>}]} {
    %c64_i32 = arith.constant 64 : i32
    %0 = arith.muli %arg1, %c64_i32 : i32
    %cst = arith.constant 0.000000e+00 : f32
    %1 = vector.broadcast %cst : f32 to vector<64x32xf32>
    %c0_i32 = arith.constant 0 : i32
    %2 = arith.addi %0, %c0_i32 : i32
    %c0 = arith.constant 0 : index
    %3 = arith.index_cast %2 : i32 to index
    %c0_0 = arith.constant 0 : index
    %4 = vector.load %arg2[%c0, %3, %c0_0] : memref<1x66x32xf32, #tpu.memory_space<vmem>>, vector<1x64x32xf32>
    %5 = vector.shape_cast %4 : vector<1x64x32xf32> to vector<64x32xf32>
    %6 = arith.truncf %5 : vector<64x32xf32> to vector<64x32xbf16>
    %c0_1 = arith.constant 0 : index
    %c0_2 = arith.constant 0 : index
    %c0_3 = arith.constant 0 : index
    %7 = vector.load %arg3[%c0_1, %c0_2, %c0_3] : memref<3x32x32xbf16, #tpu.memory_space<vmem>>, vector<1x32x32xbf16>
    %8 = vector.shape_cast %7 : vector<1x32x32xbf16> to vector<32x32xbf16>
    %cst_4 = arith.constant dense<0.000000e+00> : vector<64x32xf32>
    %9 = tpu.matmul %6, %8, %cst_4 {dimension_numbers = #tpu.dot_dimension_numbers<[1], [0], [0], [1], [0, 0, 1, 1], [], []>} : vector<64x32xbf16>, vector<32x32xbf16>, vector<64x32xf32> -> vector<64x32xf32>
    %10 = arith.addf %1, %9 : vector<64x32xf32>
    %c1_i32 = arith.constant 1 : i32
    %11 = arith.addi %0, %c1_i32 : i32
    %c0_5 = arith.constant 0 : index
    %12 = arith.index_cast %11 : i32 to index
    %c0_6 = arith.constant 0 : index
    %13 = vector.load %arg2[%c0_5, %12, %c0_6] : memref<1x66x32xf32, #tpu.memory_space<vmem>>, vector<1x64x32xf32>
    %14 = vector.shape_cast %13 : vector<1x64x32xf32> to vector<64x32xf32>
    %15 = arith.truncf %14 : vector<64x32xf32> to vector<64x32xbf16>
    %c1 = arith.constant 1 : index
    %c0_7 = arith.constant 0 : index
    %c0_8 = arith.constant 0 : index
    %16 = vector.load %arg3[%c1, %c0_7, %c0_8] : memref<3x32x32xbf16, #tpu.memory_space<vmem>>, vector<1x32x32xbf16>
    %17 = vector.shape_cast %16 : vector<1x32x32xbf16> to vector<32x32xbf16>
    %cst_9 = arith.constant dense<0.000000e+00> : vector<64x32xf32>
    %18 = tpu.matmul %15, %17, %cst_9 {dimension_numbers = #tpu.dot_dimension_numbers<[1], [0], [0], [1], [0, 0, 1, 1], [], []>} : vector<64x32xbf16>, vector<32x32xbf16>, vector<64x32xf32> -> vector<64x32xf32>
    %19 = arith.addf %10, %18 : vector<64x32xf32>
    %c2_i32 = arith.constant 2 : i32
    %20 = arith.addi %0, %c2_i32 : i32
    %c0_10 = arith.constant 0 : index
    %21 = arith.index_cast %20 : i32 to index
    %c0_11 = arith.constant 0 : index
    %22 = vector.load %arg2[%c0_10, %21, %c0_11] : memref<1x66x32xf32, #tpu.memory_space<vmem>>, vector<1x64x32xf32>
    %23 = vector.shape_cast %22 : vector<1x64x32xf32> to vector<64x32xf32>
    %24 = arith.truncf %23 : vector<64x32xf32> to vector<64x32xbf16>
    %c2 = arith.constant 2 : index
    %c0_12 = arith.constant 0 : index
    %c0_13 = arith.constant 0 : index
    %25 = vector.load %arg3[%c2, %c0_12, %c0_13] : memref<3x32x32xbf16, #tpu.memory_space<vmem>>, vector<1x32x32xbf16>
    %26 = vector.shape_cast %25 : vector<1x32x32xbf16> to vector<32x32xbf16>
    %cst_14 = arith.constant dense<0.000000e+00> : vector<64x32xf32>
    %27 = tpu.matmul %24, %26, %cst_14 {dimension_numbers = #tpu.dot_dimension_numbers<[1], [0], [0], [1], [0, 0, 1, 1], [], []>} : vector<64x32xbf16>, vector<32x32xbf16>, vector<64x32xf32> -> vector<64x32xf32>
    %28 = arith.addf %19, %27 : vector<64x32xf32>
    %c0_15 = arith.constant 0 : index
    %c0_16 = arith.constant 0 : index
    %29 = vector.load %arg4[%c0_15, %c0_16] : memref<1x32xf32, #tpu.memory_space<vmem>>, vector<1x32xf32>
    %30 = vector.broadcast %29 : vector<1x32xf32> to vector<64x32xf32>
    %31 = arith.mulf %28, %30 : vector<64x32xf32>
    %c0_17 = arith.constant 0 : index
    %c0_18 = arith.constant 0 : index
    %32 = vector.load %arg5[%c0_17, %c0_18] : memref<1x32xf32, #tpu.memory_space<vmem>>, vector<1x32xf32>
    %33 = vector.broadcast %32 : vector<1x32xf32> to vector<64x32xf32>
    %34 = arith.addf %31, %33 : vector<64x32xf32>
    %cst_19 = arith.constant 0.000000e+00 : f32
    %35 = vector.broadcast %cst_19 : f32 to vector<64x32xf32>
    %36 = arith.maximumf %34, %35 : vector<64x32xf32>
    %c0_20 = arith.constant 0 : index
    %c0_21 = arith.constant 0 : index
    %c0_22 = arith.constant 0 : index
    %37 = vector.load %arg6[%c0_20, %c0_21, %c0_22] : memref<1x64x32xf32, #tpu.memory_space<vmem>>, vector<1x64x32xf32>
    %38 = vector.shape_cast %37 : vector<1x64x32xf32> to vector<64x32xf32>
    %39 = vector.shape_cast %36 : vector<64x32xf32> to vector<1x64x32xf32>
    tpu.vector_store %arg6[%c0_20, %c0_21, %c0_22], %39 {strides = array<i32>} : memref<1x64x32xf32, #tpu.memory_space<vmem>>, vector<1x64x32xf32>,
    return
  }
  func.func @transform_0(%arg0: i32, %arg1: i32) -> (i32, i32, i32) {
    %c0_i32 = arith.constant 0 : i32
    %c0_i32_0 = arith.constant 0 : i32
    %c0_i32_1 = arith.constant 0 : i32
    return %arg0, %c0_i32, %c0_i32_0 : i32, i32, i32
  }
  func.func @transform_1(%arg0: i32, %arg1: i32) -> (i32, i32, i32) {
    %c0_i32 = arith.constant 0 : i32
    %c0_i32_0 = arith.constant 0 : i32
    %c0_i32_1 = arith.constant 0 : i32
    %c0_i32_2 = arith.constant 0 : i32
    return %c0_i32, %c0_i32_0, %c0_i32_1 : i32, i32, i32
  }
  func.func @transform_2(%arg0: i32, %arg1: i32) -> (i32, i32) {
    %c0_i32 = arith.constant 0 : i32
    %c0_i32_0 = arith.constant 0 : i32
    %c0_i32_1 = arith.constant 0 : i32
    return %c0_i32, %c0_i32_0 : i32, i32
  }
  func.func @transform_3(%arg0: i32, %arg1: i32) -> (i32, i32) {
    %c0_i32 = arith.constant 0 : i32
    %c0_i32_0 = arith.constant 0 : i32
    %c0_i32_1 = arith.constant 0 : i32
    return %c0_i32, %c0_i32_0 : i32, i32
  }
  func.func @transform_4(%arg0: i32, %arg1: i32) -> (i32, i32, i32) {
    %c0_i32 = arith.constant 0 : i32
    %c0_i32_0 = arith.constant 0 : i32
    return %arg0, %arg1, %c0_i32 : i32, i32, i32
  }
}

module attributes {stable_mosaic.version = 11 : i64} {
  func.func @_conv_kernel(%arg0: i32, %arg1: i32, %arg2: memref<1x66x32xf32, #tpu.memory_space<vmem>>, %arg3: memref<3x32x32xbf16, #tpu.memory_space<vmem>>, %arg4: memref<1x32xf32, #tpu.memory_space<vmem>>, %arg5: memref<1x32xf32, #tpu.memory_space<vmem>>, %arg6: memref<1x64x32xf32, #tpu.memory_space<vmem>>, %arg7: memref<1x64x32xf32, #tpu.memory_space<vmem>>) attributes {dimension_semantics = [#tpu.dimension_semantics<parallel>, #tpu.dimension_semantics<parallel>], iteration_bounds = array<i64: 2, 1>, scalar_prefetch = 0 : i64, scratch_operands = 0 : i64, tpu.core_type = #tpu.core_type<tc>, window_params = [{transform_indices = @transform_0, window_bounds = array<i64: 1, 66, 32>}, {pipeline_mode = #tpu.pipeline_mode<synchronous>, transform_indices = @transform_1, window_bounds = array<i64: 3, 32, 32>}, {pipeline_mode = #tpu.pipeline_mode<synchronous>, transform_indices = @transform_2, window_bounds = array<i64: 1, 32>}, {pipeline_mode = #tpu.pipeline_mode<synchronous>, transform_indices = @transform_3, window_bounds = array<i64: 1, 32>}, {transform_indices = @transform_4, window_bounds = array<i64: 1, 64, 32>}, {transform_indices = @transform_5, window_bounds = array<i64: 1, 64, 32>}]} {
    %c64_i32 = arith.constant 64 : i32
    %0 = arith.muli %arg1, %c64_i32 : i32
    %cst = arith.constant 0.000000e+00 : f32
    %1 = vector.broadcast %cst : f32 to vector<64x32xf32>
    %c0_i32 = arith.constant 0 : i32
    %2 = arith.addi %0, %c0_i32 : i32
    %c0 = arith.constant 0 : index
    %3 = arith.index_cast %2 : i32 to index
    %c0_0 = arith.constant 0 : index
    %4 = vector.load %arg2[%c0, %3, %c0_0] : memref<1x66x32xf32, #tpu.memory_space<vmem>>, vector<1x64x32xf32>
    %5 = vector.shape_cast %4 : vector<1x64x32xf32> to vector<64x32xf32>
    %6 = arith.truncf %5 : vector<64x32xf32> to vector<64x32xbf16>
    %c0_1 = arith.constant 0 : index
    %c0_2 = arith.constant 0 : index
    %c0_3 = arith.constant 0 : index
    %7 = vector.load %arg3[%c0_1, %c0_2, %c0_3] : memref<3x32x32xbf16, #tpu.memory_space<vmem>>, vector<1x32x32xbf16>
    %8 = vector.shape_cast %7 : vector<1x32x32xbf16> to vector<32x32xbf16>
    %cst_4 = arith.constant dense<0.000000e+00> : vector<64x32xf32>
    %9 = tpu.matmul %6, %8, %cst_4 {dimension_numbers = #tpu.dot_dimension_numbers<[1], [0], [0], [1], [0, 0, 1, 1], [], []>} : vector<64x32xbf16>, vector<32x32xbf16>, vector<64x32xf32> -> vector<64x32xf32>
    %10 = arith.addf %1, %9 : vector<64x32xf32>
    %c1_i32 = arith.constant 1 : i32
    %11 = arith.addi %0, %c1_i32 : i32
    %c0_5 = arith.constant 0 : index
    %12 = arith.index_cast %11 : i32 to index
    %c0_6 = arith.constant 0 : index
    %13 = vector.load %arg2[%c0_5, %12, %c0_6] : memref<1x66x32xf32, #tpu.memory_space<vmem>>, vector<1x64x32xf32>
    %14 = vector.shape_cast %13 : vector<1x64x32xf32> to vector<64x32xf32>
    %15 = arith.truncf %14 : vector<64x32xf32> to vector<64x32xbf16>
    %c1 = arith.constant 1 : index
    %c0_7 = arith.constant 0 : index
    %c0_8 = arith.constant 0 : index
    %16 = vector.load %arg3[%c1, %c0_7, %c0_8] : memref<3x32x32xbf16, #tpu.memory_space<vmem>>, vector<1x32x32xbf16>
    %17 = vector.shape_cast %16 : vector<1x32x32xbf16> to vector<32x32xbf16>
    %cst_9 = arith.constant dense<0.000000e+00> : vector<64x32xf32>
    %18 = tpu.matmul %15, %17, %cst_9 {dimension_numbers = #tpu.dot_dimension_numbers<[1], [0], [0], [1], [0, 0, 1, 1], [], []>} : vector<64x32xbf16>, vector<32x32xbf16>, vector<64x32xf32> -> vector<64x32xf32>
    %19 = arith.addf %10, %18 : vector<64x32xf32>
    %c2_i32 = arith.constant 2 : i32
    %20 = arith.addi %0, %c2_i32 : i32
    %c0_10 = arith.constant 0 : index
    %21 = arith.index_cast %20 : i32 to index
    %c0_11 = arith.constant 0 : index
    %22 = vector.load %arg2[%c0_10, %21, %c0_11] : memref<1x66x32xf32, #tpu.memory_space<vmem>>, vector<1x64x32xf32>
    %23 = vector.shape_cast %22 : vector<1x64x32xf32> to vector<64x32xf32>
    %24 = arith.truncf %23 : vector<64x32xf32> to vector<64x32xbf16>
    %c2 = arith.constant 2 : index
    %c0_12 = arith.constant 0 : index
    %c0_13 = arith.constant 0 : index
    %25 = vector.load %arg3[%c2, %c0_12, %c0_13] : memref<3x32x32xbf16, #tpu.memory_space<vmem>>, vector<1x32x32xbf16>
    %26 = vector.shape_cast %25 : vector<1x32x32xbf16> to vector<32x32xbf16>
    %cst_14 = arith.constant dense<0.000000e+00> : vector<64x32xf32>
    %27 = tpu.matmul %24, %26, %cst_14 {dimension_numbers = #tpu.dot_dimension_numbers<[1], [0], [0], [1], [0, 0, 1, 1], [], []>} : vector<64x32xbf16>, vector<32x32xbf16>, vector<64x32xf32> -> vector<64x32xf32>
    %28 = arith.addf %19, %27 : vector<64x32xf32>
    %c0_15 = arith.constant 0 : index
    %c0_16 = arith.constant 0 : index
    %29 = vector.load %arg4[%c0_15, %c0_16] : memref<1x32xf32, #tpu.memory_space<vmem>>, vector<1x32xf32>
    %30 = vector.broadcast %29 : vector<1x32xf32> to vector<64x32xf32>
    %31 = arith.mulf %28, %30 : vector<64x32xf32>
    %c0_17 = arith.constant 0 : index
    %c0_18 = arith.constant 0 : index
    %32 = vector.load %arg5[%c0_17, %c0_18] : memref<1x32xf32, #tpu.memory_space<vmem>>, vector<1x32xf32>
    %33 = vector.broadcast %32 : vector<1x32xf32> to vector<64x32xf32>
    %34 = arith.addf %31, %33 : vector<64x32xf32>
    %c0_19 = arith.constant 0 : index
    %c0_20 = arith.constant 0 : index
    %c0_21 = arith.constant 0 : index
    %35 = vector.load %arg6[%c0_19, %c0_20, %c0_21] : memref<1x64x32xf32, #tpu.memory_space<vmem>>, vector<1x64x32xf32>
    %36 = vector.shape_cast %35 : vector<1x64x32xf32> to vector<64x32xf32>
    %37 = arith.addf %34, %36 : vector<64x32xf32>
    %c0_22 = arith.constant 0 : index
    %c0_23 = arith.constant 0 : index
    %c0_24 = arith.constant 0 : index
    %38 = vector.load %arg7[%c0_22, %c0_23, %c0_24] : memref<1x64x32xf32, #tpu.memory_space<vmem>>, vector<1x64x32xf32>
    %39 = vector.shape_cast %38 : vector<1x64x32xf32> to vector<64x32xf32>
    %40 = vector.shape_cast %37 : vector<64x32xf32> to vector<1x64x32xf32>
    tpu.vector_store %arg7[%c0_22, %c0_23, %c0_24], %40 {strides = array<i32>} : memref<1x64x32xf32, #tpu.memory_space<vmem>>, vector<1x64x32xf32>,
    return
  }
  func.func @transform_0(%arg0: i32, %arg1: i32) -> (i32, i32, i32) {
    %c0_i32 = arith.constant 0 : i32
    %c0_i32_0 = arith.constant 0 : i32
    %c0_i32_1 = arith.constant 0 : i32
    return %arg0, %c0_i32, %c0_i32_0 : i32, i32, i32
  }
  func.func @transform_1(%arg0: i32, %arg1: i32) -> (i32, i32, i32) {
    %c0_i32 = arith.constant 0 : i32
    %c0_i32_0 = arith.constant 0 : i32
    %c0_i32_1 = arith.constant 0 : i32
    %c0_i32_2 = arith.constant 0 : i32
    return %c0_i32, %c0_i32_0, %c0_i32_1 : i32, i32, i32
  }
  func.func @transform_2(%arg0: i32, %arg1: i32) -> (i32, i32) {
    %c0_i32 = arith.constant 0 : i32
    %c0_i32_0 = arith.constant 0 : i32
    %c0_i32_1 = arith.constant 0 : i32
    return %c0_i32, %c0_i32_0 : i32, i32
  }
  func.func @transform_3(%arg0: i32, %arg1: i32) -> (i32, i32) {
    %c0_i32 = arith.constant 0 : i32
    %c0_i32_0 = arith.constant 0 : i32
    %c0_i32_1 = arith.constant 0 : i32
    return %c0_i32, %c0_i32_0 : i32, i32
  }
  func.func @transform_4(%arg0: i32, %arg1: i32) -> (i32, i32, i32) {
    %c0_i32 = arith.constant 0 : i32
    %c0_i32_0 = arith.constant 0 : i32
    return %arg0, %arg1, %c0_i32 : i32, i32, i32
  }
  func.func @transform_5(%arg0: i32, %arg1: i32) -> (i32, i32, i32) {
    %c0_i32 = arith.constant 0 : i32
    %c0_i32_0 = arith.constant 0 : i32
    return %arg0, %arg1, %c0_i32 : i32, i32, i32
  }
}

module attributes {stable_mosaic.version = 11 : i64} {
  func.func @_conv_kernel(%arg0: i32, %arg1: i32, %arg2: memref<1x16x128xf32, #tpu.memory_space<vmem>>, %arg3: memref<1x32xf32, #tpu.memory_space<vmem>>, %arg4: memref<1x32xf32, #tpu.memory_space<vmem>>, %arg5: memref<3x32x32xbf16, #tpu.memory_space<vmem>>, %arg6: memref<1x32xf32, #tpu.memory_space<vmem>>, %arg7: memref<1x32xf32, #tpu.memory_space<vmem>>, %arg8: memref<1x16x32xf32, #tpu.memory_space<vmem>>) attributes {dimension_semantics = [#tpu.dimension_semantics<parallel>, #tpu.dimension_semantics<parallel>], iteration_bounds = array<i64: 2, 1>, scalar_prefetch = 0 : i64, scratch_operands = 0 : i64, tpu.core_type = #tpu.core_type<tc>, window_params = [{transform_indices = @transform_0, window_bounds = array<i64: 1, 16, 128>}, {pipeline_mode = #tpu.pipeline_mode<synchronous>, transform_indices = @transform_1, window_bounds = array<i64: 1, 32>}, {pipeline_mode = #tpu.pipeline_mode<synchronous>, transform_indices = @transform_2, window_bounds = array<i64: 1, 32>}, {pipeline_mode = #tpu.pipeline_mode<synchronous>, transform_indices = @transform_3, window_bounds = array<i64: 3, 32, 32>}, {pipeline_mode = #tpu.pipeline_mode<synchronous>, transform_indices = @transform_4, window_bounds = array<i64: 1, 32>}, {pipeline_mode = #tpu.pipeline_mode<synchronous>, transform_indices = @transform_5, window_bounds = array<i64: 1, 32>}, {transform_indices = @transform_6, window_bounds = array<i64: 1, 16, 32>}]} {
    %c16_i32 = arith.constant 16 : i32
    %0 = arith.muli %arg1, %c16_i32 : i32
    %cst = arith.constant 0.000000e+00 : f32
    %1 = vector.broadcast %cst : f32 to vector<16x32xf32>
    %c0_i32 = arith.constant 0 : i32
    %2 = arith.addi %0, %c0_i32 : i32
    %c0 = arith.constant 0 : index
    %3 = arith.index_cast %2 : i32 to index
    %c0_0 = arith.constant 0 : index
    %4 = vector.load %arg2[%c0, %3, %c0_0] : memref<1x16x128xf32, #tpu.memory_space<vmem>>, vector<1x16x32xf32>
    %5 = vector.shape_cast %4 : vector<1x16x32xf32> to vector<16x32xf32>
    %c0_1 = arith.constant 0 : index
    %c0_2 = arith.constant 0 : index
    %6 = vector.load %arg3[%c0_1, %c0_2] : memref<1x32xf32, #tpu.memory_space<vmem>>, vector<1x32xf32>
    %7 = vector.broadcast %6 : vector<1x32xf32> to vector<16x32xf32>
    %8 = arith.mulf %5, %7 : vector<16x32xf32>
    %c0_3 = arith.constant 0 : index
    %c0_4 = arith.constant 0 : index
    %9 = vector.load %arg4[%c0_3, %c0_4] : memref<1x32xf32, #tpu.memory_space<vmem>>, vector<1x32xf32>
    %10 = vector.broadcast %9 : vector<1x32xf32> to vector<16x32xf32>
    %11 = arith.addf %8, %10 : vector<16x32xf32>
    %cst_5 = arith.constant 0.000000e+00 : f32
    %12 = vector.broadcast %cst_5 : f32 to vector<16x32xf32>
    %13 = arith.maximumf %11, %12 : vector<16x32xf32>
    %14 = arith.truncf %13 : vector<16x32xf32> to vector<16x32xbf16>
    %c0_6 = arith.constant 0 : index
    %c0_7 = arith.constant 0 : index
    %c0_8 = arith.constant 0 : index
    %15 = vector.load %arg5[%c0_6, %c0_7, %c0_8] : memref<3x32x32xbf16, #tpu.memory_space<vmem>>, vector<1x32x32xbf16>
    %16 = vector.shape_cast %15 : vector<1x32x32xbf16> to vector<32x32xbf16>
    %cst_9 = arith.constant dense<0.000000e+00> : vector<16x32xf32>
    %17 = tpu.matmul %14, %16, %cst_9 {dimension_numbers = #tpu.dot_dimension_numbers<[1], [0], [0], [1], [0, 0, 1, 1], [], []>} : vector<16x32xbf16>, vector<32x32xbf16>, vector<16x32xf32> -> vector<16x32xf32>
    %18 = arith.addf %1, %17 : vector<16x32xf32>
    %c0_i32_10 = arith.constant 0 : i32
    %19 = arith.addi %0, %c0_i32_10 : i32
    %c0_11 = arith.constant 0 : index
    %20 = arith.index_cast %19 : i32 to index
    %c32 = arith.constant 32 : index
    %21 = vector.load %arg2[%c0_11, %20, %c32] : memref<1x16x128xf32, #tpu.memory_space<vmem>>, vector<1x16x32xf32>
    %22 = vector.shape_cast %21 : vector<1x16x32xf32> to vector<16x32xf32>
    %c0_12 = arith.constant 0 : index
    %c0_13 = arith.constant 0 : index
    %23 = vector.load %arg3[%c0_12, %c0_13] : memref<1x32xf32, #tpu.memory_space<vmem>>, vector<1x32xf32>
    %24 = vector.broadcast %23 : vector<1x32xf32> to vector<16x32xf32>
    %25 = arith.mulf %22, %24 : vector<16x32xf32>
    %c0_14 = arith.constant 0 : index
    %c0_15 = arith.constant 0 : index
    %26 = vector.load %arg4[%c0_14, %c0_15] : memref<1x32xf32, #tpu.memory_space<vmem>>, vector<1x32xf32>
    %27 = vector.broadcast %26 : vector<1x32xf32> to vector<16x32xf32>
    %28 = arith.addf %25, %27 : vector<16x32xf32>
    %cst_16 = arith.constant 0.000000e+00 : f32
    %29 = vector.broadcast %cst_16 : f32 to vector<16x32xf32>
    %30 = arith.maximumf %28, %29 : vector<16x32xf32>
    %31 = arith.truncf %30 : vector<16x32xf32> to vector<16x32xbf16>
    %c1 = arith.constant 1 : index
    %c0_17 = arith.constant 0 : index
    %c0_18 = arith.constant 0 : index
    %32 = vector.load %arg5[%c1, %c0_17, %c0_18] : memref<3x32x32xbf16, #tpu.memory_space<vmem>>, vector<1x32x32xbf16>
    %33 = vector.shape_cast %32 : vector<1x32x32xbf16> to vector<32x32xbf16>
    %cst_19 = arith.constant dense<0.000000e+00> : vector<16x32xf32>
    %34 = tpu.matmul %31, %33, %cst_19 {dimension_numbers = #tpu.dot_dimension_numbers<[1], [0], [0], [1], [0, 0, 1, 1], [], []>} : vector<16x32xbf16>, vector<32x32xbf16>, vector<16x32xf32> -> vector<16x32xf32>
    %35 = arith.addf %18, %34 : vector<16x32xf32>
    %c0_i32_20 = arith.constant 0 : i32
    %36 = arith.addi %0, %c0_i32_20 : i32
    %c0_21 = arith.constant 0 : index
    %37 = arith.index_cast %36 : i32 to index
    %c64 = arith.constant 64 : index
    %38 = vector.load %arg2[%c0_21, %37, %c64] : memref<1x16x128xf32, #tpu.memory_space<vmem>>, vector<1x16x32xf32>
    %39 = vector.shape_cast %38 : vector<1x16x32xf32> to vector<16x32xf32>
    %c0_22 = arith.constant 0 : index
    %c0_23 = arith.constant 0 : index
    %40 = vector.load %arg3[%c0_22, %c0_23] : memref<1x32xf32, #tpu.memory_space<vmem>>, vector<1x32xf32>
    %41 = vector.broadcast %40 : vector<1x32xf32> to vector<16x32xf32>
    %42 = arith.mulf %39, %41 : vector<16x32xf32>
    %c0_24 = arith.constant 0 : index
    %c0_25 = arith.constant 0 : index
    %43 = vector.load %arg4[%c0_24, %c0_25] : memref<1x32xf32, #tpu.memory_space<vmem>>, vector<1x32xf32>
    %44 = vector.broadcast %43 : vector<1x32xf32> to vector<16x32xf32>
    %45 = arith.addf %42, %44 : vector<16x32xf32>
    %cst_26 = arith.constant 0.000000e+00 : f32
    %46 = vector.broadcast %cst_26 : f32 to vector<16x32xf32>
    %47 = arith.maximumf %45, %46 : vector<16x32xf32>
    %48 = arith.truncf %47 : vector<16x32xf32> to vector<16x32xbf16>
    %c2 = arith.constant 2 : index
    %c0_27 = arith.constant 0 : index
    %c0_28 = arith.constant 0 : index
    %49 = vector.load %arg5[%c2, %c0_27, %c0_28] : memref<3x32x32xbf16, #tpu.memory_space<vmem>>, vector<1x32x32xbf16>
    %50 = vector.shape_cast %49 : vector<1x32x32xbf16> to vector<32x32xbf16>
    %cst_29 = arith.constant dense<0.000000e+00> : vector<16x32xf32>
    %51 = tpu.matmul %48, %50, %cst_29 {dimension_numbers = #tpu.dot_dimension_numbers<[1], [0], [0], [1], [0, 0, 1, 1], [], []>} : vector<16x32xbf16>, vector<32x32xbf16>, vector<16x32xf32> -> vector<16x32xf32>
    %52 = arith.addf %35, %51 : vector<16x32xf32>
    %c0_30 = arith.constant 0 : index
    %c0_31 = arith.constant 0 : index
    %53 = vector.load %arg6[%c0_30, %c0_31] : memref<1x32xf32, #tpu.memory_space<vmem>>, vector<1x32xf32>
    %54 = vector.broadcast %53 : vector<1x32xf32> to vector<16x32xf32>
    %55 = arith.mulf %52, %54 : vector<16x32xf32>
    %c0_32 = arith.constant 0 : index
    %c0_33 = arith.constant 0 : index
    %56 = vector.load %arg7[%c0_32, %c0_33] : memref<1x32xf32, #tpu.memory_space<vmem>>, vector<1x32xf32>
    %57 = vector.broadcast %56 : vector<1x32xf32> to vector<16x32xf32>
    %58 = arith.addf %55, %57 : vector<16x32xf32>
    %cst_34 = arith.constant 0.000000e+00 : f32
    %59 = vector.broadcast %cst_34 : f32 to vector<16x32xf32>
    %60 = arith.maximumf %58, %59 : vector<16x32xf32>
    %c0_35 = arith.constant 0 : index
    %c0_36 = arith.constant 0 : index
    %c0_37 = arith.constant 0 : index
    %61 = vector.load %arg8[%c0_35, %c0_36, %c0_37] : memref<1x16x32xf32, #tpu.memory_space<vmem>>, vector<1x16x32xf32>
    %62 = vector.shape_cast %61 : vector<1x16x32xf32> to vector<16x32xf32>
    %63 = vector.shape_cast %60 : vector<16x32xf32> to vector<1x16x32xf32>
    tpu.vector_store %arg8[%c0_35, %c0_36, %c0_37], %63 {strides = array<i32>} : memref<1x16x32xf32, #tpu.memory_space<vmem>>, vector<1x16x32xf32>,
    return
  }
  func.func @transform_0(%arg0: i32, %arg1: i32) -> (i32, i32, i32) {
    %c0_i32 = arith.constant 0 : i32
    %c0_i32_0 = arith.constant 0 : i32
    %c0_i32_1 = arith.constant 0 : i32
    return %arg0, %c0_i32, %c0_i32_0 : i32, i32, i32
  }
  func.func @transform_1(%arg0: i32, %arg1: i32) -> (i32, i32) {
    %c0_i32 = arith.constant 0 : i32
    %c0_i32_0 = arith.constant 0 : i32
    %c0_i32_1 = arith.constant 0 : i32
    return %c0_i32, %c0_i32_0 : i32, i32
  }
  func.func @transform_2(%arg0: i32, %arg1: i32) -> (i32, i32) {
    %c0_i32 = arith.constant 0 : i32
    %c0_i32_0 = arith.constant 0 : i32
    %c0_i32_1 = arith.constant 0 : i32
    return %c0_i32, %c0_i32_0 : i32, i32
  }
  func.func @transform_3(%arg0: i32, %arg1: i32) -> (i32, i32, i32) {
    %c0_i32 = arith.constant 0 : i32
    %c0_i32_0 = arith.constant 0 : i32
    %c0_i32_1 = arith.constant 0 : i32
    %c0_i32_2 = arith.constant 0 : i32
    return %c0_i32, %c0_i32_0, %c0_i32_1 : i32, i32, i32
  }
  func.func @transform_4(%arg0: i32, %arg1: i32) -> (i32, i32) {
    %c0_i32 = arith.constant 0 : i32
    %c0_i32_0 = arith.constant 0 : i32
    %c0_i32_1 = arith.constant 0 : i32
    return %c0_i32, %c0_i32_0 : i32, i32
  }
  func.func @transform_5(%arg0: i32, %arg1: i32) -> (i32, i32) {
    %c0_i32 = arith.constant 0 : i32
    %c0_i32_0 = arith.constant 0 : i32
    %c0_i32_1 = arith.constant 0 : i32
    return %c0_i32, %c0_i32_0 : i32, i32
  }
  func.func @transform_6(%arg0: i32, %arg1: i32) -> (i32, i32, i32) {
    %c0_i32 = arith.constant 0 : i32
    %c0_i32_0 = arith.constant 0 : i32
    return %arg0, %arg1, %c0_i32 : i32, i32, i32
  }
}

module attributes {stable_mosaic.version = 11 : i64} {
  func.func @_maxpool_kernel(%arg0: i32, %arg1: i32, %arg2: memref<1x16x128xf32, #tpu.memory_space<vmem>>, %arg3: memref<1x16x32xf32, #tpu.memory_space<vmem>>) attributes {dimension_semantics = [#tpu.dimension_semantics<parallel>, #tpu.dimension_semantics<parallel>], iteration_bounds = array<i64: 2, 1>, scalar_prefetch = 0 : i64, scratch_operands = 0 : i64, tpu.core_type = #tpu.core_type<tc>, window_params = [{transform_indices = @transform_0, window_bounds = array<i64: 1, 16, 128>}, {transform_indices = @transform_1, window_bounds = array<i64: 1, 16, 32>}]} {
    %c0 = arith.constant 0 : index
    %c0_0 = arith.constant 0 : index
    %c0_1 = arith.constant 0 : index
    %0 = vector.load %arg2[%c0, %c0_0, %c0_1] : memref<1x16x128xf32, #tpu.memory_space<vmem>>, vector<1x16x32xf32>
    %1 = vector.shape_cast %0 : vector<1x16x32xf32> to vector<16x32xf32>
    %c0_2 = arith.constant 0 : index
    %c0_3 = arith.constant 0 : index
    %c32 = arith.constant 32 : index
    %2 = vector.load %arg2[%c0_2, %c0_3, %c32] : memref<1x16x128xf32, #tpu.memory_space<vmem>>, vector<1x16x32xf32>
    %3 = vector.shape_cast %2 : vector<1x16x32xf32> to vector<16x32xf32>
    %4 = arith.maximumf %1, %3 : vector<16x32xf32>
    %c0_4 = arith.constant 0 : index
    %c0_5 = arith.constant 0 : index
    %c64 = arith.constant 64 : index
    %5 = vector.load %arg2[%c0_4, %c0_5, %c64] : memref<1x16x128xf32, #tpu.memory_space<vmem>>, vector<1x16x32xf32>
    %6 = vector.shape_cast %5 : vector<1x16x32xf32> to vector<16x32xf32>
    %7 = arith.maximumf %4, %6 : vector<16x32xf32>
    %c0_6 = arith.constant 0 : index
    %c0_7 = arith.constant 0 : index
    %c96 = arith.constant 96 : index
    %8 = vector.load %arg2[%c0_6, %c0_7, %c96] : memref<1x16x128xf32, #tpu.memory_space<vmem>>, vector<1x16x32xf32>
    %9 = vector.shape_cast %8 : vector<1x16x32xf32> to vector<16x32xf32>
    %10 = arith.maximumf %7, %9 : vector<16x32xf32>
    %c0_8 = arith.constant 0 : index
    %c0_9 = arith.constant 0 : index
    %c0_10 = arith.constant 0 : index
    %11 = vector.load %arg3[%c0_8, %c0_9, %c0_10] : memref<1x16x32xf32, #tpu.memory_space<vmem>>, vector<1x16x32xf32>
    %12 = vector.shape_cast %11 : vector<1x16x32xf32> to vector<16x32xf32>
    %13 = vector.shape_cast %10 : vector<16x32xf32> to vector<1x16x32xf32>
    tpu.vector_store %arg3[%c0_8, %c0_9, %c0_10], %13 {strides = array<i32>} : memref<1x16x32xf32, #tpu.memory_space<vmem>>, vector<1x16x32xf32>,
    return
  }
  func.func @transform_0(%arg0: i32, %arg1: i32) -> (i32, i32, i32) {
    %c0_i32 = arith.constant 0 : i32
    %c0_i32_0 = arith.constant 0 : i32
    return %arg0, %arg1, %c0_i32 : i32, i32, i32
  }
  func.func @transform_1(%arg0: i32, %arg1: i32) -> (i32, i32, i32) {
    %c0_i32 = arith.constant 0 : i32
    %c0_i32_0 = arith.constant 0 : i32
    return %arg0, %arg1, %c0_i32 : i32, i32, i32
  }
}

module attributes {stable_mosaic.version = 11 : i64} {
  func.func @_conv_kernel(%arg0: i32, %arg1: i32, %arg2: memref<1x18x32xf32, #tpu.memory_space<vmem>>, %arg3: memref<3x32x32xbf16, #tpu.memory_space<vmem>>, %arg4: memref<1x32xf32, #tpu.memory_space<vmem>>, %arg5: memref<1x32xf32, #tpu.memory_space<vmem>>, %arg6: memref<1x16x32xf32, #tpu.memory_space<vmem>>, %arg7: memref<1x16x32xf32, #tpu.memory_space<vmem>>) attributes {dimension_semantics = [#tpu.dimension_semantics<parallel>, #tpu.dimension_semantics<parallel>], iteration_bounds = array<i64: 2, 1>, scalar_prefetch = 0 : i64, scratch_operands = 0 : i64, tpu.core_type = #tpu.core_type<tc>, window_params = [{transform_indices = @transform_0, window_bounds = array<i64: 1, 18, 32>}, {pipeline_mode = #tpu.pipeline_mode<synchronous>, transform_indices = @transform_1, window_bounds = array<i64: 3, 32, 32>}, {pipeline_mode = #tpu.pipeline_mode<synchronous>, transform_indices = @transform_2, window_bounds = array<i64: 1, 32>}, {pipeline_mode = #tpu.pipeline_mode<synchronous>, transform_indices = @transform_3, window_bounds = array<i64: 1, 32>}, {transform_indices = @transform_4, window_bounds = array<i64: 1, 16, 32>}, {transform_indices = @transform_5, window_bounds = array<i64: 1, 16, 32>}]} {
    %c16_i32 = arith.constant 16 : i32
    %0 = arith.muli %arg1, %c16_i32 : i32
    %cst = arith.constant 0.000000e+00 : f32
    %1 = vector.broadcast %cst : f32 to vector<16x32xf32>
    %c0_i32 = arith.constant 0 : i32
    %2 = arith.addi %0, %c0_i32 : i32
    %c0 = arith.constant 0 : index
    %3 = arith.index_cast %2 : i32 to index
    %c0_0 = arith.constant 0 : index
    %4 = vector.load %arg2[%c0, %3, %c0_0] : memref<1x18x32xf32, #tpu.memory_space<vmem>>, vector<1x16x32xf32>
    %5 = vector.shape_cast %4 : vector<1x16x32xf32> to vector<16x32xf32>
    %6 = arith.truncf %5 : vector<16x32xf32> to vector<16x32xbf16>
    %c0_1 = arith.constant 0 : index
    %c0_2 = arith.constant 0 : index
    %c0_3 = arith.constant 0 : index
    %7 = vector.load %arg3[%c0_1, %c0_2, %c0_3] : memref<3x32x32xbf16, #tpu.memory_space<vmem>>, vector<1x32x32xbf16>
    %8 = vector.shape_cast %7 : vector<1x32x32xbf16> to vector<32x32xbf16>
    %cst_4 = arith.constant dense<0.000000e+00> : vector<16x32xf32>
    %9 = tpu.matmul %6, %8, %cst_4 {dimension_numbers = #tpu.dot_dimension_numbers<[1], [0], [0], [1], [0, 0, 1, 1], [], []>} : vector<16x32xbf16>, vector<32x32xbf16>, vector<16x32xf32> -> vector<16x32xf32>
    %10 = arith.addf %1, %9 : vector<16x32xf32>
    %c1_i32 = arith.constant 1 : i32
    %11 = arith.addi %0, %c1_i32 : i32
    %c0_5 = arith.constant 0 : index
    %12 = arith.index_cast %11 : i32 to index
    %c0_6 = arith.constant 0 : index
    %13 = vector.load %arg2[%c0_5, %12, %c0_6] : memref<1x18x32xf32, #tpu.memory_space<vmem>>, vector<1x16x32xf32>
    %14 = vector.shape_cast %13 : vector<1x16x32xf32> to vector<16x32xf32>
    %15 = arith.truncf %14 : vector<16x32xf32> to vector<16x32xbf16>
    %c1 = arith.constant 1 : index
    %c0_7 = arith.constant 0 : index
    %c0_8 = arith.constant 0 : index
    %16 = vector.load %arg3[%c1, %c0_7, %c0_8] : memref<3x32x32xbf16, #tpu.memory_space<vmem>>, vector<1x32x32xbf16>
    %17 = vector.shape_cast %16 : vector<1x32x32xbf16> to vector<32x32xbf16>
    %cst_9 = arith.constant dense<0.000000e+00> : vector<16x32xf32>
    %18 = tpu.matmul %15, %17, %cst_9 {dimension_numbers = #tpu.dot_dimension_numbers<[1], [0], [0], [1], [0, 0, 1, 1], [], []>} : vector<16x32xbf16>, vector<32x32xbf16>, vector<16x32xf32> -> vector<16x32xf32>
    %19 = arith.addf %10, %18 : vector<16x32xf32>
    %c2_i32 = arith.constant 2 : i32
    %20 = arith.addi %0, %c2_i32 : i32
    %c0_10 = arith.constant 0 : index
    %21 = arith.index_cast %20 : i32 to index
    %c0_11 = arith.constant 0 : index
    %22 = vector.load %arg2[%c0_10, %21, %c0_11] : memref<1x18x32xf32, #tpu.memory_space<vmem>>, vector<1x16x32xf32>
    %23 = vector.shape_cast %22 : vector<1x16x32xf32> to vector<16x32xf32>
    %24 = arith.truncf %23 : vector<16x32xf32> to vector<16x32xbf16>
    %c2 = arith.constant 2 : index
    %c0_12 = arith.constant 0 : index
    %c0_13 = arith.constant 0 : index
    %25 = vector.load %arg3[%c2, %c0_12, %c0_13] : memref<3x32x32xbf16, #tpu.memory_space<vmem>>, vector<1x32x32xbf16>
    %26 = vector.shape_cast %25 : vector<1x32x32xbf16> to vector<32x32xbf16>
    %cst_14 = arith.constant dense<0.000000e+00> : vector<16x32xf32>
    %27 = tpu.matmul %24, %26, %cst_14 {dimension_numbers = #tpu.dot_dimension_numbers<[1], [0], [0], [1], [0, 0, 1, 1], [], []>} : vector<16x32xbf16>, vector<32x32xbf16>, vector<16x32xf32> -> vector<16x32xf32>
    %28 = arith.addf %19, %27 : vector<16x32xf32>
    %c0_15 = arith.constant 0 : index
    %c0_16 = arith.constant 0 : index
    %29 = vector.load %arg4[%c0_15, %c0_16] : memref<1x32xf32, #tpu.memory_space<vmem>>, vector<1x32xf32>
    %30 = vector.broadcast %29 : vector<1x32xf32> to vector<16x32xf32>
    %31 = arith.mulf %28, %30 : vector<16x32xf32>
    %c0_17 = arith.constant 0 : index
    %c0_18 = arith.constant 0 : index
    %32 = vector.load %arg5[%c0_17, %c0_18] : memref<1x32xf32, #tpu.memory_space<vmem>>, vector<1x32xf32>
    %33 = vector.broadcast %32 : vector<1x32xf32> to vector<16x32xf32>
    %34 = arith.addf %31, %33 : vector<16x32xf32>
    %c0_19 = arith.constant 0 : index
    %c0_20 = arith.constant 0 : index
    %c0_21 = arith.constant 0 : index
    %35 = vector.load %arg6[%c0_19, %c0_20, %c0_21] : memref<1x16x32xf32, #tpu.memory_space<vmem>>, vector<1x16x32xf32>
    %36 = vector.shape_cast %35 : vector<1x16x32xf32> to vector<16x32xf32>
    %37 = arith.addf %34, %36 : vector<16x32xf32>
    %c0_22 = arith.constant 0 : index
    %c0_23 = arith.constant 0 : index
    %c0_24 = arith.constant 0 : index
    %38 = vector.load %arg7[%c0_22, %c0_23, %c0_24] : memref<1x16x32xf32, #tpu.memory_space<vmem>>, vector<1x16x32xf32>
    %39 = vector.shape_cast %38 : vector<1x16x32xf32> to vector<16x32xf32>
    %40 = vector.shape_cast %37 : vector<16x32xf32> to vector<1x16x32xf32>
    tpu.vector_store %arg7[%c0_22, %c0_23, %c0_24], %40 {strides = array<i32>} : memref<1x16x32xf32, #tpu.memory_space<vmem>>, vector<1x16x32xf32>,
    return
  }
  func.func @transform_0(%arg0: i32, %arg1: i32) -> (i32, i32, i32) {
    %c0_i32 = arith.constant 0 : i32
    %c0_i32_0 = arith.constant 0 : i32
    %c0_i32_1 = arith.constant 0 : i32
    return %arg0, %c0_i32, %c0_i32_0 : i32, i32, i32
  }
  func.func @transform_1(%arg0: i32, %arg1: i32) -> (i32, i32, i32) {
    %c0_i32 = arith.constant 0 : i32
    %c0_i32_0 = arith.constant 0 : i32
    %c0_i32_1 = arith.constant 0 : i32
    %c0_i32_2 = arith.constant 0 : i32
    return %c0_i32, %c0_i32_0, %c0_i32_1 : i32, i32, i32
  }
  func.func @transform_2(%arg0: i32, %arg1: i32) -> (i32, i32) {
    %c0_i32 = arith.constant 0 : i32
    %c0_i32_0 = arith.constant 0 : i32
    %c0_i32_1 = arith.constant 0 : i32
    return %c0_i32, %c0_i32_0 : i32, i32
  }
  func.func @transform_3(%arg0: i32, %arg1: i32) -> (i32, i32) {
    %c0_i32 = arith.constant 0 : i32
    %c0_i32_0 = arith.constant 0 : i32
    %c0_i32_1 = arith.constant 0 : i32
    return %c0_i32, %c0_i32_0 : i32, i32
  }
  func.func @transform_4(%arg0: i32, %arg1: i32) -> (i32, i32, i32) {
    %c0_i32 = arith.constant 0 : i32
    %c0_i32_0 = arith.constant 0 : i32
    return %arg0, %arg1, %c0_i32 : i32, i32, i32
  }
  func.func @transform_5(%arg0: i32, %arg1: i32) -> (i32, i32, i32) {
    %c0_i32 = arith.constant 0 : i32
    %c0_i32_0 = arith.constant 0 : i32
    return %arg0, %arg1, %c0_i32 : i32, i32, i32
  }
}

module attributes {stable_mosaic.version = 11 : i64} {
  func.func @_conv_kernel(%arg0: i32, %arg1: i32, %arg2: memref<1x18x32xf32, #tpu.memory_space<vmem>>, %arg3: memref<1x32xf32, #tpu.memory_space<vmem>>, %arg4: memref<1x32xf32, #tpu.memory_space<vmem>>, %arg5: memref<3x32x64xbf16, #tpu.memory_space<vmem>>, %arg6: memref<1x64xf32, #tpu.memory_space<vmem>>, %arg7: memref<1x64xf32, #tpu.memory_space<vmem>>, %arg8: memref<1x16x64xf32, #tpu.memory_space<vmem>>) attributes {dimension_semantics = [#tpu.dimension_semantics<parallel>, #tpu.dimension_semantics<parallel>], iteration_bounds = array<i64: 2, 1>, scalar_prefetch = 0 : i64, scratch_operands = 0 : i64, tpu.core_type = #tpu.core_type<tc>, window_params = [{transform_indices = @transform_0, window_bounds = array<i64: 1, 18, 32>}, {pipeline_mode = #tpu.pipeline_mode<synchronous>, transform_indices = @transform_1, window_bounds = array<i64: 1, 32>}, {pipeline_mode = #tpu.pipeline_mode<synchronous>, transform_indices = @transform_2, window_bounds = array<i64: 1, 32>}, {pipeline_mode = #tpu.pipeline_mode<synchronous>, transform_indices = @transform_3, window_bounds = array<i64: 3, 32, 64>}, {pipeline_mode = #tpu.pipeline_mode<synchronous>, transform_indices = @transform_4, window_bounds = array<i64: 1, 64>}, {pipeline_mode = #tpu.pipeline_mode<synchronous>, transform_indices = @transform_5, window_bounds = array<i64: 1, 64>}, {transform_indices = @transform_6, window_bounds = array<i64: 1, 16, 64>}]} {
    %c16_i32 = arith.constant 16 : i32
    %0 = arith.muli %arg1, %c16_i32 : i32
    %cst = arith.constant 0.000000e+00 : f32
    %1 = vector.broadcast %cst : f32 to vector<16x64xf32>
    %c0_i32 = arith.constant 0 : i32
    %2 = arith.addi %0, %c0_i32 : i32
    %c0 = arith.constant 0 : index
    %3 = arith.index_cast %2 : i32 to index
    %c0_0 = arith.constant 0 : index
    %4 = vector.load %arg2[%c0, %3, %c0_0] : memref<1x18x32xf32, #tpu.memory_space<vmem>>, vector<1x16x32xf32>
    %5 = vector.shape_cast %4 : vector<1x16x32xf32> to vector<16x32xf32>
    %c0_1 = arith.constant 0 : index
    %c0_2 = arith.constant 0 : index
    %6 = vector.load %arg3[%c0_1, %c0_2] : memref<1x32xf32, #tpu.memory_space<vmem>>, vector<1x32xf32>
    %7 = vector.broadcast %6 : vector<1x32xf32> to vector<16x32xf32>
    %8 = arith.mulf %5, %7 : vector<16x32xf32>
    %c0_3 = arith.constant 0 : index
    %c0_4 = arith.constant 0 : index
    %9 = vector.load %arg4[%c0_3, %c0_4] : memref<1x32xf32, #tpu.memory_space<vmem>>, vector<1x32xf32>
    %10 = vector.broadcast %9 : vector<1x32xf32> to vector<16x32xf32>
    %11 = arith.addf %8, %10 : vector<16x32xf32>
    %cst_5 = arith.constant 0.000000e+00 : f32
    %12 = vector.broadcast %cst_5 : f32 to vector<16x32xf32>
    %13 = arith.maximumf %11, %12 : vector<16x32xf32>
    %14 = tpu.iota {dimensions = array<i32: 0>} : vector<16x32xi32>
    %15 = vector.broadcast %0 : i32 to vector<16x32xi32>
    %16 = arith.addi %14, %15 : vector<16x32xi32>
    %c1_i32 = arith.constant 1 : i32
    %17 = vector.broadcast %c1_i32 : i32 to vector<16x32xi32>
    %18 = arith.muli %16, %17 : vector<16x32xi32>
    %c0_i32_6 = arith.constant 0 : i32
    %19 = vector.broadcast %c0_i32_6 : i32 to vector<16x32xi32>
    %20 = arith.addi %18, %19 : vector<16x32xi32>
    %c1_i32_7 = arith.constant 1 : i32
    %21 = vector.broadcast %c1_i32_7 : i32 to vector<16x32xi32>
    %22 = arith.cmpi sge, %20, %21 : vector<16x32xi32>
    %c17_i32 = arith.constant 17 : i32
    %23 = vector.broadcast %c17_i32 : i32 to vector<16x32xi32>
    %24 = arith.cmpi slt, %20, %23 : vector<16x32xi32>
    %25 = arith.andi %22, %24 : vector<16x32xi1>
    %cst_8 = arith.constant 0.000000e+00 : f32
    %26 = vector.broadcast %cst_8 : f32 to vector<16x32xf32>
    %27 = arith.select %25, %13, %26 : vector<16x32xi1>, vector<16x32xf32>
    %28 = arith.truncf %27 : vector<16x32xf32> to vector<16x32xbf16>
    %c0_9 = arith.constant 0 : index
    %c0_10 = arith.constant 0 : index
    %c0_11 = arith.constant 0 : index
    %29 = vector.load %arg5[%c0_9, %c0_10, %c0_11] : memref<3x32x64xbf16, #tpu.memory_space<vmem>>, vector<1x32x64xbf16>
    %30 = vector.shape_cast %29 : vector<1x32x64xbf16> to vector<32x64xbf16>
    %cst_12 = arith.constant dense<0.000000e+00> : vector<16x64xf32>
    %31 = tpu.matmul %28, %30, %cst_12 {dimension_numbers = #tpu.dot_dimension_numbers<[1], [0], [0], [1], [0, 0, 1, 1], [], []>} : vector<16x32xbf16>, vector<32x64xbf16>, vector<16x64xf32> -> vector<16x64xf32>
    %32 = arith.addf %1, %31 : vector<16x64xf32>
    %c1_i32_13 = arith.constant 1 : i32
    %33 = arith.addi %0, %c1_i32_13 : i32
    %c0_14 = arith.constant 0 : index
    %34 = arith.index_cast %33 : i32 to index
    %c0_15 = arith.constant 0 : index
    %35 = vector.load %arg2[%c0_14, %34, %c0_15] : memref<1x18x32xf32, #tpu.memory_space<vmem>>, vector<1x16x32xf32>
    %36 = vector.shape_cast %35 : vector<1x16x32xf32> to vector<16x32xf32>
    %c0_16 = arith.constant 0 : index
    %c0_17 = arith.constant 0 : index
    %37 = vector.load %arg3[%c0_16, %c0_17] : memref<1x32xf32, #tpu.memory_space<vmem>>, vector<1x32xf32>
    %38 = vector.broadcast %37 : vector<1x32xf32> to vector<16x32xf32>
    %39 = arith.mulf %36, %38 : vector<16x32xf32>
    %c0_18 = arith.constant 0 : index
    %c0_19 = arith.constant 0 : index
    %40 = vector.load %arg4[%c0_18, %c0_19] : memref<1x32xf32, #tpu.memory_space<vmem>>, vector<1x32xf32>
    %41 = vector.broadcast %40 : vector<1x32xf32> to vector<16x32xf32>
    %42 = arith.addf %39, %41 : vector<16x32xf32>
    %cst_20 = arith.constant 0.000000e+00 : f32
    %43 = vector.broadcast %cst_20 : f32 to vector<16x32xf32>
    %44 = arith.maximumf %42, %43 : vector<16x32xf32>
    %45 = tpu.iota {dimensions = array<i32: 0>} : vector<16x32xi32>
    %46 = vector.broadcast %0 : i32 to vector<16x32xi32>
    %47 = arith.addi %45, %46 : vector<16x32xi32>
    %c1_i32_21 = arith.constant 1 : i32
    %48 = vector.broadcast %c1_i32_21 : i32 to vector<16x32xi32>
    %49 = arith.muli %47, %48 : vector<16x32xi32>
    %c1_i32_22 = arith.constant 1 : i32
    %50 = vector.broadcast %c1_i32_22 : i32 to vector<16x32xi32>
    %51 = arith.addi %49, %50 : vector<16x32xi32>
    %c1_i32_23 = arith.constant 1 : i32
    %52 = vector.broadcast %c1_i32_23 : i32 to vector<16x32xi32>
    %53 = arith.cmpi sge, %51, %52 : vector<16x32xi32>
    %c17_i32_24 = arith.constant 17 : i32
    %54 = vector.broadcast %c17_i32_24 : i32 to vector<16x32xi32>
    %55 = arith.cmpi slt, %51, %54 : vector<16x32xi32>
    %56 = arith.andi %53, %55 : vector<16x32xi1>
    %cst_25 = arith.constant 0.000000e+00 : f32
    %57 = vector.broadcast %cst_25 : f32 to vector<16x32xf32>
    %58 = arith.select %56, %44, %57 : vector<16x32xi1>, vector<16x32xf32>
    %59 = arith.truncf %58 : vector<16x32xf32> to vector<16x32xbf16>
    %c1 = arith.constant 1 : index
    %c0_26 = arith.constant 0 : index
    %c0_27 = arith.constant 0 : index
    %60 = vector.load %arg5[%c1, %c0_26, %c0_27] : memref<3x32x64xbf16, #tpu.memory_space<vmem>>, vector<1x32x64xbf16>
    %61 = vector.shape_cast %60 : vector<1x32x64xbf16> to vector<32x64xbf16>
    %cst_28 = arith.constant dense<0.000000e+00> : vector<16x64xf32>
    %62 = tpu.matmul %59, %61, %cst_28 {dimension_numbers = #tpu.dot_dimension_numbers<[1], [0], [0], [1], [0, 0, 1, 1], [], []>} : vector<16x32xbf16>, vector<32x64xbf16>, vector<16x64xf32> -> vector<16x64xf32>
    %63 = arith.addf %32, %62 : vector<16x64xf32>
    %c2_i32 = arith.constant 2 : i32
    %64 = arith.addi %0, %c2_i32 : i32
    %c0_29 = arith.constant 0 : index
    %65 = arith.index_cast %64 : i32 to index
    %c0_30 = arith.constant 0 : index
    %66 = vector.load %arg2[%c0_29, %65, %c0_30] : memref<1x18x32xf32, #tpu.memory_space<vmem>>, vector<1x16x32xf32>
    %67 = vector.shape_cast %66 : vector<1x16x32xf32> to vector<16x32xf32>
    %c0_31 = arith.constant 0 : index
    %c0_32 = arith.constant 0 : index
    %68 = vector.load %arg3[%c0_31, %c0_32] : memref<1x32xf32, #tpu.memory_space<vmem>>, vector<1x32xf32>
    %69 = vector.broadcast %68 : vector<1x32xf32> to vector<16x32xf32>
    %70 = arith.mulf %67, %69 : vector<16x32xf32>
    %c0_33 = arith.constant 0 : index
    %c0_34 = arith.constant 0 : index
    %71 = vector.load %arg4[%c0_33, %c0_34] : memref<1x32xf32, #tpu.memory_space<vmem>>, vector<1x32xf32>
    %72 = vector.broadcast %71 : vector<1x32xf32> to vector<16x32xf32>
    %73 = arith.addf %70, %72 : vector<16x32xf32>
    %cst_35 = arith.constant 0.000000e+00 : f32
    %74 = vector.broadcast %cst_35 : f32 to vector<16x32xf32>
    %75 = arith.maximumf %73, %74 : vector<16x32xf32>
    %76 = tpu.iota {dimensions = array<i32: 0>} : vector<16x32xi32>
    %77 = vector.broadcast %0 : i32 to vector<16x32xi32>
    %78 = arith.addi %76, %77 : vector<16x32xi32>
    %c1_i32_36 = arith.constant 1 : i32
    %79 = vector.broadcast %c1_i32_36 : i32 to vector<16x32xi32>
    %80 = arith.muli %78, %79 : vector<16x32xi32>
    %c2_i32_37 = arith.constant 2 : i32
    %81 = vector.broadcast %c2_i32_37 : i32 to vector<16x32xi32>
    %82 = arith.addi %80, %81 : vector<16x32xi32>
    %c1_i32_38 = arith.constant 1 : i32
    %83 = vector.broadcast %c1_i32_38 : i32 to vector<16x32xi32>
    %84 = arith.cmpi sge, %82, %83 : vector<16x32xi32>
    %c17_i32_39 = arith.constant 17 : i32
    %85 = vector.broadcast %c17_i32_39 : i32 to vector<16x32xi32>
    %86 = arith.cmpi slt, %82, %85 : vector<16x32xi32>
    %87 = arith.andi %84, %86 : vector<16x32xi1>
    %cst_40 = arith.constant 0.000000e+00 : f32
    %88 = vector.broadcast %cst_40 : f32 to vector<16x32xf32>
    %89 = arith.select %87, %75, %88 : vector<16x32xi1>, vector<16x32xf32>
    %90 = arith.truncf %89 : vector<16x32xf32> to vector<16x32xbf16>
    %c2 = arith.constant 2 : index
    %c0_41 = arith.constant 0 : index
    %c0_42 = arith.constant 0 : index
    %91 = vector.load %arg5[%c2, %c0_41, %c0_42] : memref<3x32x64xbf16, #tpu.memory_space<vmem>>, vector<1x32x64xbf16>
    %92 = vector.shape_cast %91 : vector<1x32x64xbf16> to vector<32x64xbf16>
    %cst_43 = arith.constant dense<0.000000e+00> : vector<16x64xf32>
    %93 = tpu.matmul %90, %92, %cst_43 {dimension_numbers = #tpu.dot_dimension_numbers<[1], [0], [0], [1], [0, 0, 1, 1], [], []>} : vector<16x32xbf16>, vector<32x64xbf16>, vector<16x64xf32> -> vector<16x64xf32>
    %94 = arith.addf %63, %93 : vector<16x64xf32>
    %c0_44 = arith.constant 0 : index
    %c0_45 = arith.constant 0 : index
    %95 = vector.load %arg6[%c0_44, %c0_45] : memref<1x64xf32, #tpu.memory_space<vmem>>, vector<1x64xf32>
    %96 = vector.broadcast %95 : vector<1x64xf32> to vector<16x64xf32>
    %97 = arith.mulf %94, %96 : vector<16x64xf32>
    %c0_46 = arith.constant 0 : index
    %c0_47 = arith.constant 0 : index
    %98 = vector.load %arg7[%c0_46, %c0_47] : memref<1x64xf32, #tpu.memory_space<vmem>>, vector<1x64xf32>
    %99 = vector.broadcast %98 : vector<1x64xf32> to vector<16x64xf32>
    %100 = arith.addf %97, %99 : vector<16x64xf32>
    %cst_48 = arith.constant 0.000000e+00 : f32
    %101 = vector.broadcast %cst_48 : f32 to vector<16x64xf32>
    %102 = arith.maximumf %100, %101 : vector<16x64xf32>
    %c0_49 = arith.constant 0 : index
    %c0_50 = arith.constant 0 : index
    %c0_51 = arith.constant 0 : index
    %103 = vector.load %arg8[%c0_49, %c0_50, %c0_51] : memref<1x16x64xf32, #tpu.memory_space<vmem>>, vector<1x16x64xf32>
    %104 = vector.shape_cast %103 : vector<1x16x64xf32> to vector<16x64xf32>
    %105 = vector.shape_cast %102 : vector<16x64xf32> to vector<1x16x64xf32>
    tpu.vector_store %arg8[%c0_49, %c0_50, %c0_51], %105 {strides = array<i32>} : memref<1x16x64xf32, #tpu.memory_space<vmem>>, vector<1x16x64xf32>,
    return
  }
  func.func @transform_0(%arg0: i32, %arg1: i32) -> (i32, i32, i32) {
    %c0_i32 = arith.constant 0 : i32
    %c0_i32_0 = arith.constant 0 : i32
    %c0_i32_1 = arith.constant 0 : i32
    return %arg0, %c0_i32, %c0_i32_0 : i32, i32, i32
  }
  func.func @transform_1(%arg0: i32, %arg1: i32) -> (i32, i32) {
    %c0_i32 = arith.constant 0 : i32
    %c0_i32_0 = arith.constant 0 : i32
    %c0_i32_1 = arith.constant 0 : i32
    return %c0_i32, %c0_i32_0 : i32, i32
  }
  func.func @transform_2(%arg0: i32, %arg1: i32) -> (i32, i32) {
    %c0_i32 = arith.constant 0 : i32
    %c0_i32_0 = arith.constant 0 : i32
    %c0_i32_1 = arith.constant 0 : i32
    return %c0_i32, %c0_i32_0 : i32, i32
  }
  func.func @transform_3(%arg0: i32, %arg1: i32) -> (i32, i32, i32) {
    %c0_i32 = arith.constant 0 : i32
    %c0_i32_0 = arith.constant 0 : i32
    %c0_i32_1 = arith.constant 0 : i32
    %c0_i32_2 = arith.constant 0 : i32
    return %c0_i32, %c0_i32_0, %c0_i32_1 : i32, i32, i32
  }
  func.func @transform_4(%arg0: i32, %arg1: i32) -> (i32, i32) {
    %c0_i32 = arith.constant 0 : i32
    %c0_i32_0 = arith.constant 0 : i32
    %c0_i32_1 = arith.constant 0 : i32
    return %c0_i32, %c0_i32_0 : i32, i32
  }
  func.func @transform_5(%arg0: i32, %arg1: i32) -> (i32, i32) {
    %c0_i32 = arith.constant 0 : i32
    %c0_i32_0 = arith.constant 0 : i32
    %c0_i32_1 = arith.constant 0 : i32
    return %c0_i32, %c0_i32_0 : i32, i32
  }
  func.func @transform_6(%arg0: i32, %arg1: i32) -> (i32, i32, i32) {
    %c0_i32 = arith.constant 0 : i32
    %c0_i32_0 = arith.constant 0 : i32
    return %arg0, %arg1, %c0_i32 : i32, i32, i32
  }
}

module attributes {stable_mosaic.version = 11 : i64} {
  func.func @_conv_kernel(%arg0: i32, %arg1: i32, %arg2: memref<1x18x64xf32, #tpu.memory_space<vmem>>, %arg3: memref<3x64x64xbf16, #tpu.memory_space<vmem>>, %arg4: memref<1x64xf32, #tpu.memory_space<vmem>>, %arg5: memref<1x64xf32, #tpu.memory_space<vmem>>, %arg6: memref<1x16x64xf32, #tpu.memory_space<vmem>>, %arg7: memref<1x16x64xf32, #tpu.memory_space<vmem>>) attributes {dimension_semantics = [#tpu.dimension_semantics<parallel>, #tpu.dimension_semantics<parallel>], iteration_bounds = array<i64: 2, 1>, scalar_prefetch = 0 : i64, scratch_operands = 0 : i64, tpu.core_type = #tpu.core_type<tc>, window_params = [{transform_indices = @transform_0, window_bounds = array<i64: 1, 18, 64>}, {pipeline_mode = #tpu.pipeline_mode<synchronous>, transform_indices = @transform_1, window_bounds = array<i64: 3, 64, 64>}, {pipeline_mode = #tpu.pipeline_mode<synchronous>, transform_indices = @transform_2, window_bounds = array<i64: 1, 64>}, {pipeline_mode = #tpu.pipeline_mode<synchronous>, transform_indices = @transform_3, window_bounds = array<i64: 1, 64>}, {transform_indices = @transform_4, window_bounds = array<i64: 1, 16, 64>}, {transform_indices = @transform_5, window_bounds = array<i64: 1, 16, 64>}]} {
    %c16_i32 = arith.constant 16 : i32
    %0 = arith.muli %arg1, %c16_i32 : i32
    %cst = arith.constant 0.000000e+00 : f32
    %1 = vector.broadcast %cst : f32 to vector<16x64xf32>
    %c0_i32 = arith.constant 0 : i32
    %2 = arith.addi %0, %c0_i32 : i32
    %c0 = arith.constant 0 : index
    %3 = arith.index_cast %2 : i32 to index
    %c0_0 = arith.constant 0 : index
    %4 = vector.load %arg2[%c0, %3, %c0_0] : memref<1x18x64xf32, #tpu.memory_space<vmem>>, vector<1x16x64xf32>
    %5 = vector.shape_cast %4 : vector<1x16x64xf32> to vector<16x64xf32>
    %6 = arith.truncf %5 : vector<16x64xf32> to vector<16x64xbf16>
    %c0_1 = arith.constant 0 : index
    %c0_2 = arith.constant 0 : index
    %c0_3 = arith.constant 0 : index
    %7 = vector.load %arg3[%c0_1, %c0_2, %c0_3] : memref<3x64x64xbf16, #tpu.memory_space<vmem>>, vector<1x64x64xbf16>
    %8 = vector.shape_cast %7 : vector<1x64x64xbf16> to vector<64x64xbf16>
    %cst_4 = arith.constant dense<0.000000e+00> : vector<16x64xf32>
    %9 = tpu.matmul %6, %8, %cst_4 {dimension_numbers = #tpu.dot_dimension_numbers<[1], [0], [0], [1], [0, 0, 1, 1], [], []>} : vector<16x64xbf16>, vector<64x64xbf16>, vector<16x64xf32> -> vector<16x64xf32>
    %10 = arith.addf %1, %9 : vector<16x64xf32>
    %c1_i32 = arith.constant 1 : i32
    %11 = arith.addi %0, %c1_i32 : i32
    %c0_5 = arith.constant 0 : index
    %12 = arith.index_cast %11 : i32 to index
    %c0_6 = arith.constant 0 : index
    %13 = vector.load %arg2[%c0_5, %12, %c0_6] : memref<1x18x64xf32, #tpu.memory_space<vmem>>, vector<1x16x64xf32>
    %14 = vector.shape_cast %13 : vector<1x16x64xf32> to vector<16x64xf32>
    %15 = arith.truncf %14 : vector<16x64xf32> to vector<16x64xbf16>
    %c1 = arith.constant 1 : index
    %c0_7 = arith.constant 0 : index
    %c0_8 = arith.constant 0 : index
    %16 = vector.load %arg3[%c1, %c0_7, %c0_8] : memref<3x64x64xbf16, #tpu.memory_space<vmem>>, vector<1x64x64xbf16>
    %17 = vector.shape_cast %16 : vector<1x64x64xbf16> to vector<64x64xbf16>
    %cst_9 = arith.constant dense<0.000000e+00> : vector<16x64xf32>
    %18 = tpu.matmul %15, %17, %cst_9 {dimension_numbers = #tpu.dot_dimension_numbers<[1], [0], [0], [1], [0, 0, 1, 1], [], []>} : vector<16x64xbf16>, vector<64x64xbf16>, vector<16x64xf32> -> vector<16x64xf32>
    %19 = arith.addf %10, %18 : vector<16x64xf32>
    %c2_i32 = arith.constant 2 : i32
    %20 = arith.addi %0, %c2_i32 : i32
    %c0_10 = arith.constant 0 : index
    %21 = arith.index_cast %20 : i32 to index
    %c0_11 = arith.constant 0 : index
    %22 = vector.load %arg2[%c0_10, %21, %c0_11] : memref<1x18x64xf32, #tpu.memory_space<vmem>>, vector<1x16x64xf32>
    %23 = vector.shape_cast %22 : vector<1x16x64xf32> to vector<16x64xf32>
    %24 = arith.truncf %23 : vector<16x64xf32> to vector<16x64xbf16>
    %c2 = arith.constant 2 : index
    %c0_12 = arith.constant 0 : index
    %c0_13 = arith.constant 0 : index
    %25 = vector.load %arg3[%c2, %c0_12, %c0_13] : memref<3x64x64xbf16, #tpu.memory_space<vmem>>, vector<1x64x64xbf16>
    %26 = vector.shape_cast %25 : vector<1x64x64xbf16> to vector<64x64xbf16>
    %cst_14 = arith.constant dense<0.000000e+00> : vector<16x64xf32>
    %27 = tpu.matmul %24, %26, %cst_14 {dimension_numbers = #tpu.dot_dimension_numbers<[1], [0], [0], [1], [0, 0, 1, 1], [], []>} : vector<16x64xbf16>, vector<64x64xbf16>, vector<16x64xf32> -> vector<16x64xf32>
    %28 = arith.addf %19, %27 : vector<16x64xf32>
    %c0_15 = arith.constant 0 : index
    %c0_16 = arith.constant 0 : index
    %29 = vector.load %arg4[%c0_15, %c0_16] : memref<1x64xf32, #tpu.memory_space<vmem>>, vector<1x64xf32>
    %30 = vector.broadcast %29 : vector<1x64xf32> to vector<16x64xf32>
    %31 = arith.mulf %28, %30 : vector<16x64xf32>
    %c0_17 = arith.constant 0 : index
    %c0_18 = arith.constant 0 : index
    %32 = vector.load %arg5[%c0_17, %c0_18] : memref<1x64xf32, #tpu.memory_space<vmem>>, vector<1x64xf32>
    %33 = vector.broadcast %32 : vector<1x64xf32> to vector<16x64xf32>
    %34 = arith.addf %31, %33 : vector<16x64xf32>
    %c0_19 = arith.constant 0 : index
    %c0_20 = arith.constant 0 : index
    %c0_21 = arith.constant 0 : index
    %35 = vector.load %arg6[%c0_19, %c0_20, %c0_21] : memref<1x16x64xf32, #tpu.memory_space<vmem>>, vector<1x16x64xf32>
    %36 = vector.shape_cast %35 : vector<1x16x64xf32> to vector<16x64xf32>
    %37 = arith.addf %34, %36 : vector<16x64xf32>
    %c0_22 = arith.constant 0 : index
    %c0_23 = arith.constant 0 : index
    %c0_24 = arith.constant 0 : index
    %38 = vector.load %arg7[%c0_22, %c0_23, %c0_24] : memref<1x16x64xf32, #tpu.memory_space<vmem>>, vector<1x16x64xf32>
    %39 = vector.shape_cast %38 : vector<1x16x64xf32> to vector<16x64xf32>
    %40 = vector.shape_cast %37 : vector<16x64xf32> to vector<1x16x64xf32>
    tpu.vector_store %arg7[%c0_22, %c0_23, %c0_24], %40 {strides = array<i32>} : memref<1x16x64xf32, #tpu.memory_space<vmem>>, vector<1x16x64xf32>,
    return
  }
  func.func @transform_0(%arg0: i32, %arg1: i32) -> (i32, i32, i32) {
    %c0_i32 = arith.constant 0 : i32
    %c0_i32_0 = arith.constant 0 : i32
    %c0_i32_1 = arith.constant 0 : i32
    return %arg0, %c0_i32, %c0_i32_0 : i32, i32, i32
  }
  func.func @transform_1(%arg0: i32, %arg1: i32) -> (i32, i32, i32) {
    %c0_i32 = arith.constant 0 : i32
    %c0_i32_0 = arith.constant 0 : i32
    %c0_i32_1 = arith.constant 0 : i32
    %c0_i32_2 = arith.constant 0 : i32
    return %c0_i32, %c0_i32_0, %c0_i32_1 : i32, i32, i32
  }
  func.func @transform_2(%arg0: i32, %arg1: i32) -> (i32, i32) {
    %c0_i32 = arith.constant 0 : i32
    %c0_i32_0 = arith.constant 0 : i32
    %c0_i32_1 = arith.constant 0 : i32
    return %c0_i32, %c0_i32_0 : i32, i32
  }
  func.func @transform_3(%arg0: i32, %arg1: i32) -> (i32, i32) {
    %c0_i32 = arith.constant 0 : i32
    %c0_i32_0 = arith.constant 0 : i32
    %c0_i32_1 = arith.constant 0 : i32
    return %c0_i32, %c0_i32_0 : i32, i32
  }
  func.func @transform_4(%arg0: i32, %arg1: i32) -> (i32, i32, i32) {
    %c0_i32 = arith.constant 0 : i32
    %c0_i32_0 = arith.constant 0 : i32
    return %arg0, %arg1, %c0_i32 : i32, i32, i32
  }
  func.func @transform_5(%arg0: i32, %arg1: i32) -> (i32, i32, i32) {
    %c0_i32 = arith.constant 0 : i32
    %c0_i32_0 = arith.constant 0 : i32
    return %arg0, %arg1, %c0_i32 : i32, i32, i32
  }
}

module attributes {stable_mosaic.version = 11 : i64} {
  func.func @_conv_kernel(%arg0: i32, %arg1: i32, %arg2: memref<1x8x256xf32, #tpu.memory_space<vmem>>, %arg3: memref<1x64xf32, #tpu.memory_space<vmem>>, %arg4: memref<1x64xf32, #tpu.memory_space<vmem>>, %arg5: memref<3x64x64xbf16, #tpu.memory_space<vmem>>, %arg6: memref<1x64xf32, #tpu.memory_space<vmem>>, %arg7: memref<1x64xf32, #tpu.memory_space<vmem>>, %arg8: memref<1x8x64xf32, #tpu.memory_space<vmem>>) attributes {dimension_semantics = [#tpu.dimension_semantics<parallel>, #tpu.dimension_semantics<parallel>], iteration_bounds = array<i64: 2, 1>, scalar_prefetch = 0 : i64, scratch_operands = 0 : i64, tpu.core_type = #tpu.core_type<tc>, window_params = [{transform_indices = @transform_0, window_bounds = array<i64: 1, 8, 256>}, {pipeline_mode = #tpu.pipeline_mode<synchronous>, transform_indices = @transform_1, window_bounds = array<i64: 1, 64>}, {pipeline_mode = #tpu.pipeline_mode<synchronous>, transform_indices = @transform_2, window_bounds = array<i64: 1, 64>}, {pipeline_mode = #tpu.pipeline_mode<synchronous>, transform_indices = @transform_3, window_bounds = array<i64: 3, 64, 64>}, {pipeline_mode = #tpu.pipeline_mode<synchronous>, transform_indices = @transform_4, window_bounds = array<i64: 1, 64>}, {pipeline_mode = #tpu.pipeline_mode<synchronous>, transform_indices = @transform_5, window_bounds = array<i64: 1, 64>}, {transform_indices = @transform_6, window_bounds = array<i64: 1, 8, 64>}]} {
    %c8_i32 = arith.constant 8 : i32
    %0 = arith.muli %arg1, %c8_i32 : i32
    %cst = arith.constant 0.000000e+00 : f32
    %1 = vector.broadcast %cst : f32 to vector<8x64xf32>
    %c0_i32 = arith.constant 0 : i32
    %2 = arith.addi %0, %c0_i32 : i32
    %c0 = arith.constant 0 : index
    %3 = arith.index_cast %2 : i32 to index
    %c0_0 = arith.constant 0 : index
    %4 = vector.load %arg2[%c0, %3, %c0_0] : memref<1x8x256xf32, #tpu.memory_space<vmem>>, vector<1x8x64xf32>
    %5 = vector.shape_cast %4 : vector<1x8x64xf32> to vector<8x64xf32>
    %c0_1 = arith.constant 0 : index
    %c0_2 = arith.constant 0 : index
    %6 = vector.load %arg3[%c0_1, %c0_2] : memref<1x64xf32, #tpu.memory_space<vmem>>, vector<1x64xf32>
    %7 = vector.broadcast %6 : vector<1x64xf32> to vector<8x64xf32>
    %8 = arith.mulf %5, %7 : vector<8x64xf32>
    %c0_3 = arith.constant 0 : index
    %c0_4 = arith.constant 0 : index
    %9 = vector.load %arg4[%c0_3, %c0_4] : memref<1x64xf32, #tpu.memory_space<vmem>>, vector<1x64xf32>
    %10 = vector.broadcast %9 : vector<1x64xf32> to vector<8x64xf32>
    %11 = arith.addf %8, %10 : vector<8x64xf32>
    %cst_5 = arith.constant 0.000000e+00 : f32
    %12 = vector.broadcast %cst_5 : f32 to vector<8x64xf32>
    %13 = arith.maximumf %11, %12 : vector<8x64xf32>
    %14 = tpu.iota {dimensions = array<i32: 0>} : vector<8x64xi32>
    %15 = vector.broadcast %0 : i32 to vector<8x64xi32>
    %16 = arith.addi %14, %15 : vector<8x64xi32>
    %c4_i32 = arith.constant 4 : i32
    %17 = vector.broadcast %c4_i32 : i32 to vector<8x64xi32>
    %18 = arith.muli %16, %17 : vector<8x64xi32>
    %c0_i32_6 = arith.constant 0 : i32
    %19 = vector.broadcast %c0_i32_6 : i32 to vector<8x64xi32>
    %20 = arith.addi %18, %19 : vector<8x64xi32>
    %c0_i32_7 = arith.constant 0 : i32
    %21 = vector.broadcast %c0_i32_7 : i32 to vector<8x64xi32>
    %22 = arith.cmpi sge, %20, %21 : vector<8x64xi32>
    %c16_i32 = arith.constant 16 : i32
    %23 = vector.broadcast %c16_i32 : i32 to vector<8x64xi32>
    %24 = arith.cmpi slt, %20, %23 : vector<8x64xi32>
    %25 = arith.andi %22, %24 : vector<8x64xi1>
    %cst_8 = arith.constant 0.000000e+00 : f32
    %26 = vector.broadcast %cst_8 : f32 to vector<8x64xf32>
    %27 = arith.select %25, %13, %26 : vector<8x64xi1>, vector<8x64xf32>
    %28 = arith.truncf %27 : vector<8x64xf32> to vector<8x64xbf16>
    %c0_9 = arith.constant 0 : index
    %c0_10 = arith.constant 0 : index
    %c0_11 = arith.constant 0 : index
    %29 = vector.load %arg5[%c0_9, %c0_10, %c0_11] : memref<3x64x64xbf16, #tpu.memory_space<vmem>>, vector<1x64x64xbf16>
    %30 = vector.shape_cast %29 : vector<1x64x64xbf16> to vector<64x64xbf16>
    %cst_12 = arith.constant dense<0.000000e+00> : vector<8x64xf32>
    %31 = tpu.matmul %28, %30, %cst_12 {dimension_numbers = #tpu.dot_dimension_numbers<[1], [0], [0], [1], [0, 0, 1, 1], [], []>} : vector<8x64xbf16>, vector<64x64xbf16>, vector<8x64xf32> -> vector<8x64xf32>
    %32 = arith.addf %1, %31 : vector<8x64xf32>
    %c0_i32_13 = arith.constant 0 : i32
    %33 = arith.addi %0, %c0_i32_13 : i32
    %c0_14 = arith.constant 0 : index
    %34 = arith.index_cast %33 : i32 to index
    %c64 = arith.constant 64 : index
    %35 = vector.load %arg2[%c0_14, %34, %c64] : memref<1x8x256xf32, #tpu.memory_space<vmem>>, vector<1x8x64xf32>
    %36 = vector.shape_cast %35 : vector<1x8x64xf32> to vector<8x64xf32>
    %c0_15 = arith.constant 0 : index
    %c0_16 = arith.constant 0 : index
    %37 = vector.load %arg3[%c0_15, %c0_16] : memref<1x64xf32, #tpu.memory_space<vmem>>, vector<1x64xf32>
    %38 = vector.broadcast %37 : vector<1x64xf32> to vector<8x64xf32>
    %39 = arith.mulf %36, %38 : vector<8x64xf32>
    %c0_17 = arith.constant 0 : index
    %c0_18 = arith.constant 0 : index
    %40 = vector.load %arg4[%c0_17, %c0_18] : memref<1x64xf32, #tpu.memory_space<vmem>>, vector<1x64xf32>
    %41 = vector.broadcast %40 : vector<1x64xf32> to vector<8x64xf32>
    %42 = arith.addf %39, %41 : vector<8x64xf32>
    %cst_19 = arith.constant 0.000000e+00 : f32
    %43 = vector.broadcast %cst_19 : f32 to vector<8x64xf32>
    %44 = arith.maximumf %42, %43 : vector<8x64xf32>
    %45 = tpu.iota {dimensions = array<i32: 0>} : vector<8x64xi32>
    %46 = vector.broadcast %0 : i32 to vector<8x64xi32>
    %47 = arith.addi %45, %46 : vector<8x64xi32>
    %c4_i32_20 = arith.constant 4 : i32
    %48 = vector.broadcast %c4_i32_20 : i32 to vector<8x64xi32>
    %49 = arith.muli %47, %48 : vector<8x64xi32>
    %c1_i32 = arith.constant 1 : i32
    %50 = vector.broadcast %c1_i32 : i32 to vector<8x64xi32>
    %51 = arith.addi %49, %50 : vector<8x64xi32>
    %c0_i32_21 = arith.constant 0 : i32
    %52 = vector.broadcast %c0_i32_21 : i32 to vector<8x64xi32>
    %53 = arith.cmpi sge, %51, %52 : vector<8x64xi32>
    %c16_i32_22 = arith.constant 16 : i32
    %54 = vector.broadcast %c16_i32_22 : i32 to vector<8x64xi32>
    %55 = arith.cmpi slt, %51, %54 : vector<8x64xi32>
    %56 = arith.andi %53, %55 : vector<8x64xi1>
    %cst_23 = arith.constant 0.000000e+00 : f32
    %57 = vector.broadcast %cst_23 : f32 to vector<8x64xf32>
    %58 = arith.select %56, %44, %57 : vector<8x64xi1>, vector<8x64xf32>
    %59 = arith.truncf %58 : vector<8x64xf32> to vector<8x64xbf16>
    %c1 = arith.constant 1 : index
    %c0_24 = arith.constant 0 : index
    %c0_25 = arith.constant 0 : index
    %60 = vector.load %arg5[%c1, %c0_24, %c0_25] : memref<3x64x64xbf16, #tpu.memory_space<vmem>>, vector<1x64x64xbf16>
    %61 = vector.shape_cast %60 : vector<1x64x64xbf16> to vector<64x64xbf16>
    %cst_26 = arith.constant dense<0.000000e+00> : vector<8x64xf32>
    %62 = tpu.matmul %59, %61, %cst_26 {dimension_numbers = #tpu.dot_dimension_numbers<[1], [0], [0], [1], [0, 0, 1, 1], [], []>} : vector<8x64xbf16>, vector<64x64xbf16>, vector<8x64xf32> -> vector<8x64xf32>
    %63 = arith.addf %32, %62 : vector<8x64xf32>
    %c0_i32_27 = arith.constant 0 : i32
    %64 = arith.addi %0, %c0_i32_27 : i32
    %c0_28 = arith.constant 0 : index
    %65 = arith.index_cast %64 : i32 to index
    %c128 = arith.constant 128 : index
    %66 = vector.load %arg2[%c0_28, %65, %c128] : memref<1x8x256xf32, #tpu.memory_space<vmem>>, vector<1x8x64xf32>
    %67 = vector.shape_cast %66 : vector<1x8x64xf32> to vector<8x64xf32>
    %c0_29 = arith.constant 0 : index
    %c0_30 = arith.constant 0 : index
    %68 = vector.load %arg3[%c0_29, %c0_30] : memref<1x64xf32, #tpu.memory_space<vmem>>, vector<1x64xf32>
    %69 = vector.broadcast %68 : vector<1x64xf32> to vector<8x64xf32>
    %70 = arith.mulf %67, %69 : vector<8x64xf32>
    %c0_31 = arith.constant 0 : index
    %c0_32 = arith.constant 0 : index
    %71 = vector.load %arg4[%c0_31, %c0_32] : memref<1x64xf32, #tpu.memory_space<vmem>>, vector<1x64xf32>
    %72 = vector.broadcast %71 : vector<1x64xf32> to vector<8x64xf32>
    %73 = arith.addf %70, %72 : vector<8x64xf32>
    %cst_33 = arith.constant 0.000000e+00 : f32
    %74 = vector.broadcast %cst_33 : f32 to vector<8x64xf32>
    %75 = arith.maximumf %73, %74 : vector<8x64xf32>
    %76 = tpu.iota {dimensions = array<i32: 0>} : vector<8x64xi32>
    %77 = vector.broadcast %0 : i32 to vector<8x64xi32>
    %78 = arith.addi %76, %77 : vector<8x64xi32>
    %c4_i32_34 = arith.constant 4 : i32
    %79 = vector.broadcast %c4_i32_34 : i32 to vector<8x64xi32>
    %80 = arith.muli %78, %79 : vector<8x64xi32>
    %c2_i32 = arith.constant 2 : i32
    %81 = vector.broadcast %c2_i32 : i32 to vector<8x64xi32>
    %82 = arith.addi %80, %81 : vector<8x64xi32>
    %c0_i32_35 = arith.constant 0 : i32
    %83 = vector.broadcast %c0_i32_35 : i32 to vector<8x64xi32>
    %84 = arith.cmpi sge, %82, %83 : vector<8x64xi32>
    %c16_i32_36 = arith.constant 16 : i32
    %85 = vector.broadcast %c16_i32_36 : i32 to vector<8x64xi32>
    %86 = arith.cmpi slt, %82, %85 : vector<8x64xi32>
    %87 = arith.andi %84, %86 : vector<8x64xi1>
    %cst_37 = arith.constant 0.000000e+00 : f32
    %88 = vector.broadcast %cst_37 : f32 to vector<8x64xf32>
    %89 = arith.select %87, %75, %88 : vector<8x64xi1>, vector<8x64xf32>
    %90 = arith.truncf %89 : vector<8x64xf32> to vector<8x64xbf16>
    %c2 = arith.constant 2 : index
    %c0_38 = arith.constant 0 : index
    %c0_39 = arith.constant 0 : index
    %91 = vector.load %arg5[%c2, %c0_38, %c0_39] : memref<3x64x64xbf16, #tpu.memory_space<vmem>>, vector<1x64x64xbf16>
    %92 = vector.shape_cast %91 : vector<1x64x64xbf16> to vector<64x64xbf16>
    %cst_40 = arith.constant dense<0.000000e+00> : vector<8x64xf32>
    %93 = tpu.matmul %90, %92, %cst_40 {dimension_numbers = #tpu.dot_dimension_numbers<[1], [0], [0], [1], [0, 0, 1, 1], [], []>} : vector<8x64xbf16>, vector<64x64xbf16>, vector<8x64xf32> -> vector<8x64xf32>
    %94 = arith.addf %63, %93 : vector<8x64xf32>
    %c0_41 = arith.constant 0 : index
    %c0_42 = arith.constant 0 : index
    %95 = vector.load %arg6[%c0_41, %c0_42] : memref<1x64xf32, #tpu.memory_space<vmem>>, vector<1x64xf32>
    %96 = vector.broadcast %95 : vector<1x64xf32> to vector<8x64xf32>
    %97 = arith.mulf %94, %96 : vector<8x64xf32>
    %c0_43 = arith.constant 0 : index
    %c0_44 = arith.constant 0 : index
    %98 = vector.load %arg7[%c0_43, %c0_44] : memref<1x64xf32, #tpu.memory_space<vmem>>, vector<1x64xf32>
    %99 = vector.broadcast %98 : vector<1x64xf32> to vector<8x64xf32>
    %100 = arith.addf %97, %99 : vector<8x64xf32>
    %cst_45 = arith.constant 0.000000e+00 : f32
    %101 = vector.broadcast %cst_45 : f32 to vector<8x64xf32>
    %102 = arith.maximumf %100, %101 : vector<8x64xf32>
    %c0_46 = arith.constant 0 : index
    %c0_47 = arith.constant 0 : index
    %c0_48 = arith.constant 0 : index
    %103 = vector.load %arg8[%c0_46, %c0_47, %c0_48] : memref<1x8x64xf32, #tpu.memory_space<vmem>>, vector<1x8x64xf32>
    %104 = vector.shape_cast %103 : vector<1x8x64xf32> to vector<8x64xf32>
    %105 = vector.shape_cast %102 : vector<8x64xf32> to vector<1x8x64xf32>
    tpu.vector_store %arg8[%c0_46, %c0_47, %c0_48], %105 {strides = array<i32>} : memref<1x8x64xf32, #tpu.memory_space<vmem>>, vector<1x8x64xf32>,
    return
  }
  func.func @transform_0(%arg0: i32, %arg1: i32) -> (i32, i32, i32) {
    %c0_i32 = arith.constant 0 : i32
    %c0_i32_0 = arith.constant 0 : i32
    %c0_i32_1 = arith.constant 0 : i32
    return %arg0, %c0_i32, %c0_i32_0 : i32, i32, i32
  }
  func.func @transform_1(%arg0: i32, %arg1: i32) -> (i32, i32) {
    %c0_i32 = arith.constant 0 : i32
    %c0_i32_0 = arith.constant 0 : i32
    %c0_i32_1 = arith.constant 0 : i32
    return %c0_i32, %c0_i32_0 : i32, i32
  }
  func.func @transform_2(%arg0: i32, %arg1: i32) -> (i32, i32) {
    %c0_i32 = arith.constant 0 : i32
    %c0_i32_0 = arith.constant 0 : i32
    %c0_i32_1 = arith.constant 0 : i32
    return %c0_i32, %c0_i32_0 : i32, i32
  }
  func.func @transform_3(%arg0: i32, %arg1: i32) -> (i32, i32, i32) {
    %c0_i32 = arith.constant 0 : i32
    %c0_i32_0 = arith.constant 0 : i32
    %c0_i32_1 = arith.constant 0 : i32
    %c0_i32_2 = arith.constant 0 : i32
    return %c0_i32, %c0_i32_0, %c0_i32_1 : i32, i32, i32
  }
  func.func @transform_4(%arg0: i32, %arg1: i32) -> (i32, i32) {
    %c0_i32 = arith.constant 0 : i32
    %c0_i32_0 = arith.constant 0 : i32
    %c0_i32_1 = arith.constant 0 : i32
    return %c0_i32, %c0_i32_0 : i32, i32
  }
  func.func @transform_5(%arg0: i32, %arg1: i32) -> (i32, i32) {
    %c0_i32 = arith.constant 0 : i32
    %c0_i32_0 = arith.constant 0 : i32
    %c0_i32_1 = arith.constant 0 : i32
    return %c0_i32, %c0_i32_0 : i32, i32
  }
  func.func @transform_6(%arg0: i32, %arg1: i32) -> (i32, i32, i32) {
    %c0_i32 = arith.constant 0 : i32
    %c0_i32_0 = arith.constant 0 : i32
    return %arg0, %arg1, %c0_i32 : i32, i32, i32
  }
}

module attributes {stable_mosaic.version = 11 : i64} {
  func.func @_maxpool_kernel(%arg0: i32, %arg1: i32, %arg2: memref<1x8x256xf32, #tpu.memory_space<vmem>>, %arg3: memref<1x8x64xf32, #tpu.memory_space<vmem>>) attributes {dimension_semantics = [#tpu.dimension_semantics<parallel>, #tpu.dimension_semantics<parallel>], iteration_bounds = array<i64: 2, 1>, scalar_prefetch = 0 : i64, scratch_operands = 0 : i64, tpu.core_type = #tpu.core_type<tc>, window_params = [{transform_indices = @transform_0, window_bounds = array<i64: 1, 8, 256>}, {transform_indices = @transform_1, window_bounds = array<i64: 1, 8, 64>}]} {
    %c0 = arith.constant 0 : index
    %c0_0 = arith.constant 0 : index
    %c0_1 = arith.constant 0 : index
    %0 = vector.load %arg2[%c0, %c0_0, %c0_1] : memref<1x8x256xf32, #tpu.memory_space<vmem>>, vector<1x8x64xf32>
    %1 = vector.shape_cast %0 : vector<1x8x64xf32> to vector<8x64xf32>
    %c0_2 = arith.constant 0 : index
    %c0_3 = arith.constant 0 : index
    %c64 = arith.constant 64 : index
    %2 = vector.load %arg2[%c0_2, %c0_3, %c64] : memref<1x8x256xf32, #tpu.memory_space<vmem>>, vector<1x8x64xf32>
    %3 = vector.shape_cast %2 : vector<1x8x64xf32> to vector<8x64xf32>
    %4 = arith.maximumf %1, %3 : vector<8x64xf32>
    %c0_4 = arith.constant 0 : index
    %c0_5 = arith.constant 0 : index
    %c128 = arith.constant 128 : index
    %5 = vector.load %arg2[%c0_4, %c0_5, %c128] : memref<1x8x256xf32, #tpu.memory_space<vmem>>, vector<1x8x64xf32>
    %6 = vector.shape_cast %5 : vector<1x8x64xf32> to vector<8x64xf32>
    %7 = arith.maximumf %4, %6 : vector<8x64xf32>
    %c0_6 = arith.constant 0 : index
    %c0_7 = arith.constant 0 : index
    %c192 = arith.constant 192 : index
    %8 = vector.load %arg2[%c0_6, %c0_7, %c192] : memref<1x8x256xf32, #tpu.memory_space<vmem>>, vector<1x8x64xf32>
    %9 = vector.shape_cast %8 : vector<1x8x64xf32> to vector<8x64xf32>
    %10 = arith.maximumf %7, %9 : vector<8x64xf32>
    %c0_8 = arith.constant 0 : index
    %c0_9 = arith.constant 0 : index
    %c0_10 = arith.constant 0 : index
    %11 = vector.load %arg3[%c0_8, %c0_9, %c0_10] : memref<1x8x64xf32, #tpu.memory_space<vmem>>, vector<1x8x64xf32>
    %12 = vector.shape_cast %11 : vector<1x8x64xf32> to vector<8x64xf32>
    %13 = vector.shape_cast %10 : vector<8x64xf32> to vector<1x8x64xf32>
    tpu.vector_store %arg3[%c0_8, %c0_9, %c0_10], %13 {strides = array<i32>} : memref<1x8x64xf32, #tpu.memory_space<vmem>>, vector<1x8x64xf32>,
    return
  }
  func.func @transform_0(%arg0: i32, %arg1: i32) -> (i32, i32, i32) {
    %c0_i32 = arith.constant 0 : i32
    %c0_i32_0 = arith.constant 0 : i32
    return %arg0, %arg1, %c0_i32 : i32, i32, i32
  }
  func.func @transform_1(%arg0: i32, %arg1: i32) -> (i32, i32, i32) {
    %c0_i32 = arith.constant 0 : i32
    %c0_i32_0 = arith.constant 0 : i32
    return %arg0, %arg1, %c0_i32 : i32, i32, i32
  }
}

module attributes {stable_mosaic.version = 11 : i64} {
  func.func @_conv_kernel(%arg0: i32, %arg1: i32, %arg2: memref<1x10x64xf32, #tpu.memory_space<vmem>>, %arg3: memref<3x64x64xbf16, #tpu.memory_space<vmem>>, %arg4: memref<1x64xf32, #tpu.memory_space<vmem>>, %arg5: memref<1x64xf32, #tpu.memory_space<vmem>>, %arg6: memref<1x8x64xf32, #tpu.memory_space<vmem>>, %arg7: memref<1x8x64xf32, #tpu.memory_space<vmem>>) attributes {dimension_semantics = [#tpu.dimension_semantics<parallel>, #tpu.dimension_semantics<parallel>], iteration_bounds = array<i64: 2, 1>, scalar_prefetch = 0 : i64, scratch_operands = 0 : i64, tpu.core_type = #tpu.core_type<tc>, window_params = [{transform_indices = @transform_0, window_bounds = array<i64: 1, 10, 64>}, {pipeline_mode = #tpu.pipeline_mode<synchronous>, transform_indices = @transform_1, window_bounds = array<i64: 3, 64, 64>}, {pipeline_mode = #tpu.pipeline_mode<synchronous>, transform_indices = @transform_2, window_bounds = array<i64: 1, 64>}, {pipeline_mode = #tpu.pipeline_mode<synchronous>, transform_indices = @transform_3, window_bounds = array<i64: 1, 64>}, {transform_indices = @transform_4, window_bounds = array<i64: 1, 8, 64>}, {transform_indices = @transform_5, window_bounds = array<i64: 1, 8, 64>}]} {
    %c8_i32 = arith.constant 8 : i32
    %0 = arith.muli %arg1, %c8_i32 : i32
    %cst = arith.constant 0.000000e+00 : f32
    %1 = vector.broadcast %cst : f32 to vector<8x64xf32>
    %c0_i32 = arith.constant 0 : i32
    %2 = arith.addi %0, %c0_i32 : i32
    %c0 = arith.constant 0 : index
    %3 = arith.index_cast %2 : i32 to index
    %c0_0 = arith.constant 0 : index
    %4 = vector.load %arg2[%c0, %3, %c0_0] : memref<1x10x64xf32, #tpu.memory_space<vmem>>, vector<1x8x64xf32>
    %5 = vector.shape_cast %4 : vector<1x8x64xf32> to vector<8x64xf32>
    %6 = arith.truncf %5 : vector<8x64xf32> to vector<8x64xbf16>
    %c0_1 = arith.constant 0 : index
    %c0_2 = arith.constant 0 : index
    %c0_3 = arith.constant 0 : index
    %7 = vector.load %arg3[%c0_1, %c0_2, %c0_3] : memref<3x64x64xbf16, #tpu.memory_space<vmem>>, vector<1x64x64xbf16>
    %8 = vector.shape_cast %7 : vector<1x64x64xbf16> to vector<64x64xbf16>
    %cst_4 = arith.constant dense<0.000000e+00> : vector<8x64xf32>
    %9 = tpu.matmul %6, %8, %cst_4 {dimension_numbers = #tpu.dot_dimension_numbers<[1], [0], [0], [1], [0, 0, 1, 1], [], []>} : vector<8x64xbf16>, vector<64x64xbf16>, vector<8x64xf32> -> vector<8x64xf32>
    %10 = arith.addf %1, %9 : vector<8x64xf32>
    %c1_i32 = arith.constant 1 : i32
    %11 = arith.addi %0, %c1_i32 : i32
    %c0_5 = arith.constant 0 : index
    %12 = arith.index_cast %11 : i32 to index
    %c0_6 = arith.constant 0 : index
    %13 = vector.load %arg2[%c0_5, %12, %c0_6] : memref<1x10x64xf32, #tpu.memory_space<vmem>>, vector<1x8x64xf32>
    %14 = vector.shape_cast %13 : vector<1x8x64xf32> to vector<8x64xf32>
    %15 = arith.truncf %14 : vector<8x64xf32> to vector<8x64xbf16>
    %c1 = arith.constant 1 : index
    %c0_7 = arith.constant 0 : index
    %c0_8 = arith.constant 0 : index
    %16 = vector.load %arg3[%c1, %c0_7, %c0_8] : memref<3x64x64xbf16, #tpu.memory_space<vmem>>, vector<1x64x64xbf16>
    %17 = vector.shape_cast %16 : vector<1x64x64xbf16> to vector<64x64xbf16>
    %cst_9 = arith.constant dense<0.000000e+00> : vector<8x64xf32>
    %18 = tpu.matmul %15, %17, %cst_9 {dimension_numbers = #tpu.dot_dimension_numbers<[1], [0], [0], [1], [0, 0, 1, 1], [], []>} : vector<8x64xbf16>, vector<64x64xbf16>, vector<8x64xf32> -> vector<8x64xf32>
    %19 = arith.addf %10, %18 : vector<8x64xf32>
    %c2_i32 = arith.constant 2 : i32
    %20 = arith.addi %0, %c2_i32 : i32
    %c0_10 = arith.constant 0 : index
    %21 = arith.index_cast %20 : i32 to index
    %c0_11 = arith.constant 0 : index
    %22 = vector.load %arg2[%c0_10, %21, %c0_11] : memref<1x10x64xf32, #tpu.memory_space<vmem>>, vector<1x8x64xf32>
    %23 = vector.shape_cast %22 : vector<1x8x64xf32> to vector<8x64xf32>
    %24 = arith.truncf %23 : vector<8x64xf32> to vector<8x64xbf16>
    %c2 = arith.constant 2 : index
    %c0_12 = arith.constant 0 : index
    %c0_13 = arith.constant 0 : index
    %25 = vector.load %arg3[%c2, %c0_12, %c0_13] : memref<3x64x64xbf16, #tpu.memory_space<vmem>>, vector<1x64x64xbf16>
    %26 = vector.shape_cast %25 : vector<1x64x64xbf16> to vector<64x64xbf16>
    %cst_14 = arith.constant dense<0.000000e+00> : vector<8x64xf32>
    %27 = tpu.matmul %24, %26, %cst_14 {dimension_numbers = #tpu.dot_dimension_numbers<[1], [0], [0], [1], [0, 0, 1, 1], [], []>} : vector<8x64xbf16>, vector<64x64xbf16>, vector<8x64xf32> -> vector<8x64xf32>
    %28 = arith.addf %19, %27 : vector<8x64xf32>
    %c0_15 = arith.constant 0 : index
    %c0_16 = arith.constant 0 : index
    %29 = vector.load %arg4[%c0_15, %c0_16] : memref<1x64xf32, #tpu.memory_space<vmem>>, vector<1x64xf32>
    %30 = vector.broadcast %29 : vector<1x64xf32> to vector<8x64xf32>
    %31 = arith.mulf %28, %30 : vector<8x64xf32>
    %c0_17 = arith.constant 0 : index
    %c0_18 = arith.constant 0 : index
    %32 = vector.load %arg5[%c0_17, %c0_18] : memref<1x64xf32, #tpu.memory_space<vmem>>, vector<1x64xf32>
    %33 = vector.broadcast %32 : vector<1x64xf32> to vector<8x64xf32>
    %34 = arith.addf %31, %33 : vector<8x64xf32>
    %c0_19 = arith.constant 0 : index
    %c0_20 = arith.constant 0 : index
    %c0_21 = arith.constant 0 : index
    %35 = vector.load %arg6[%c0_19, %c0_20, %c0_21] : memref<1x8x64xf32, #tpu.memory_space<vmem>>, vector<1x8x64xf32>
    %36 = vector.shape_cast %35 : vector<1x8x64xf32> to vector<8x64xf32>
    %37 = arith.addf %34, %36 : vector<8x64xf32>
    %c0_22 = arith.constant 0 : index
    %c0_23 = arith.constant 0 : index
    %c0_24 = arith.constant 0 : index
    %38 = vector.load %arg7[%c0_22, %c0_23, %c0_24] : memref<1x8x64xf32, #tpu.memory_space<vmem>>, vector<1x8x64xf32>
    %39 = vector.shape_cast %38 : vector<1x8x64xf32> to vector<8x64xf32>
    %40 = vector.shape_cast %37 : vector<8x64xf32> to vector<1x8x64xf32>
    tpu.vector_store %arg7[%c0_22, %c0_23, %c0_24], %40 {strides = array<i32>} : memref<1x8x64xf32, #tpu.memory_space<vmem>>, vector<1x8x64xf32>,
    return
  }
  func.func @transform_0(%arg0: i32, %arg1: i32) -> (i32, i32, i32) {
    %c0_i32 = arith.constant 0 : i32
    %c0_i32_0 = arith.constant 0 : i32
    %c0_i32_1 = arith.constant 0 : i32
    return %arg0, %c0_i32, %c0_i32_0 : i32, i32, i32
  }
  func.func @transform_1(%arg0: i32, %arg1: i32) -> (i32, i32, i32) {
    %c0_i32 = arith.constant 0 : i32
    %c0_i32_0 = arith.constant 0 : i32
    %c0_i32_1 = arith.constant 0 : i32
    %c0_i32_2 = arith.constant 0 : i32
    return %c0_i32, %c0_i32_0, %c0_i32_1 : i32, i32, i32
  }
  func.func @transform_2(%arg0: i32, %arg1: i32) -> (i32, i32) {
    %c0_i32 = arith.constant 0 : i32
    %c0_i32_0 = arith.constant 0 : i32
    %c0_i32_1 = arith.constant 0 : i32
    return %c0_i32, %c0_i32_0 : i32, i32
  }
  func.func @transform_3(%arg0: i32, %arg1: i32) -> (i32, i32) {
    %c0_i32 = arith.constant 0 : i32
    %c0_i32_0 = arith.constant 0 : i32
    %c0_i32_1 = arith.constant 0 : i32
    return %c0_i32, %c0_i32_0 : i32, i32
  }
  func.func @transform_4(%arg0: i32, %arg1: i32) -> (i32, i32, i32) {
    %c0_i32 = arith.constant 0 : i32
    %c0_i32_0 = arith.constant 0 : i32
    return %arg0, %arg1, %c0_i32 : i32, i32, i32
  }
  func.func @transform_5(%arg0: i32, %arg1: i32) -> (i32, i32, i32) {
    %c0_i32 = arith.constant 0 : i32
    %c0_i32_0 = arith.constant 0 : i32
    return %arg0, %arg1, %c0_i32 : i32, i32, i32
  }
}

module attributes {stable_mosaic.version = 11 : i64} {
  func.func @_head_kernel(%arg0: i32, %arg1: memref<2x4x64xf32, #tpu.memory_space<vmem>>, %arg2: memref<1x1x64xf32, #tpu.memory_space<vmem>>, %arg3: memref<1x1x64xf32, #tpu.memory_space<vmem>>, %arg4: memref<64x2xf32, #tpu.memory_space<vmem>>, %arg5: memref<1x2xf32, #tpu.memory_space<vmem>>, %arg6: memref<2x2xf32, #tpu.memory_space<vmem>>) attributes {dimension_semantics = [#tpu.dimension_semantics<arbitrary>], iteration_bounds = array<i64: 1>, scalar_prefetch = 0 : i64, scratch_operands = 0 : i64, tpu.core_type = #tpu.core_type<tc>, window_params = [{pipeline_mode = #tpu.pipeline_mode<synchronous>, transform_indices = @transform_0, window_bounds = array<i64: 2, 4, 64>}, {pipeline_mode = #tpu.pipeline_mode<synchronous>, transform_indices = @transform_1, window_bounds = array<i64: 1, 1, 64>}, {pipeline_mode = #tpu.pipeline_mode<synchronous>, transform_indices = @transform_2, window_bounds = array<i64: 1, 1, 64>}, {pipeline_mode = #tpu.pipeline_mode<synchronous>, transform_indices = @transform_3, window_bounds = array<i64: 64, 2>}, {pipeline_mode = #tpu.pipeline_mode<synchronous>, transform_indices = @transform_4, window_bounds = array<i64: 1, 2>}, {pipeline_mode = #tpu.pipeline_mode<synchronous>, transform_indices = @transform_5, window_bounds = array<i64: 2, 2>}]} {
    %c0 = arith.constant 0 : index
    %c0_0 = arith.constant 0 : index
    %c0_1 = arith.constant 0 : index
    %0 = vector.load %arg1[%c0, %c0_0, %c0_1] : memref<2x4x64xf32, #tpu.memory_space<vmem>>, vector<2x4x64xf32>
    %c0_2 = arith.constant 0 : index
    %c0_3 = arith.constant 0 : index
    %c0_4 = arith.constant 0 : index
    %1 = vector.load %arg2[%c0_2, %c0_3, %c0_4] : memref<1x1x64xf32, #tpu.memory_space<vmem>>, vector<1x1x64xf32>
    %2 = vector.broadcast %1 : vector<1x1x64xf32> to vector<2x4x64xf32>
    %3 = arith.mulf %0, %2 : vector<2x4x64xf32>
    %c0_5 = arith.constant 0 : index
    %c0_6 = arith.constant 0 : index
    %c0_7 = arith.constant 0 : index
    %4 = vector.load %arg3[%c0_5, %c0_6, %c0_7] : memref<1x1x64xf32, #tpu.memory_space<vmem>>, vector<1x1x64xf32>
    %5 = vector.broadcast %4 : vector<1x1x64xf32> to vector<2x4x64xf32>
    %6 = arith.addf %3, %5 : vector<2x4x64xf32>
    %cst = arith.constant 0.000000e+00 : f32
    %7 = vector.broadcast %cst : f32 to vector<2x4x64xf32>
    %8 = arith.maximumf %6, %7 : vector<2x4x64xf32>
    %cst_8 = arith.constant dense<0.000000e+00> : vector<2x64xf32>
    %9 = vector.multi_reduction <add>, %8, %cst_8 [1] : vector<2x4x64xf32> to vector<2x64xf32>
    %cst_9 = arith.constant 4.000000e+00 : f32
    %10 = vector.broadcast %cst_9 : f32 to vector<2x64xf32>
    %11 = arith.divf %9, %10 : vector<2x64xf32>
    %c0_10 = arith.constant 0 : index
    %c0_11 = arith.constant 0 : index
    %12 = vector.load %arg4[%c0_10, %c0_11] : memref<64x2xf32, #tpu.memory_space<vmem>>, vector<64x2xf32>
    %cst_12 = arith.constant dense<0.000000e+00> : vector<2x2xf32>
    %13 = tpu.matmul %11, %12, %cst_12 {dimension_numbers = #tpu.dot_dimension_numbers<[1], [0], [0], [1], [0, 0, 1, 1], [], []>} : vector<2x64xf32>, vector<64x2xf32>, vector<2x2xf32> -> vector<2x2xf32>
    %c0_13 = arith.constant 0 : index
    %c0_14 = arith.constant 0 : index
    %14 = vector.load %arg5[%c0_13, %c0_14] : memref<1x2xf32, #tpu.memory_space<vmem>>, vector<1x2xf32>
    %15 = vector.broadcast %14 : vector<1x2xf32> to vector<2x2xf32>
    %16 = arith.addf %13, %15 : vector<2x2xf32>
    %c0_15 = arith.constant 0 : index
    %c0_16 = arith.constant 0 : index
    %17 = vector.load %arg6[%c0_15, %c0_16] : memref<2x2xf32, #tpu.memory_space<vmem>>, vector<2x2xf32>
    tpu.vector_store %arg6[%c0_15, %c0_16], %16 {strides = array<i32>} : memref<2x2xf32, #tpu.memory_space<vmem>>, vector<2x2xf32>,
    return
  }
  func.func @transform_0(%arg0: i32) -> (i32, i32, i32) {
    %c0_i32 = arith.constant 0 : i32
    %c0_i32_0 = arith.constant 0 : i32
    %c0_i32_1 = arith.constant 0 : i32
    %c0_i32_2 = arith.constant 0 : i32
    return %c0_i32, %c0_i32_0, %c0_i32_1 : i32, i32, i32
  }
  func.func @transform_1(%arg0: i32) -> (i32, i32, i32) {
    %c0_i32 = arith.constant 0 : i32
    %c0_i32_0 = arith.constant 0 : i32
    %c0_i32_1 = arith.constant 0 : i32
    %c0_i32_2 = arith.constant 0 : i32
    return %c0_i32, %c0_i32_0, %c0_i32_1 : i32, i32, i32
  }
  func.func @transform_2(%arg0: i32) -> (i32, i32, i32) {
    %c0_i32 = arith.constant 0 : i32
    %c0_i32_0 = arith.constant 0 : i32
    %c0_i32_1 = arith.constant 0 : i32
    %c0_i32_2 = arith.constant 0 : i32
    return %c0_i32, %c0_i32_0, %c0_i32_1 : i32, i32, i32
  }
  func.func @transform_3(%arg0: i32) -> (i32, i32) {
    %c0_i32 = arith.constant 0 : i32
    %c0_i32_0 = arith.constant 0 : i32
    %c0_i32_1 = arith.constant 0 : i32
    return %c0_i32, %c0_i32_0 : i32, i32
  }
  func.func @transform_4(%arg0: i32) -> (i32, i32) {
    %c0_i32 = arith.constant 0 : i32
    %c0_i32_0 = arith.constant 0 : i32
    %c0_i32_1 = arith.constant 0 : i32
    return %c0_i32, %c0_i32_0 : i32, i32
  }
  func.func @transform_5(%arg0: i32) -> (i32, i32) {
    %c0_i32 = arith.constant 0 : i32
    %c0_i32_0 = arith.constant 0 : i32
    %c0_i32_1 = arith.constant 0 : i32
    return %c0_i32, %c0_i32_0 : i32, i32
  }
}

</mosaic_0001>

<bundles_post_ra>
// kernel: resnet1d_forward.14
= control target key start
LH: loop header
LB: loop body
LE: loop exit
PB: predicated region body
PF: predicated region fallthrough
CT: control target
= control target key end

     0   :  { %s441_s6 = smov 0   ;;  %s443_s7 = smov 0   ;;  %s529_s0 = inlined_call_operand.vmem [shape: f32[2,64,128], index: 0, kind: input, shape index: {}]   ;;  %s530_s1 = inlined_call_operand.vmem [shape: f32[2,64,32], index: 1, kind: output, shape index: {}]  }
   0x1   :  { %s445_s8 = smov 0  }
   0x2 LB: > { %s23_s9 = sadd.s32 1, %s422_s7  ;;  %p368_p0 = scmp.ge.s32.totalorder %s426_s8, 1  ;;  %s426_s8 = sphi %s445_s8, %s11_s8   ;;  %s422_s7 = sphi %s443_s7, %s532_s7   ;;  %s418_s6 = sphi %s441_s6, %s531_s6  }
   0x3   : > { %p25_p1 = scmp.ge.s32.totalorder %s23_s9, 2  ;;  %p108_p2 = scmp.lt.s32.totalorder %s426_s8, 3 }
   0x5   : > { %s534_s9 = smov (%p25_p1, %s23_s9), 0  ;;  %p109_p3 = pnand %p368_p0, %p108_p2 }
   0x6   : > { %p137_p4 = scmp.lt.s32.totalorder (!%p109_p3), %s418_s6, 1  ;;  %s428_s14 = smov (!%p109_p3), 96   ;;  %vm268_vm0 = vcmask (!%p109_p3), 261120  }
   0x7   : > { %112 = sbr.rel (%p109_p3) target bundleno = 180 (0xb4), region = 24  ;;  %s429_s15 = smov (!%p109_p3), 64  }
   0x8   : > { %s430_s16 = smov (!%p109_p3), 32  }
   0xe   : > { %s536_s6 = smov (!%p137_p4, %s418_s6), 1 }
   0xf   : > { %s375_s10 = sshll.u32 %s536_s6, 6 }
  0x10   : > { %s144_s13 = scalar_lea.vmem %s529_s0, %s375_s10  ;;  %s497_s19 = scalar_lea.vmem %s530_s1, %s375_s10 }
  0x11   : > { %v467_v0 = vld [vmem:[%s144_s13 + $0x10] sm:$0xff]  ;;  %v156_v1 = vld [vmem:[%s144_s13] sm:$0xff]  ;;  %v159_v2 = vld [vmem:[%s144_s13 + $0x18] sm:$0xff] }
  0x12   : > { %176 = vrot.lane.b32.xlu1 %v467_v0, %s428_s14  ;;  %172 = vrot.lane.b32.xlu0 %v156_v1, %s428_s14  ;;  %v157_v3 = vld [vmem:[%s144_s13 + $0x8] sm:$0xff]  ;;  %v472_v5 = vld [vmem:[%s144_s13 + $0x20] sm:$0xff] }
  0x13   : > { %v470_v4 = vld [vmem:[%s144_s13 + $0x28] sm:$0xff]  ;;  %v476_v6 = vld [vmem:[%s144_s13 + $0x38] sm:$0xff]  ;;  %v478_v7 = vld [vmem:[%s144_s13 + $0x30] sm:$0xff] }
  0x16   : > { %178 = vrot.lane.b32.xlu1 %v159_v2, %s428_s14  ;;  %174 = vrot.lane.b32.xlu0 %v157_v3, %s428_s14 }
  0x1a   : > { %182 = vrot.lane.b32.xlu1 %v470_v4, %s428_s14  ;;  %180 = vrot.lane.b32.xlu0 %v472_v5, %s428_s14 }
  0x1e   : > { %186 = vrot.lane.b32.xlu1 %v476_v6, %s428_s14  ;;  %184 = vrot.lane.b32.xlu0 %v478_v7, %s428_s14 }
  0x22   : > { %206 = vrot.lane.b32.xlu1 %v157_v3, %s429_s15  ;;  %204 = vrot.lane.b32.xlu0 %v156_v1, %s429_s15 }
  0x26   : > { %210 = vrot.lane.b32.xlu1 %v159_v2, %s429_s15  ;;  %208 = vrot.lane.b32.xlu0 %v467_v0, %s429_s15 }
  0x2a   : > { %214 = vrot.lane.b32.xlu1 %v470_v4, %s429_s15  ;;  %212 = vrot.lane.b32.xlu0 %v472_v5, %s429_s15 }
  0x2e   : > { %218 = vrot.lane.b32.xlu1 %v476_v6, %s429_s15  ;;  %216 = vrot.lane.b32.xlu0 %v478_v7, %s429_s15 }
  0x32   : > { %238 = vrot.lane.b32.xlu1 %v157_v3, %s430_s16  ;;  %236 = vrot.lane.b32.xlu0 %v156_v1, %s430_s16 }
  0x36   : > { %242 = vrot.lane.b32.xlu1 %v159_v2, %s430_s16  ;;  %240 = vrot.lane.b32.xlu0 %v467_v0, %s430_s16 }
  0x3a   : > { %246 = vrot.lane.b32.xlu1 %v470_v4, %s430_s16  ;;  %244 = vrot.lane.b32.xlu0 %v472_v5, %s430_s16 }
  0x3e   : > { %250 = vrot.lane.b32.xlu1 %v476_v6, %s430_s16  ;;  %248 = vrot.lane.b32.xlu0 %v478_v7, %s430_s16 }
  0x84   : > { %v177_v8 = vpop.permute.xlu1 %176  ;;  %v173_v9 = vpop.permute.xlu0 %172 }
  0x85   : > { %v196_v24 = vmax.f32 %v156_v1, %v173_v9  ;;  %v198_v30 = vmax.f32 %v467_v0, %v177_v8 }
  0x88   : > { %v179_v10 = vpop.permute.xlu1 %178  ;;  %v175_v11 = vpop.permute.xlu0 %174 }
  0x89   : > { %v197_v25 = vmax.f32 %v157_v3, %v175_v11  ;;  %v199_v31 = vmax.f32 %v159_v2, %v179_v10 }
  0x8c   : > { %v183_v12 = vpop.permute.xlu1 %182  ;;  %v181_v13 = vpop.permute.xlu0 %180 }
  0x8d   : > { %v201_v38 = vmax.f32 %v470_v4, %v183_v12  ;;  %v200_v39 = vmax.f32 %v472_v5, %v181_v13 }
  0x90   : > { %v187_v14 = vpop.permute.xlu1 %186  ;;  %v185_v15 = vpop.permute.xlu0 %184 }
  0x91   : > { %v203_v46 = vmax.f32 %v476_v6, %v187_v14  ;;  %v202_v47 = vmax.f32 %v478_v7, %v185_v15 }
  0x94   : > { %v207_v16 = vpop.permute.xlu1 %206  ;;  %v205_v17 = vpop.permute.xlu0 %204 }
  0x95   : > { %v229_v26 = vmax.f32 %v197_v25, %v207_v16  ;;  %v228_v27 = vmax.f32 %v196_v24, %v205_v17 }
  0x98   : > { %v211_v18 = vpop.permute.xlu1 %210  ;;  %v209_v19 = vpop.permute.xlu0 %208 }
  0x99   : > { %v231_v34 = vmax.f32 %v199_v31, %v211_v18  ;;  %v230_v35 = vmax.f32 %v198_v30, %v209_v19 }
  0x9c   : > { %v215_v20 = vpop.permute.xlu1 %214  ;;  %v213_v21 = vpop.permute.xlu0 %212 }
  0x9d   : > { %v233_v42 = vmax.f32 %v201_v38, %v215_v20  ;;  %v232_v43 = vmax.f32 %v200_v39, %v213_v21 }
  0xa0   : > { %v219_v22 = vpop.permute.xlu1 %218  ;;  %v217_v23 = vpop.permute.xlu0 %216 }
  0xa1   : > { %v235_v50 = vmax.f32 %v203_v46, %v219_v22  ;;  %v234_v51 = vmax.f32 %v202_v47, %v217_v23 }
  0xa4   : > { %v239_v28 = vpop.permute.xlu1 %238  ;;  %v237_v29 = vpop.permute.xlu0 %236 }
  0xa5   : > { %v261_v32 = vmax.f32 %v229_v26, %v239_v28  ;;  %v260_v33 = vmax.f32 %v228_v27, %v237_v29 }
  0xa7   : > { %270 = vst.msk [vmem:[%s497_s19 + $0x8] sm:$0xff] %vm268_vm0, %v261_v32  ;;  %269 = vst.msk [vmem:[%s497_s19] sm:$0xff] %vm268_vm0, %v260_v33 }
  0xa8   : > { %v243_v36 = vpop.permute.xlu1 %242  ;;  %v241_v37 = vpop.permute.xlu0 %240 }
  0xa9   : > { %v263_v40 = vmax.f32 %v231_v34, %v243_v36  ;;  %v262_v41 = vmax.f32 %v230_v35, %v241_v37 }
  0xab   : > { %272 = vst.msk [vmem:[%s497_s19 + $0x18] sm:$0xff] %vm268_vm0, %v263_v40  ;;  %271 = vst.msk [vmem:[%s497_s19 + $0x10] sm:$0xff] %vm268_vm0, %v262_v41 }
  0xac   : > { %v247_v44 = vpop.permute.xlu1 %246  ;;  %v245_v45 = vpop.permute.xlu0 %244 }
  0xad   : > { %v265_v48 = vmax.f32 %v233_v42, %v247_v44  ;;  %v264_v49 = vmax.f32 %v232_v43, %v245_v45 }
  0xaf   : > { %274 = vst.msk [vmem:[%s497_s19 + $0x28] sm:$0xff] %vm268_vm0, %v265_v48  ;;  %273 = vst.msk [vmem:[%s497_s19 + $0x20] sm:$0xff] %vm268_vm0, %v264_v49 }
  0xb0   : > { %v251_v52 = vpop.permute.xlu1 %250  ;;  %v249_v53 = vpop.permute.xlu0 %248 }
  0xb1   : > { %v267_v54 = vmax.f32 %v235_v50, %v251_v52  ;;  %v266_v55 = vmax.f32 %v234_v51, %v249_v53 }
  0xb3   : > { %276 = vst.msk [vmem:[%s497_s19 + $0x38] sm:$0xff] %vm268_vm0, %v267_v54  ;;  %275 = vst.msk [vmem:[%s497_s19 + $0x30] sm:$0xff] %vm268_vm0, %v266_v55 }
  0xb4 PF: > { %s11_s8 = sadd.s32 1, %s426_s8   ;;  %s531_s6 = smov %s422_s7 }
  0xb5   : > { %p8_p5 = scmp.ge.s32.totalorder %s11_s8, 4   ;;  %s532_s7 = smov %s534_s9 }
  0xb7   :  { %10 = sbr.rel (!%p8_p5) target bundleno = 2 (0x2), region = 54 }

// kernel: resnet1d_forward.15
= control target key start
LH: loop header
LB: loop body
LE: loop exit
PB: predicated region body
PF: predicated region fallthrough
CT: control target
= control target key end

     0   :  { %s898_s15 = smov 0   ;;  %s900_s16 = smov 0   ;;  %s1015_s0 = inlined_call_operand.vmem [shape: f32[2,66,32], index: 0, kind: input, shape index: {}]   ;;  %s1016_s1 = inlined_call_operand.vmem [shape: bf16[3,32,32], index: 1, kind: input, shape index: {}]   ;;  %s1017_s2 = inlined_call_operand.vmem [shape: f32[1,32], index: 2, kind: input, shape index: {}]   ;;  %s1018_s3 = inlined_call_operand.vmem [shape: f32[1,32], index: 3, kind: input, shape index: {}]   ;;  %s1019_s4 = inlined_call_operand.vmem [shape: f32[2,64,32], index: 4, kind: output, shape index: {}]  }
   0x1   :  { %s902_s17 = smov 0  }
   0x2 LB: > { %s26_s18 = sadd.s32 1, %s867_s16  ;;  %p693_p0 = scmp.ge.s32.totalorder %s871_s17, 1  ;;  %s871_s17 = sphi %s902_s17, %s14_s17   ;;  %s867_s16 = sphi %s900_s16, %s1021_s16   ;;  %s863_s15 = sphi %s898_s15, %s1020_s15  }
   0x3   : > { %p28_p1 = scmp.ge.s32.totalorder %s26_s18, 2  ;;  %p176_p2 = scmp.lt.s32.totalorder %s871_s17, 3 }
   0x5   : > { %s1023_s18 = smov (%p28_p1, %s26_s18), 0  ;;  %p177_p3 = pnand %p693_p0, %p176_p2 }
   0x6   : > { %v843_v0 = vld [vmem:[%s1016_s1 + $0x10] sm:$0xff] (!%p177_p3)   ;;  %p206_p4 = scmp.lt.s32.totalorder (!%p177_p3), %s863_s15, 1  ;;  %v844_v1 = vld [vmem:[%s1016_s1] sm:$0xff] (!%p177_p3)   ;;  %v845_v2 = vld [vmem:[%s1016_s1 + $0x18] sm:$0xff] (!%p177_p3)   ;;  %vm271_vm0 = vcmask (!%p177_p3), 261120  }
   0x7   : > { %180 = sbr.rel (%p177_p3) target bundleno = 268 (0x10c), region = 36  ;;  %762 = vmatprep.subr.bf16.mxu1 (!%p177_p3), %v843_v0  ;;  %774 = vmatprep.subr.bf16.mxu0 (!%p177_p3), %v844_v1  ;;  %v846_v3 = vld [vmem:[%s1016_s1 + $0x8] sm:$0xff] (!%p177_p3)   ;;  %v847_v4 = vld [vmem:[%s1016_s1 + $0x20] sm:$0xff] (!%p177_p3)  }
   0x8   : > { %763 = vmatpush3.bf16.msra.mxu1 (!%p177_p3), %v843_v0  ;;  %775 = vmatpush3.bf16.msra.mxu0 (!%p177_p3), %v844_v1  ;;  %v848_v18 = vld [vmem:[%s1016_s1 + $0x28] sm:$0xff] (!%p177_p3)   ;;  %v739_v47 = vld [vmem:[%s1017_s2] ss:$0 sm:$0xff] (!%p177_p3) }
   0x9   : > { %764 = vmatprep.subr.bf16.mxu1 (!%p177_p3), %v845_v2  ;;  %776 = vmatprep.subr.bf16.mxu0 (!%p177_p3), %v846_v3  ;;  %v740_v50 = vld [vmem:[%s1018_s3] ss:$0 sm:$0xff] (!%p177_p3) }
   0xc   : > { %765 = vmatpush3.bf16.msra.mxu1 (!%p177_p3), %v845_v2  ;;  %777 = vmatpush3.bf16.msra.mxu0 (!%p177_p3), %v846_v3 }
   0xd   : > { %798 = vmatprep.subr.bf16.mxu1 (!%p177_p3), %v844_v1  ;;  %786 = vmatprep.subr.bf16.mxu0 (!%p177_p3), %v847_v4 }
   0xe   : > { %s1025_s15 = smov (!%p206_p4, %s863_s15), 1 }
   0xf   : > { %s818_s27 = smul.u32 72, %s1025_s15  ;;  %s743_s13 = sshll.u32 %s1025_s15, 6 }
  0x10   : > { %s988_s20 = scalar_lea.vmem %s1019_s4, %s743_s13 }
  0x11   : > { %s937_s6 = scalar_lea.vmem %s1015_s0, %s818_s27 }
  0x12   : > { %v697_v5 = vld [vmem:[%s937_s6 + $0x1] sm:$0xff]  ;;  %v698_v6 = vld [vmem:[%s937_s6 + $0x9] sm:$0xff]  ;;  %v699_v10 = vld [vmem:[%s937_s6 + $0x11] sm:$0xff] }
  0x13   : > { %v224_v7 = vld [vmem:[%s937_s6] sm:$0xff]  ;;  %v250_v8 = vpack.c.bf16 %v698_v6, %v697_v5  ;;  %v225_v9 = vld [vmem:[%s937_s6 + $0x8] sm:$0xff]  ;;  %v226_v14 = vld [vmem:[%s937_s6 + $0x10] sm:$0xff] }
  0x14   : > { %v700_v11 = vld [vmem:[%s937_s6 + $0x19] sm:$0xff]  ;;  %v232_v12 = vpack.c.bf16 %v225_v9, %v224_v7  ;;  %v701_v16 = vld [vmem:[%s937_s6 + $0x21] sm:$0xff]  ;;  %v702_v19 = vld [vmem:[%s937_s6 + $0x29] sm:$0xff] }
  0x15   : > { %v251_v13 = vpack.c.bf16 %v700_v11, %v699_v10  ;;  %v227_v15 = vld [vmem:[%s937_s6 + $0x18] sm:$0xff]  ;;  %766 = vmatprep.mubr.msk.bf16.mxu1 %vm271_vm0, %v250_v8  ;;  %v252_v20 = vpack.c.bf16 %v702_v19, %v701_v16  ;;  %v721_v21 = vld [vmem:[%s937_s6 + $0x2] sm:$0xff]  ;;  %v722_v22 = vld [vmem:[%s937_s6 + $0xa] sm:$0xff] }
  0x16   : > { %v233_v17 = vpack.c.bf16 %v227_v15, %v226_v14  ;;  %778 = vmatprep.mubr.msk.bf16.mxu0 %vm271_vm0, %v232_v12  ;;  %v703_v23 = vld [vmem:[%s937_s6 + $0x31] sm:$0xff]  ;;  %v704_v24 = vld [vmem:[%s937_s6 + $0x39] sm:$0xff]  ;;  %v448_v25 = vpack.c.bf16 %v722_v22, %v721_v21  ;;  %v229_v27 = vld [vmem:[%s937_s6 + $0x28] sm:$0xff] }
  0x17   : > { %767 = vmatmul.mubr.msk.bf16.vlgmr.msra.gmra.mrb[0].mxu1 %vm271_vm0, %v251_v13  ;;  %v228_v26 = vld [vmem:[%s937_s6 + $0x20] sm:$0xff]  ;;  %v253_v28 = vpack.c.bf16 %v704_v24, %v703_v23  ;;  %v723_v30 = vld [vmem:[%s937_s6 + $0x12] sm:$0xff]  ;;  %v726_v33 = vld [vmem:[%s937_s6 + $0x2a] sm:$0xff] }
  0x18   : > { %779 = vmatmul.mubr.msk.bf16.vlgmr.msra.gmra.mrb[0].mxu0 %vm271_vm0, %v233_v17  ;;  %800 = vmatpush3.bf16.msra.mxu1 %v844_v1  ;;  %v234_v29 = vpack.c.bf16 %v229_v27, %v228_v26  ;;  %v724_v31 = vld [vmem:[%s937_s6 + $0x1a] sm:$0xff]  ;;  %v725_v32 = vld [vmem:[%s937_s6 + $0x22] sm:$0xff]  ;;  %v230_v36 = vld [vmem:[%s937_s6 + $0x30] sm:$0xff] }
  0x19   : > { %787 = vmatpush3.bf16.msra.mxu0 %v847_v4  ;;  %770 = vmatprep.mubr.msk.bf16.mxu1 %vm271_vm0, %v252_v20  ;;  %v449_v34 = vpack.c.bf16 %v724_v31, %v723_v30  ;;  %v450_v35 = vpack.c.bf16 %v726_v33, %v725_v32  ;;  %v231_v37 = vld [vmem:[%s937_s6 + $0x38] sm:$0xff] }
  0x1a   : > { %788 = vmatprep.subr.bf16.mxu0 %v848_v18  ;;  %799 = vmatprep.subr.bf16.mxu1 %v846_v3  ;;  %v727_v38 = vld [vmem:[%s937_s6 + $0x32] sm:$0xff]  ;;  %v728_v39 = vld [vmem:[%s937_s6 + $0x3a] sm:$0xff]  ;;  %v235_v40 = vpack.c.bf16 %v231_v37, %v230_v36 }
  0x1b   : > { %790 = vmatprep.mubr.msk.bf16.mxu0 %vm271_vm0, %v448_v25  ;;  %v451_v41 = vpack.c.bf16 %v728_v39, %v727_v38 }
  0x1c   : > { %801 = vmatpush3.bf16.msra.mxu1 %v846_v3 }
  0x1d   : > { %789 = vmatpush3.bf16.msra.mxu0 %v848_v18 }
  0x1f   : > { %771 = vmatmul.mubr.msk.bf16.gmra.mrb[4].mxu1 %vm271_vm0, %v253_v28 }
  0x20   : > { %782 = vmatprep.mubr.msk.bf16.mxu1 %vm271_vm0, %v234_v29 }
  0x24   : > { %791 = vmatmul.mubr.msk.bf16.vlgmr.msra.gmra.mrb[0].mxu0 %vm271_vm0, %v449_v34 }
  0x25   : > { %794 = vmatprep.mubr.msk.bf16.mxu0 %vm271_vm0, %v450_v35 }
  0x2b   : > { %783 = vmatmul.mubr.msk.bf16.vlgmr.msra.gmra.mrb[4].mxu1 %vm271_vm0, %v235_v40 }
  0x2c   : > { %795 = vmatmul.mubr.msk.bf16.gmra.mrb[4].mxu0 %vm271_vm0, %v451_v41 }
  0xea   : > { %v768_v42 = vpop.f32.mrb[0].mxu1 }
  0xeb   : > { %v318_v43 = vpop.f32.mrb[1].mxu1 }
  0xec   : > { %v769_v44 = vpop.f32.mrb[2].mxu1 }
  0xed   : > { %v321_v45 = vpop.f32.mrb[3].mxu1 }
  0xf7   : > { %v792_v46 = vpop.f32.mrb[0].mxu0 }
  0xf8   : > { %v802_v48 = vadd.f32 %v792_v46, %v768_v42  ;;  %v515_v49 = vpop.f32.mrb[1].mxu0 }
  0xf9   : > { %v803_v51 = vadd.f32 %v515_v49, %v318_v43  ;;  %v793_v52 = vpop.f32.mrb[2].mxu0 }
  0xfa   : > { %v563_v53 = vmul.f32 %v802_v48, %v739_v47  ;;  %v804_v54 = vadd.f32 %v793_v52, %v769_v44  ;;  %v518_v55 = vpop.f32.mrb[3].mxu0 }
  0xfb   : > { %v561_v56 = vmul.f32 %v803_v51, %v739_v47  ;;  %v805_v57 = vadd.f32 %v518_v55, %v321_v45 }
  0xfc   : > { %v578_v58 = vadd.f32 %v740_v50, %v563_v53  ;;  %v564_v59 = vmul.f32 %v804_v54, %v739_v47 }
  0xfd   : > { %v576_v60 = vadd.f32 %v740_v50, %v561_v56  ;;  %v562_v61 = vmul.f32 %v805_v57, %v739_v47 }
  0xfe   : > { %v586_v62 = vmax.f32 %v578_v58, 0.0  ;;  %v579_v63 = vadd.f32 %v740_v50, %v564_v59  ;;  %v784_v0 = vpop.f32.mrb[4].mxu1 }
  0xff   : > { %v584_v1 = vmax.f32 %v576_v60, 0.0  ;;  %v577_v2 = vadd.f32 %v740_v50, %v562_v61  ;;  %v796_v3 = vpop.f32.mrb[4].mxu0  ;;  %v423_v4 = vpop.f32.mrb[5].mxu1 }
 0x100   : > { %594 = vst.msk [vmem:[%s988_s20 + $0x10] sm:$0xff] %vm271_vm0, %v586_v62  ;;  %v587_v5 = vmax.f32 %v579_v63, 0.0  ;;  %v806_v6 = vadd.f32 %v796_v3, %v784_v0  ;;  %v531_v7 = vpop.f32.mrb[5].mxu0  ;;  %v785_v8 = vpop.f32.mrb[6].mxu1 }
 0x101   : > { %592 = vst.msk [vmem:[%s988_s20] sm:$0xff] %vm271_vm0, %v584_v1  ;;  %v585_v9 = vmax.f32 %v577_v2, 0.0  ;;  %v807_v10 = vadd.f32 %v531_v7, %v423_v4  ;;  %v797_v11 = vpop.f32.mrb[6].mxu0  ;;  %v426_v12 = vpop.f32.mrb[7].mxu1 }
 0x102   : > { %595 = vst.msk [vmem:[%s988_s20 + $0x18] sm:$0xff] %vm271_vm0, %v587_v5  ;;  %v567_v13 = vmul.f32 %v806_v6, %v739_v47  ;;  %v808_v14 = vadd.f32 %v797_v11, %v785_v8  ;;  %v534_v15 = vpop.f32.mrb[7].mxu0 }
 0x103   : > { %593 = vst.msk [vmem:[%s988_s20 + $0x8] sm:$0xff] %vm271_vm0, %v585_v9  ;;  %v565_v16 = vmul.f32 %v807_v10, %v739_v47  ;;  %v809_v17 = vadd.f32 %v534_v15, %v426_v12 }
 0x104   : > { %v582_v18 = vadd.f32 %v740_v50, %v567_v13  ;;  %v568_v19 = vmul.f32 %v808_v14, %v739_v47 }
 0x105   : > { %v580_v20 = vadd.f32 %v740_v50, %v565_v16  ;;  %v566_v21 = vmul.f32 %v809_v17, %v739_v47 }
 0x106   : > { %v590_v22 = vmax.f32 %v582_v18, 0.0  ;;  %v583_v23 = vadd.f32 %v740_v50, %v568_v19 }
 0x107   : > { %v588_v24 = vmax.f32 %v580_v20, 0.0  ;;  %v581_v25 = vadd.f32 %v740_v50, %v566_v21 }
 0x108   : > { %598 = vst.msk [vmem:[%s988_s20 + $0x30] sm:$0xff] %vm271_vm0, %v590_v22  ;;  %v591_v26 = vmax.f32 %v583_v23, 0.0 }
 0x109   : > { %596 = vst.msk [vmem:[%s988_s20 + $0x20] sm:$0xff] %vm271_vm0, %v588_v24  ;;  %v589_v27 = vmax.f32 %v581_v25, 0.0 }
 0x10a   : > { %599 = vst.msk [vmem:[%s988_s20 + $0x38] sm:$0xff] %vm271_vm0, %v591_v26 }
 0x10b   : > { %597 = vst.msk [vmem:[%s988_s20 + $0x28] sm:$0xff] %vm271_vm0, %v589_v27 }
 0x10c PF: > { %s14_s17 = sadd.s32 1, %s871_s17   ;;  %s1020_s15 = smov %s867_s16 }
 0x10d   : > { %p11_p5 = scmp.ge.s32.totalorder %s14_s17, 4   ;;  %s1021_s16 = smov %s1023_s18 }
 0x10f   :  { %13 = sbr.rel (!%p11_p5) target bundleno = 2 (0x2), region = 71 }

// kernel: resnet1d_forward.13
= control target key start
LH: loop header
LB: loop body
LE: loop exit
PB: predicated region body
PF: predicated region fallthrough
CT: control target
= control target key end

     0   :  { %s2567_s15 = smov 0   ;;  %s2569_s16 = smov 0   ;;  %s3038_s0 = inlined_call_operand.vmem [shape: f32[2,260,4], index: 0, kind: input, shape index: {}]   ;;  %s3039_s1 = inlined_call_operand.vmem [shape: bf16[5,4,32], index: 1, kind: input, shape index: {}]   ;;  %s3040_s2 = inlined_call_operand.vmem [shape: f32[1,32], index: 2, kind: input, shape index: {}]   ;;  %s3041_s3 = inlined_call_operand.vmem [shape: f32[1,32], index: 3, kind: input, shape index: {}]   ;;  %s3042_s4 = inlined_call_operand.vmem [shape: f32[2,256,32], index: 4, kind: output, shape index: {}]  }
   0x1   :  { %s2571_s17 = smov 0  }
   0x2 LB: > { %s26_s18 = sadd.s32 1, %s2536_s16  ;;  %p1881_p0 = scmp.ge.s32.totalorder %s2540_s17, 1  ;;  %s2540_s17 = sphi %s2571_s17, %s14_s17   ;;  %s2536_s16 = sphi %s2569_s16, %s3044_s16   ;;  %s2532_s15 = sphi %s2567_s15, %s3043_s15  }
   0x3   : > { %p28_p1 = scmp.ge.s32.totalorder %s26_s18, 2  ;;  %p176_p2 = scmp.lt.s32.totalorder %s2540_s17, 3 }
   0x5   : > { %s3046_s18 = smov (%p28_p1, %s26_s18), 0  ;;  %p177_p3 = pnand %p1881_p0, %p176_p2 }
   0x6   : > { %v1917_v0 = vld [vmem:[%s3039_s1 + $0x2] sm:$0x3] (!%p177_p3)  ;;  %vm374_vm0 = vcmask (!%p177_p3), 1041408   ;;  %v1982_v1 = vld [vmem:[%s3039_s1 + $0x4] sm:$0x3] (!%p177_p3)  ;;  %p206_p4 = scmp.lt.s32.totalorder (!%p177_p3), %s2532_s15, 1 }
   0x7   : > { %180 = sbr.rel (%p177_p3) target bundleno = 399 (0x18f), region = 36  ;;  %2487 = vmatprep.subr.msk.bf16.mxu1 (!%p177_p3), %vm374_vm0, %v1917_v0  ;;  %2489 = vmatprep.subr.msk.bf16.mxu0 (!%p177_p3), %vm374_vm0, %v1982_v1  ;;  %v376_v2 = vsel (!%p177_p3), %vm374_vm0, %v1917_v0, 0  ;;  %v2595_v3 = vsel (!%p177_p3), %vm374_vm0, %v1982_v1, 0  ;;  %v272_v4 = vld [vmem:[%s3039_s1] sm:$0x3] (!%p177_p3)  ;;  %vm325_vm1 = vcmask (!%p177_p3), 31744  }
   0x8   : > { %2188 = vmatpush3.bf16.msra.mxu1 (!%p177_p3), %v376_v2  ;;  %2256 = vmatpush3.bf16.msra.mxu0 (!%p177_p3), %v2595_v3  ;;  %v2031_v5 = vld [vmem:[%s3039_s1 + $0x6] sm:$0x3] (!%p177_p3)  ;;  %v588_v15 = vsel (!%p177_p3), %vm374_vm0, %v272_v4, 0  ;;  %v2634_v26 = vld [vmem:[%s3039_s1 + $0x8] sm:$0x3] (!%p177_p3)  ;;  %vm1749_vm2 = vcmask (!%p177_p3), 261120  }
   0x9   : > { %2488 = vmatprep.subr.msk.bf16.mxu1 (!%p177_p3), %vm374_vm0, %v272_v4  ;;  %2491 = vmatprep.subr.msk.bf16.mxu0 (!%p177_p3), %vm374_vm0, %v2031_v5  ;;  %v1148_v20 = vsel (!%p177_p3), %vm374_vm0, %v2031_v5, 0 }
   0xe   : > { %s3048_s15 = smov (!%p206_p4, %s2532_s15), 1 }
   0xf   : > { %s2493_s27 = smul.u32 264, %s3048_s15  ;;  %s2101_s11 = sshll.u32 %s3048_s15, 8 }
  0x10   : > { %s2897_s14 = scalar_lea.vmem %s3042_s4, %s2101_s11 }
  0x11   : > { %s2612_s30 = scalar_lea.vmem %s3038_s0, %s2493_s27 }
  0x12   : > { %v1885_v6 = vld [vmem:[%s2612_s30 + $0x1] sm:$0xff]  ;;  %v1886_v7 = vld [vmem:[%s2612_s30 + $0x9] sm:$0xff]  ;;  %v1887_v11 = vld [vmem:[%s2612_s30 + $0x11] sm:$0xff] }
  0x13   : > { %v1950_v8 = vld [vmem:[%s2612_s30 + $0x2] sm:$0xff]  ;;  %v307_v9 = vpack.c.bf16 %v1886_v7, %v1885_v6  ;;  %v1951_v10 = vld [vmem:[%s2612_s30 + $0xa] sm:$0xff]  ;;  %v1888_v12 = vld [vmem:[%s2612_s30 + $0x19] sm:$0xff] }
  0x14   : > { %v785_v13 = vpack.c.bf16 %v1951_v10, %v1950_v8  ;;  %v308_v14 = vpack.c.bf16 %v1888_v12, %v1887_v11  ;;  %v1952_v16 = vld [vmem:[%s2612_s30 + $0x12] sm:$0xff]  ;;  %v1953_v17 = vld [vmem:[%s2612_s30 + $0x1a] sm:$0xff]  ;;  %v1890_v21 = vld [vmem:[%s2612_s30 + $0x29] sm:$0xff]  ;;  %v1444_v12 = vsel %vm374_vm0, %v2634_v26, 0 }
  0x15   : > { %v1889_v18 = vld [vmem:[%s2612_s30 + $0x21] sm:$0xff]  ;;  %2189 = vmatprep.mubr.msk.bf16.mxu1 %vm325_vm1, %v307_v9  ;;  %v786_v19 = vpack.c.bf16 %v1953_v17, %v1952_v16  ;;  %v1955_v23 = vld [vmem:[%s2612_s30 + $0x2a] sm:$0xff]  ;;  %v1892_v28 = vld [vmem:[%s2612_s30 + $0x39] sm:$0xff] }
  0x16   : > { %v1954_v22 = vld [vmem:[%s2612_s30 + $0x22] sm:$0xff]  ;;  %2257 = vmatprep.mubr.msk.bf16.mxu0 %vm325_vm1, %v785_v13  ;;  %2190 = vmatmul.mubr.msk.bf16.vlgmr.msra.gmra.mrb[0].mxu1 %vm325_vm1, %v308_v14  ;;  %v309_v24 = vpack.c.bf16 %v1890_v21, %v1889_v18  ;;  %v1891_v27 = vld [vmem:[%s2612_s30 + $0x31] sm:$0xff]  ;;  %v1957_v30 = vld [vmem:[%s2612_s30 + $0x3a] sm:$0xff] }
  0x17   : > { %v787_v25 = vpack.c.bf16 %v1955_v23, %v1954_v22  ;;  %2222 = vmatpush3.bf16.msra.mxu1 %v588_v15  ;;  %2258 = vmatmul.mubr.msk.bf16.vlgmr.msra.gmra.mrb[0].mxu0 %vm325_vm1, %v786_v19  ;;  %v1956_v29 = vld [vmem:[%s2612_s30 + $0x32] sm:$0xff]  ;;  %v1893_v31 = vld [vmem:[%s2612_s30 + $0x41] sm:$0xff]  ;;  %v1894_v32 = vld [vmem:[%s2612_s30 + $0x49] sm:$0xff]  ;;  %v310_v35 = vpack.c.bf16 %v1892_v28, %v1891_v27 }
  0x18   : > { %2290 = vmatpush3.bf16.msra.mxu0 %v1148_v20  ;;  %2193 = vmatprep.mubr.msk.bf16.mxu1 %vm325_vm1, %v309_v24  ;;  %v1958_v33 = vld [vmem:[%s2612_s30 + $0x42] sm:$0xff]  ;;  %v1959_v34 = vld [vmem:[%s2612_s30 + $0x4a] sm:$0xff]  ;;  %v788_v36 = vpack.c.bf16 %v1957_v30, %v1956_v29  ;;  %v311_v37 = vpack.c.bf16 %v1894_v32, %v1893_v31  ;;  %v1896_v40 = vld [vmem:[%s2612_s30 + $0x59] sm:$0xff] }
  0x19   : > { %2261 = vmatprep.mubr.msk.bf16.mxu0 %vm325_vm1, %v787_v25  ;;  %2492 = vmatprep.subr.msk.bf16.mxu0 %vm374_vm0, %v2634_v26  ;;  %v789_v38 = vpack.c.bf16 %v1959_v34, %v1958_v33  ;;  %v1895_v39 = vld [vmem:[%s2612_s30 + $0x51] sm:$0xff]  ;;  %v1961_v42 = vld [vmem:[%s2612_s30 + $0x5a] sm:$0xff]  ;;  %v1898_v44 = vld [vmem:[%s2612_s30 + $0x69] sm:$0xff] }
  0x1a   : > { %2490 = vmatprep.subr.msk.bf16.mxu1 %vm374_vm0, %v1982_v1  ;;  %v1960_v41 = vld [vmem:[%s2612_s30 + $0x52] sm:$0xff]  ;;  %v1897_v43 = vld [vmem:[%s2612_s30 + $0x61] sm:$0xff]  ;;  %v1963_v46 = vld [vmem:[%s2612_s30 + $0x6a] sm:$0xff]  ;;  %v312_v47 = vpack.c.bf16 %v1896_v40, %v1895_v39 }
  0x1b   : > { %v1962_v45 = vld [vmem:[%s2612_s30 + $0x62] sm:$0xff]  ;;  %v790_v48 = vpack.c.bf16 %v1961_v42, %v1960_v41  ;;  %v313_v49 = vpack.c.bf16 %v1898_v44, %v1897_v43  ;;  %v1899_v51 = vld [vmem:[%s2612_s30 + $0x71] sm:$0xff]  ;;  %v1900_v52 = vld [vmem:[%s2612_s30 + $0x79] sm:$0xff] }
  0x1c   : > { %v791_v50 = vpack.c.bf16 %v1963_v46, %v1962_v45  ;;  %v1964_v53 = vld [vmem:[%s2612_s30 + $0x72] sm:$0xff]  ;;  %v1965_v54 = vld [vmem:[%s2612_s30 + $0x7a] sm:$0xff]  ;;  %v1902_v56 = vld [vmem:[%s2612_s30 + $0x89] sm:$0xff]  ;;  %v314_v59 = vpack.c.bf16 %v1900_v52, %v1899_v51 }
  0x1d   : > { %v1901_v55 = vld [vmem:[%s2612_s30 + $0x81] sm:$0xff]  ;;  %v2000_v58 = vld [vmem:[%s2612_s30 + $0xb] sm:$0xff]  ;;  %v792_v60 = vpack.c.bf16 %v1965_v54, %v1964_v53  ;;  %v1904_v0 = vld [vmem:[%s2612_s30 + $0x99] sm:$0xff] }
  0x1e   : > { %2194 = vmatmul.mubr.msk.bf16.gmra.mrb[4].mxu1 %vm325_vm1, %v310_v35  ;;  %v1999_v57 = vld [vmem:[%s2612_s30 + $0x3] sm:$0xff]  ;;  %v315_v61 = vpack.c.bf16 %v1902_v56, %v1901_v55  ;;  %v1903_v63 = vld [vmem:[%s2612_s30 + $0x91] sm:$0xff]  ;;  %v2002_v2 = vld [vmem:[%s2612_s30 + $0x1b] sm:$0xff] }
  0x1f   : > { %2262 = vmatmul.mubr.msk.bf16.gmra.mrb[4].mxu0 %vm325_vm1, %v788_v36  ;;  %2197 = vmatprep.mubr.msk.bf16.mxu1 %vm325_vm1, %v311_v37  ;;  %v1081_v62 = vpack.c.bf16 %v2000_v58, %v1999_v57  ;;  %v2001_v1 = vld [vmem:[%s2612_s30 + $0x13] sm:$0xff]  ;;  %v1905_v4 = vld [vmem:[%s2612_s30 + $0xa1] sm:$0xff]  ;;  %v1906_v5 = vld [vmem:[%s2612_s30 + $0xa9] sm:$0xff]  ;;  %v316_v8 = vpack.c.bf16 %v1904_v0, %v1903_v63 }
  0x20   : > { %2265 = vmatprep.mubr.msk.bf16.mxu0 %vm325_vm1, %v789_v38  ;;  %v2003_v6 = vld [vmem:[%s2612_s30 + $0x23] sm:$0xff]  ;;  %v2004_v7 = vld [vmem:[%s2612_s30 + $0x2b] sm:$0xff]  ;;  %v1082_v9 = vpack.c.bf16 %v2002_v2, %v2001_v1  ;;  %v317_v10 = vpack.c.bf16 %v1906_v5, %v1905_v4  ;;  %v1908_v14 = vld [vmem:[%s2612_s30 + $0xb9] sm:$0xff] }
  0x21   : > { %v1083_v11 = vpack.c.bf16 %v2004_v7, %v2003_v6  ;;  %v1907_v13 = vld [vmem:[%s2612_s30 + $0xb1] sm:$0xff]  ;;  %v2006_v16 = vld [vmem:[%s2612_s30 + $0x3b] sm:$0xff]  ;;  %v1910_v18 = vld [vmem:[%s2612_s30 + $0xc9] sm:$0xff] }
  0x22   : > { %v2005_v15 = vld [vmem:[%s2612_s30 + $0x33] sm:$0xff]  ;;  %v1909_v17 = vld [vmem:[%s2612_s30 + $0xc1] sm:$0xff]  ;;  %v2008_v20 = vld [vmem:[%s2612_s30 + $0x4b] sm:$0xff]  ;;  %v318_v21 = vpack.c.bf16 %v1908_v14, %v1907_v13 }
  0x23   : > { %v2007_v19 = vld [vmem:[%s2612_s30 + $0x43] sm:$0xff]  ;;  %v1084_v22 = vpack.c.bf16 %v2006_v16, %v2005_v15  ;;  %v319_v23 = vpack.c.bf16 %v1910_v18, %v1909_v17  ;;  %v1911_v25 = vld [vmem:[%s2612_s30 + $0xd1] sm:$0xff]  ;;  %v1912_v26 = vld [vmem:[%s2612_s30 + $0xd9] sm:$0xff] }
  0x24   : > { %v1085_v24 = vpack.c.bf16 %v2008_v20, %v2007_v19  ;;  %v2009_v27 = vld [vmem:[%s2612_s30 + $0x53] sm:$0xff]  ;;  %v2010_v28 = vld [vmem:[%s2612_s30 + $0x5b] sm:$0xff]  ;;  %v1914_v30 = vld [vmem:[%s2612_s30 + $0xe9] sm:$0xff]  ;;  %v320_v33 = vpack.c.bf16 %v1912_v26, %v1911_v25 }
  0x25   : > { %v1913_v29 = vld [vmem:[%s2612_s30 + $0xe1] sm:$0xff]  ;;  %v2012_v32 = vld [vmem:[%s2612_s30 + $0x6b] sm:$0xff]  ;;  %v1086_v34 = vpack.c.bf16 %v2010_v28, %v2009_v27  ;;  %v1916_v38 = vld [vmem:[%s2612_s30 + $0xf9] sm:$0xff] }
  0x26   : > { %2198 = vmatmul.mubr.msk.bf16.gmra.mrb[8].mxu1 %vm325_vm1, %v312_v47  ;;  %v2011_v31 = vld [vmem:[%s2612_s30 + $0x63] sm:$0xff]  ;;  %v321_v35 = vpack.c.bf16 %v1914_v30, %v1913_v29  ;;  %v1915_v37 = vld [vmem:[%s2612_s30 + $0xf1] sm:$0xff]  ;;  %v2014_v40 = vld [vmem:[%s2612_s30 + $0x7b] sm:$0xff] }
  0x27   : > { %2266 = vmatmul.mubr.msk.bf16.gmra.mrb[8].mxu0 %vm325_vm1, %v790_v48  ;;  %2201 = vmatprep.mubr.msk.bf16.mxu1 %vm325_vm1, %v313_v49  ;;  %v1087_v36 = vpack.c.bf16 %v2012_v32, %v2011_v31  ;;  %v2013_v39 = vld [vmem:[%s2612_s30 + $0x73] sm:$0xff]  ;;  %v224_v41 = vld [vmem:[%s2612_s30] sm:$0xff]  ;;  %v225_v42 = vld [vmem:[%s2612_s30 + $0x8] sm:$0xff]  ;;  %v322_v45 = vpack.c.bf16 %v1916_v38, %v1915_v37 }
  0x28   : > { %2269 = vmatprep.mubr.msk.bf16.mxu0 %vm325_vm1, %v791_v50  ;;  %v2015_v43 = vld [vmem:[%s2612_s30 + $0x83] sm:$0xff]  ;;  %v2016_v44 = vld [vmem:[%s2612_s30 + $0x8b] sm:$0xff]  ;;  %v1088_v46 = vpack.c.bf16 %v2014_v40, %v2013_v39  ;;  %v256_v47 = vpack.c.bf16 %v225_v42, %v224_v41  ;;  %v227_v50 = vld [vmem:[%s2612_s30 + $0x18] sm:$0xff] }
  0x29   : > { %v1089_v48 = vpack.c.bf16 %v2016_v44, %v2015_v43  ;;  %v226_v49 = vld [vmem:[%s2612_s30 + $0x10] sm:$0xff]  ;;  %v2018_v52 = vld [vmem:[%s2612_s30 + $0x9b] sm:$0xff]  ;;  %v229_v54 = vld [vmem:[%s2612_s30 + $0x28] sm:$0xff] }
  0x2a   : > { %v2017_v51 = vld [vmem:[%s2612_s30 + $0x93] sm:$0xff]  ;;  %v228_v53 = vld [vmem:[%s2612_s30 + $0x20] sm:$0xff]  ;;  %v2020_v56 = vld [vmem:[%s2612_s30 + $0xab] sm:$0xff]  ;;  %v257_v57 = vpack.c.bf16 %v227_v50, %v226_v49 }
  0x2b   : > { %v2019_v55 = vld [vmem:[%s2612_s30 + $0xa3] sm:$0xff]  ;;  %v1090_v58 = vpack.c.bf16 %v2018_v52, %v2017_v51  ;;  %v2021_v63 = vld [vmem:[%s2612_s30 + $0xb3] sm:$0xff]  ;;  %v2022_v0 = vld [vmem:[%s2612_s30 + $0xbb] sm:$0xff] }
  0x2c   : > { %v232_v1 = vld [vmem:[%s2612_s30 + $0x40] sm:$0xff]  ;;  %v233_v2 = vld [vmem:[%s2612_s30 + $0x48] sm:$0xff]  ;;  %v1092_v6 = vpack.c.bf16 %v2022_v0, %v2021_v63 }
  0x2d   : > { %v2023_v4 = vld [vmem:[%s2612_s30 + $0xc3] sm:$0xff]  ;;  %v260_v7 = vpack.c.bf16 %v233_v2, %v232_v1  ;;  %v2028_v16 = vld [vmem:[%s2612_s30 + $0xeb] sm:$0xff] }
  0x2e   : > { %2202 = vmatmul.mubr.msk.bf16.gmra.mrb[12].mxu1 %vm325_vm1, %v314_v59  ;;  %v258_v59 = vpack.c.bf16 %v229_v54, %v228_v53  ;;  %v236_v13 = vld [vmem:[%s2612_s30 + $0x60] sm:$0xff]  ;;  %v237_v14 = vld [vmem:[%s2612_s30 + $0x68] sm:$0xff] }
  0x2f   : > { %2270 = vmatmul.mubr.msk.bf16.gmra.mrb[12].mxu0 %vm325_vm1, %v792_v60  ;;  %2205 = vmatprep.mubr.msk.bf16.mxu1 %vm325_vm1, %v315_v61  ;;  %v1091_v60 = vpack.c.bf16 %v2020_v56, %v2019_v55  ;;  %v230_v61 = vld [vmem:[%s2612_s30 + $0x30] sm:$0xff]  ;;  %v2027_v15 = vld [vmem:[%s2612_s30 + $0xe3] sm:$0xff]  ;;  %v262_v19 = vpack.c.bf16 %v237_v14, %v236_v13 }
  0x30   : > { %2291 = vmatprep.mubr.msk.bf16.mxu0 %vm325_vm1, %v1081_v62  ;;  %v231_v62 = vld [vmem:[%s2612_s30 + $0x38] sm:$0xff]  ;;  %v1095_v20 = vpack.c.bf16 %v2028_v16, %v2027_v15  ;;  %v240_v25 = vld [vmem:[%s2612_s30 + $0x80] sm:$0xff]  ;;  %v241_v26 = vld [vmem:[%s2612_s30 + $0x88] sm:$0xff] }
  0x31   : > { %v259_v5 = vpack.c.bf16 %v231_v62, %v230_v61  ;;  %v2048_v27 = vld [vmem:[%s2612_s30 + $0x4] sm:$0xff]  ;;  %v2049_v28 = vld [vmem:[%s2612_s30 + $0xc] sm:$0xff]  ;;  %v264_v31 = vpack.c.bf16 %v241_v26, %v240_v25 }
  0x32   : > { %v1377_v32 = vpack.c.bf16 %v2049_v28, %v2048_v27  ;;  %v244_v37 = vld [vmem:[%s2612_s30 + $0xa0] sm:$0xff]  ;;  %v245_v38 = vld [vmem:[%s2612_s30 + $0xa8] sm:$0xff] }
  0x33   : > { %v2052_v39 = vld [vmem:[%s2612_s30 + $0x24] sm:$0xff]  ;;  %v2053_v40 = vld [vmem:[%s2612_s30 + $0x2c] sm:$0xff]  ;;  %v266_v43 = vpack.c.bf16 %v245_v38, %v244_v37 }
  0x34   : > { %v1379_v44 = vpack.c.bf16 %v2053_v40, %v2052_v39  ;;  %v248_v49 = vld [vmem:[%s2612_s30 + $0xc0] sm:$0xff]  ;;  %v249_v50 = vld [vmem:[%s2612_s30 + $0xc8] sm:$0xff] }
  0x35   : > { %v2056_v51 = vld [vmem:[%s2612_s30 + $0x44] sm:$0xff]  ;;  %v2057_v52 = vld [vmem:[%s2612_s30 + $0x4c] sm:$0xff]  ;;  %v268_v55 = vpack.c.bf16 %v249_v50, %v248_v49 }
  0x36   : > { %2206 = vmatmul.mubr.msk.bf16.gmra.mrb[16].mxu1 %vm325_vm1, %v316_v8  ;;  %v1381_v56 = vpack.c.bf16 %v2057_v52, %v2056_v51  ;;  %v252_v61 = vld [vmem:[%s2612_s30 + $0xe0] sm:$0xff]  ;;  %v253_v62 = vld [vmem:[%s2612_s30 + $0xe8] sm:$0xff] }
  0x37   : > { %2292 = vmatmul.mubr.msk.bf16.vlgmr.msra.gmra.mrb[0].mxu0 %vm325_vm1, %v1082_v9  ;;  %2209 = vmatprep.mubr.msk.bf16.mxu1 %vm325_vm1, %v317_v10  ;;  %v234_v9 = vld [vmem:[%s2612_s30 + $0x50] sm:$0xff]  ;;  %v235_v10 = vld [vmem:[%s2612_s30 + $0x58] sm:$0xff]  ;;  %v2060_v63 = vld [vmem:[%s2612_s30 + $0x64] sm:$0xff] }
  0x38   : > { %2324 = vmatpush3.bf16.msra.mxu0 %v1444_v12  ;;  %2295 = vmatprep.mubr.msk.bf16.mxu0 %vm325_vm1, %v1083_v11  ;;  %v2025_v11 = vld [vmem:[%s2612_s30 + $0xd3] sm:$0xff]  ;;  %v2026_v12 = vld [vmem:[%s2612_s30 + $0xdb] sm:$0xff]  ;;  %v261_v17 = vpack.c.bf16 %v235_v10, %v234_v9  ;;  %v1967_v10 = vld [vmem:[%s2612_s30 + $0x8a] sm:$0xff] }
  0x39   : > { %v1094_v18 = vpack.c.bf16 %v2026_v12, %v2025_v11  ;;  %v2061_v0 = vld [vmem:[%s2612_s30 + $0x6c] sm:$0xff]  ;;  %v1966_v9 = vld [vmem:[%s2612_s30 + $0x82] sm:$0xff] }
  0x3a   : > { %v2064_v11 = vld [vmem:[%s2612_s30 + $0x84] sm:$0xff]  ;;  %v2065_v12 = vld [vmem:[%s2612_s30 + $0x8c] sm:$0xff]  ;;  %v793_v15 = vpack.c.bf16 %v1967_v10, %v1966_v9 }
  0x3b   : > { %v1385_v16 = vpack.c.bf16 %v2065_v12, %v2064_v11  ;;  %v2882_v12 = vld [vmem:[%s3040_s2] ss:$0 sm:$0xff] }
  0x3e   : > { %2210 = vmatmul.mubr.msk.bf16.gmra.mrb[20].mxu1 %vm325_vm1, %v318_v21  ;;  %v238_v21 = vld [vmem:[%s2612_s30 + $0x70] sm:$0xff] }
  0x3f   : > { %2296 = vmatmul.mubr.msk.bf16.gmra.mrb[4].mxu0 %vm325_vm1, %v1084_v22  ;;  %2213 = vmatprep.mubr.msk.bf16.mxu1 %vm325_vm1, %v319_v23  ;;  %v239_v22 = vld [vmem:[%s2612_s30 + $0x78] sm:$0xff] }
  0x40   : > { %2299 = vmatprep.mubr.msk.bf16.mxu0 %vm325_vm1, %v1085_v24  ;;  %v2029_v23 = vld [vmem:[%s2612_s30 + $0xf3] sm:$0xff]  ;;  %v2030_v24 = vld [vmem:[%s2612_s30 + $0xfb] sm:$0xff]  ;;  %v263_v29 = vpack.c.bf16 %v239_v22, %v238_v21  ;;  %v1971_v22 = vld [vmem:[%s2612_s30 + $0xaa] sm:$0xff] }
  0x41   : > { %v1096_v30 = vpack.c.bf16 %v2030_v24, %v2029_v23  ;;  %v1970_v21 = vld [vmem:[%s2612_s30 + $0xa2] sm:$0xff]  ;;  %v2069_v24 = vld [vmem:[%s2612_s30 + $0xac] sm:$0xff] }
  0x42   : > { %v2068_v23 = vld [vmem:[%s2612_s30 + $0xa4] sm:$0xff]  ;;  %v795_v27 = vpack.c.bf16 %v1971_v22, %v1970_v21 }
  0x43   : > { %v1387_v28 = vpack.c.bf16 %v2069_v24, %v2068_v23 }
  0x46   : > { %2214 = vmatmul.mubr.msk.bf16.gmra.mrb[24].mxu1 %vm325_vm1, %v320_v33  ;;  %v242_v33 = vld [vmem:[%s2612_s30 + $0x90] sm:$0xff] }
  0x47   : > { %2300 = vmatmul.mubr.msk.bf16.gmra.mrb[8].mxu0 %vm325_vm1, %v1086_v34  ;;  %2217 = vmatprep.mubr.msk.bf16.mxu1 %vm325_vm1, %v321_v35  ;;  %v243_v34 = vld [vmem:[%s2612_s30 + $0x98] sm:$0xff] }
  0x48   : > { %2303 = vmatprep.mubr.msk.bf16.mxu0 %vm325_vm1, %v1087_v36  ;;  %v2050_v35 = vld [vmem:[%s2612_s30 + $0x14] sm:$0xff]  ;;  %v2051_v36 = vld [vmem:[%s2612_s30 + $0x1c] sm:$0xff]  ;;  %v265_v41 = vpack.c.bf16 %v243_v34, %v242_v33  ;;  %v1975_v34 = vld [vmem:[%s2612_s30 + $0xca] sm:$0xff] }
  0x49   : > { %v1378_v42 = vpack.c.bf16 %v2051_v36, %v2050_v35  ;;  %v1974_v33 = vld [vmem:[%s2612_s30 + $0xc2] sm:$0xff]  ;;  %v2073_v36 = vld [vmem:[%s2612_s30 + $0xcc] sm:$0xff] }
  0x4a   : > { %v2072_v35 = vld [vmem:[%s2612_s30 + $0xc4] sm:$0xff]  ;;  %v797_v39 = vpack.c.bf16 %v1975_v34, %v1974_v33 }
  0x4b   : > { %v1389_v40 = vpack.c.bf16 %v2073_v36, %v2072_v35 }
  0x4e   : > { %2218 = vmatmul.mubr.msk.bf16.gmra.mrb[28].mxu1 %vm325_vm1, %v322_v45  ;;  %v246_v45 = vld [vmem:[%s2612_s30 + $0xb0] sm:$0xff] }
  0x4f   : > { %2304 = vmatmul.mubr.msk.bf16.gmra.mrb[12].mxu0 %vm325_vm1, %v1088_v46  ;;  %2223 = vmatprep.mubr.msk.bf16.mxu1 %vm325_vm1, %v256_v47  ;;  %v247_v46 = vld [vmem:[%s2612_s30 + $0xb8] sm:$0xff] }
  0x50   : > { %2307 = vmatprep.mubr.msk.bf16.mxu0 %vm325_vm1, %v1089_v48  ;;  %v2054_v47 = vld [vmem:[%s2612_s30 + $0x34] sm:$0xff]  ;;  %v2055_v48 = vld [vmem:[%s2612_s30 + $0x3c] sm:$0xff]  ;;  %v267_v53 = vpack.c.bf16 %v247_v46, %v246_v45  ;;  %v1979_v46 = vld [vmem:[%s2612_s30 + $0xea] sm:$0xff] }
  0x51   : > { %v1380_v54 = vpack.c.bf16 %v2055_v48, %v2054_v47  ;;  %v1978_v45 = vld [vmem:[%s2612_s30 + $0xe2] sm:$0xff]  ;;  %v2077_v48 = vld [vmem:[%s2612_s30 + $0xec] sm:$0xff] }
  0x52   : > { %v2076_v47 = vld [vmem:[%s2612_s30 + $0xe4] sm:$0xff]  ;;  %v799_v51 = vpack.c.bf16 %v1979_v46, %v1978_v45 }
  0x53   : > { %v1391_v52 = vpack.c.bf16 %v2077_v48, %v2076_v47 }
  0x56   : > { %2224 = vmatmul.mubr.msk.bf16.vlgmr.msra.gmra.mrb[0].mxu1 %vm325_vm1, %v257_v57  ;;  %v250_v57 = vld [vmem:[%s2612_s30 + $0xd0] sm:$0xff] }
  0x57   : > { %2358 = vmatpush3.bf16.msra.mxu1 %v2595_v3  ;;  %2308 = vmatmul.mubr.msk.bf16.gmra.mrb[16].mxu0 %vm325_vm1, %v1090_v58  ;;  %v2024_v3 = vld [vmem:[%s2612_s30 + $0xcb] sm:$0xff]  ;;  %v251_v58 = vld [vmem:[%s2612_s30 + $0xd8] sm:$0xff] }
  0x58   : > { %2227 = vmatprep.mubr.msk.bf16.mxu1 %vm325_vm1, %v258_v59  ;;  %2311 = vmatprep.mubr.msk.bf16.mxu0 %vm325_vm1, %v1091_v60  ;;  %v1093_v8 = vpack.c.bf16 %v2024_v3, %v2023_v4  ;;  %v2058_v59 = vld [vmem:[%s2612_s30 + $0x54] sm:$0xff]  ;;  %v2059_v60 = vld [vmem:[%s2612_s30 + $0x5c] sm:$0xff]  ;;  %v269_v1 = vpack.c.bf16 %v251_v58, %v250_v57  ;;  %v270_v4 = vpack.c.bf16 %v253_v62, %v252_v61 }
  0x59   : > { %v1382_v2 = vpack.c.bf16 %v2059_v60, %v2058_v59  ;;  %v1383_v3 = vpack.c.bf16 %v2061_v0, %v2060_v63 }
  0x5e   : > { %2228 = vmatmul.mubr.msk.bf16.gmra.mrb[4].mxu1 %vm325_vm1, %v259_v5  ;;  %v254_v5 = vld [vmem:[%s2612_s30 + $0xf0] sm:$0xff] }
  0x5f   : > { %2312 = vmatmul.mubr.msk.bf16.gmra.mrb[20].mxu0 %vm325_vm1, %v1092_v6  ;;  %2231 = vmatprep.mubr.msk.bf16.mxu1 %vm325_vm1, %v260_v7  ;;  %v255_v6 = vld [vmem:[%s2612_s30 + $0xf8] sm:$0xff] }
  0x60   : > { %2315 = vmatprep.mubr.msk.bf16.mxu0 %vm325_vm1, %v1093_v8  ;;  %v2062_v7 = vld [vmem:[%s2612_s30 + $0x74] sm:$0xff]  ;;  %v2063_v8 = vld [vmem:[%s2612_s30 + $0x7c] sm:$0xff]  ;;  %v271_v13 = vpack.c.bf16 %v255_v6, %v254_v5 }
  0x61   : > { %v1384_v14 = vpack.c.bf16 %v2063_v8, %v2062_v7 }
  0x66   : > { %2232 = vmatmul.mubr.msk.bf16.gmra.mrb[8].mxu1 %vm325_vm1, %v261_v17  ;;  %v1968_v17 = vld [vmem:[%s2612_s30 + $0x92] sm:$0xff] }
  0x67   : > { %2316 = vmatmul.mubr.msk.bf16.gmra.mrb[24].mxu0 %vm325_vm1, %v1094_v18  ;;  %2235 = vmatprep.mubr.msk.bf16.mxu1 %vm325_vm1, %v262_v19  ;;  %v1969_v18 = vld [vmem:[%s2612_s30 + $0x9a] sm:$0xff] }
  0x68   : > { %2319 = vmatprep.mubr.msk.bf16.mxu0 %vm325_vm1, %v1095_v20  ;;  %v2066_v19 = vld [vmem:[%s2612_s30 + $0x94] sm:$0xff]  ;;  %v2067_v20 = vld [vmem:[%s2612_s30 + $0x9c] sm:$0xff]  ;;  %v794_v25 = vpack.c.bf16 %v1969_v18, %v1968_v17 }
  0x69   : > { %v1386_v26 = vpack.c.bf16 %v2067_v20, %v2066_v19 }
  0x6e   : > { %2236 = vmatmul.mubr.msk.bf16.gmra.mrb[12].mxu1 %vm325_vm1, %v263_v29  ;;  %v1972_v29 = vld [vmem:[%s2612_s30 + $0xb2] sm:$0xff] }
  0x6f   : > { %2320 = vmatmul.mubr.msk.bf16.gmra.mrb[28].mxu0 %vm325_vm1, %v1096_v30  ;;  %2239 = vmatprep.mubr.msk.bf16.mxu1 %vm325_vm1, %v264_v31  ;;  %v1973_v30 = vld [vmem:[%s2612_s30 + $0xba] sm:$0xff] }
  0x70   : > { %2325 = vmatprep.mubr.msk.bf16.mxu0 %vm325_vm1, %v1377_v32  ;;  %v2070_v31 = vld [vmem:[%s2612_s30 + $0xb4] sm:$0xff]  ;;  %v2071_v32 = vld [vmem:[%s2612_s30 + $0xbc] sm:$0xff]  ;;  %v796_v37 = vpack.c.bf16 %v1973_v30, %v1972_v29 }
  0x71   : > { %v1388_v38 = vpack.c.bf16 %v2071_v32, %v2070_v31 }
  0x76   : > { %2240 = vmatmul.mubr.msk.bf16.gmra.mrb[16].mxu1 %vm325_vm1, %v265_v41  ;;  %v1976_v41 = vld [vmem:[%s2612_s30 + $0xd2] sm:$0xff] }
  0x77   : > { %2326 = vmatmul.mubr.msk.bf16.vlgmr.msra.gmra.mrb[0].mxu0 %vm325_vm1, %v1378_v42  ;;  %2243 = vmatprep.mubr.msk.bf16.mxu1 %vm325_vm1, %v266_v43  ;;  %v1977_v42 = vld [vmem:[%s2612_s30 + $0xda] sm:$0xff] }
  0x78   : > { %2329 = vmatprep.mubr.msk.bf16.mxu0 %vm325_vm1, %v1379_v44  ;;  %v2074_v43 = vld [vmem:[%s2612_s30 + $0xd4] sm:$0xff]  ;;  %v2075_v44 = vld [vmem:[%s2612_s30 + $0xdc] sm:$0xff]  ;;  %v798_v49 = vpack.c.bf16 %v1977_v42, %v1976_v41 }
  0x79   : > { %v1390_v50 = vpack.c.bf16 %v2075_v44, %v2074_v43 }
  0x7e   : > { %2244 = vmatmul.mubr.msk.bf16.gmra.mrb[20].mxu1 %vm325_vm1, %v267_v53  ;;  %v1980_v53 = vld [vmem:[%s2612_s30 + $0xf2] sm:$0xff] }
  0x7f   : > { %2330 = vmatmul.mubr.msk.bf16.gmra.mrb[4].mxu0 %vm325_vm1, %v1380_v54  ;;  %2247 = vmatprep.mubr.msk.bf16.mxu1 %vm325_vm1, %v268_v55  ;;  %v1981_v54 = vld [vmem:[%s2612_s30 + $0xfa] sm:$0xff] }
  0x80   : > { %2333 = vmatprep.mubr.msk.bf16.mxu0 %vm325_vm1, %v1381_v56  ;;  %v2078_v55 = vld [vmem:[%s2612_s30 + $0xf4] sm:$0xff]  ;;  %v2079_v56 = vld [vmem:[%s2612_s30 + $0xfc] sm:$0xff]  ;;  %v800_v57 = vpack.c.bf16 %v1981_v54, %v1980_v53 }
  0x81   : > { %v1392_v58 = vpack.c.bf16 %v2079_v56, %v2078_v55 }
  0x86   : > { %2248 = vmatmul.mubr.msk.bf16.gmra.mrb[24].mxu1 %vm325_vm1, %v269_v1 }
  0x87   : > { %2334 = vmatmul.mubr.msk.bf16.gmra.mrb[8].mxu0 %vm325_vm1, %v1382_v2  ;;  %2251 = vmatprep.mubr.msk.bf16.mxu1 %vm325_vm1, %v270_v4 }
  0x88   : > { %2337 = vmatprep.mubr.msk.bf16.mxu0 %vm325_vm1, %v1383_v3 }
  0x8e   : > { %2252 = vmatmul.mubr.msk.bf16.gmra.mrb[28].mxu1 %vm325_vm1, %v271_v13 }
  0x8f   : > { %2338 = vmatmul.mubr.msk.bf16.gmra.mrb[12].mxu0 %vm325_vm1, %v1384_v14  ;;  %2273 = vmatprep.mubr.msk.bf16.mxu1 %vm325_vm1, %v793_v15  ;;  %v2887_v15 = vld [vmem:[%s3041_s3] ss:$0 sm:$0xff] }
  0x90   : > { %2341 = vmatprep.mubr.msk.bf16.mxu0 %vm325_vm1, %v1385_v16 }
  0x96   : > { %2274 = vmatmul.mubr.msk.bf16.vlgmr.msra.gmra.mrb[16].mxu1 %vm325_vm1, %v794_v25 }
  0x97   : > { %2342 = vmatmul.mubr.msk.bf16.gmra.mrb[16].mxu0 %vm325_vm1, %v1386_v26  ;;  %2277 = vmatprep.mubr.msk.bf16.mxu1 %vm325_vm1, %v795_v27 }
  0x98   : > { %2345 = vmatprep.mubr.msk.bf16.mxu0 %vm325_vm1, %v1387_v28 }
  0x9e   : > { %2278 = vmatmul.mubr.msk.bf16.gmra.mrb[20].mxu1 %vm325_vm1, %v796_v37 }
  0x9f   : > { %2346 = vmatmul.mubr.msk.bf16.gmra.mrb[20].mxu0 %vm325_vm1, %v1388_v38  ;;  %2281 = vmatprep.mubr.msk.bf16.mxu1 %vm325_vm1, %v797_v39 }
  0xa0   : > { %2349 = vmatprep.mubr.msk.bf16.mxu0 %vm325_vm1, %v1389_v40 }
  0xa6   : > { %2282 = vmatmul.mubr.msk.bf16.gmra.mrb[24].mxu1 %vm325_vm1, %v798_v49 }
  0xa7   : > { %2350 = vmatmul.mubr.msk.bf16.gmra.mrb[24].mxu0 %vm325_vm1, %v1390_v50  ;;  %2285 = vmatprep.mubr.msk.bf16.mxu1 %vm325_vm1, %v799_v51 }
  0xa8   : > { %2353 = vmatprep.mubr.msk.bf16.mxu0 %vm325_vm1, %v1391_v52 }
  0xae   : > { %2286 = vmatmul.mubr.msk.bf16.gmra.mrb[28].mxu1 %vm325_vm1, %v800_v57 }
  0xaf   : > { %2354 = vmatmul.mubr.msk.bf16.gmra.mrb[28].mxu0 %vm325_vm1, %v1392_v58 }
 0x129   : > { %v2225_v59 = vpop.f32.mrb[0].mxu1 }
 0x12a   : > { %v624_v60 = vpop.f32.mrb[1].mxu1 }
 0x12b   : > { %v2226_v61 = vpop.f32.mrb[2].mxu1 }
 0x12c   : > { %v627_v62 = vpop.f32.mrb[3].mxu1 }
 0x131   : > { %v2229_v63 = vpop.f32.mrb[4].mxu1 }
 0x132   : > { %v640_v0 = vpop.f32.mrb[5].mxu1 }
 0x133   : > { %v2230_v1 = vpop.f32.mrb[6].mxu1 }
 0x134   : > { %v643_v2 = vpop.f32.mrb[7].mxu1 }
 0x139   : > { %v2233_v4 = vpop.f32.mrb[8].mxu1 }
 0x13a   : > { %v656_v3 = vpop.f32.mrb[9].mxu1 }
 0x13b   : > { %v2867_v5 = vpop.f32.mrb[10].mxu1 }
 0x13c   : > { %v2869_v6 = vpop.f32.mrb[11].mxu1 }
 0x141   : > { %v2871_v7 = vpop.f32.mrb[12].mxu1 }
 0x142   : > { %v2873_v8 = vpop.f32.mrb[13].mxu1 }
 0x143   : > { %v2875_v9 = vpop.f32.mrb[14].mxu1 }
 0x144   : > { %v2877_v10 = vpop.f32.mrb[15].mxu1 }
 0x14a   : > { %v2327_v11 = vpop.f32.mrb[0].mxu0 }
 0x14b   : > { %v2359_v13 = vadd.f32 %v2327_v11, %v2225_v59  ;;  %v1480_v14 = vpop.f32.mrb[1].mxu0 }
 0x14c   : > { %v2360_v16 = vadd.f32 %v1480_v14, %v624_v60  ;;  %v2328_v17 = vpop.f32.mrb[2].mxu0 }
 0x14d   : > { %v1648_v18 = vmul.f32 %v2359_v13, %v2882_v12  ;;  %v2361_v19 = vadd.f32 %v2328_v17, %v2226_v61  ;;  %v1483_v20 = vpop.f32.mrb[3].mxu0 }
 0x14e   : > { %v1646_v21 = vmul.f32 %v2360_v16, %v2882_v12  ;;  %v2362_v22 = vadd.f32 %v1483_v20, %v627_v62 }
 0x14f   : > { %v1687_v23 = vadd.f32 %v2887_v15, %v1648_v18  ;;  %v1649_v24 = vmul.f32 %v2361_v19, %v2882_v12 }
 0x150   : > { %v1685_v25 = vadd.f32 %v2887_v15, %v1646_v21  ;;  %v1647_v26 = vmul.f32 %v2362_v22, %v2882_v12 }
 0x151   : > { %v1719_v27 = vmax.f32 %v1687_v23, 0.0  ;;  %v1688_v28 = vadd.f32 %v2887_v15, %v1649_v24 }
 0x152   : > { %v1717_v29 = vmax.f32 %v1685_v25, 0.0  ;;  %v1686_v30 = vadd.f32 %v2887_v15, %v1647_v26  ;;  %v2331_v31 = vpop.f32.mrb[4].mxu0 }
 0x153   : > { %1752 = vst.msk [vmem:[%s2897_s14 + $0x10] sm:$0xff] %vm1749_vm2, %v1719_v27  ;;  %v1720_v32 = vmax.f32 %v1688_v28, 0.0  ;;  %v2363_v33 = vadd.f32 %v2331_v31, %v2229_v63  ;;  %v1496_v34 = vpop.f32.mrb[5].mxu0 }
 0x154   : > { %1750 = vst.msk [vmem:[%s2897_s14] sm:$0xff] %vm1749_vm2, %v1717_v29  ;;  %v1718_v35 = vmax.f32 %v1686_v30, 0.0  ;;  %v2364_v36 = vadd.f32 %v1496_v34, %v640_v0  ;;  %v2332_v37 = vpop.f32.mrb[6].mxu0 }
 0x155   : > { %1753 = vst.msk [vmem:[%s2897_s14 + $0x18] sm:$0xff] %vm1749_vm2, %v1720_v32  ;;  %v1652_v38 = vmul.f32 %v2363_v33, %v2882_v12  ;;  %v2365_v39 = vadd.f32 %v2332_v37, %v2230_v1  ;;  %v1499_v40 = vpop.f32.mrb[7].mxu0 }
 0x156   : > { %1751 = vst.msk [vmem:[%s2897_s14 + $0x8] sm:$0xff] %vm1749_vm2, %v1718_v35  ;;  %v1650_v41 = vmul.f32 %v2364_v36, %v2882_v12  ;;  %v2366_v42 = vadd.f32 %v1499_v40, %v643_v2 }
 0x157   : > { %v1691_v43 = vadd.f32 %v2887_v15, %v1652_v38  ;;  %v1653_v44 = vmul.f32 %v2365_v39, %v2882_v12 }
 0x158   : > { %v1689_v45 = vadd.f32 %v2887_v15, %v1650_v41  ;;  %v1651_v46 = vmul.f32 %v2366_v42, %v2882_v12 }
 0x159   : > { %v1723_v47 = vmax.f32 %v1691_v43, 0.0  ;;  %v1692_v48 = vadd.f32 %v2887_v15, %v1653_v44 }
 0x15a   : > { %v1721_v49 = vmax.f32 %v1689_v45, 0.0  ;;  %v1690_v50 = vadd.f32 %v2887_v15, %v1651_v46  ;;  %v2335_v51 = vpop.f32.mrb[8].mxu0 }
 0x15b   : > { %1756 = vst.msk [vmem:[%s2897_s14 + $0x30] sm:$0xff] %vm1749_vm2, %v1723_v47  ;;  %v1724_v52 = vmax.f32 %v1692_v48, 0.0  ;;  %v2367_v53 = vadd.f32 %v2335_v51, %v2233_v4  ;;  %v1512_v54 = vpop.f32.mrb[9].mxu0 }
 0x15c   : > { %1754 = vst.msk [vmem:[%s2897_s14 + $0x20] sm:$0xff] %vm1749_vm2, %v1721_v49  ;;  %v1722_v55 = vmax.f32 %v1690_v50, 0.0  ;;  %v2368_v56 = vadd.f32 %v1512_v54, %v656_v3  ;;  %v2336_v57 = vpop.f32.mrb[10].mxu0 }
 0x15d   : > { %1757 = vst.msk [vmem:[%s2897_s14 + $0x38] sm:$0xff] %vm1749_vm2, %v1724_v52  ;;  %v1656_v58 = vmul.f32 %v2367_v53, %v2882_v12  ;;  %v2369_v59 = vadd.f32 %v2336_v57, %v2867_v5  ;;  %v1515_v60 = vpop.f32.mrb[11].mxu0 }
 0x15e   : > { %1755 = vst.msk [vmem:[%s2897_s14 + $0x28] sm:$0xff] %vm1749_vm2, %v1722_v55  ;;  %v1654_v61 = vmul.f32 %v2368_v56, %v2882_v12  ;;  %v2370_v62 = vadd.f32 %v1515_v60, %v2869_v6 }
 0x15f   : > { %v1695_v63 = vadd.f32 %v2887_v15, %v1656_v58  ;;  %v1657_v0 = vmul.f32 %v2369_v59, %v2882_v12 }
 0x160   : > { %v1693_v1 = vadd.f32 %v2887_v15, %v1654_v61  ;;  %v1655_v2 = vmul.f32 %v2370_v62, %v2882_v12 }
 0x161   : > { %v1727_v4 = vmax.f32 %v1695_v63, 0.0  ;;  %v1696_v3 = vadd.f32 %v2887_v15, %v1657_v0 }
 0x162   : > { %v1725_v5 = vmax.f32 %v1693_v1, 0.0  ;;  %v1694_v11 = vadd.f32 %v2887_v15, %v1655_v2  ;;  %v2339_v13 = vpop.f32.mrb[12].mxu0 }
 0x163   : > { %1760 = vst.msk [vmem:[%s2897_s14 + $0x50] sm:$0xff] %vm1749_vm2, %v1727_v4  ;;  %v1728_v6 = vmax.f32 %v1696_v3, 0.0  ;;  %v2371_v14 = vadd.f32 %v2339_v13, %v2871_v7  ;;  %v1528_v16 = vpop.f32.mrb[13].mxu0 }
 0x164   : > { %1758 = vst.msk [vmem:[%s2897_s14 + $0x40] sm:$0xff] %vm1749_vm2, %v1725_v5  ;;  %v1726_v17 = vmax.f32 %v1694_v11, 0.0  ;;  %v2372_v18 = vadd.f32 %v1528_v16, %v2873_v8  ;;  %v2340_v19 = vpop.f32.mrb[14].mxu0 }
 0x165   : > { %1761 = vst.msk [vmem:[%s2897_s14 + $0x58] sm:$0xff] %vm1749_vm2, %v1728_v6  ;;  %v1660_v20 = vmul.f32 %v2371_v14, %v2882_v12  ;;  %v2373_v21 = vadd.f32 %v2340_v19, %v2875_v9  ;;  %v1531_v22 = vpop.f32.mrb[15].mxu0 }
 0x166   : > { %1759 = vst.msk [vmem:[%s2897_s14 + $0x48] sm:$0xff] %vm1749_vm2, %v1726_v17  ;;  %v1658_v23 = vmul.f32 %v2372_v18, %v2882_v12  ;;  %v2374_v7 = vadd.f32 %v1531_v22, %v2877_v10 }
 0x167   : > { %v1699_v24 = vadd.f32 %v2887_v15, %v1660_v20  ;;  %v1661_v8 = vmul.f32 %v2373_v21, %v2882_v12 }
 0x168   : > { %v1697_v25 = vadd.f32 %v2887_v15, %v1658_v23  ;;  %v1659_v26 = vmul.f32 %v2374_v7, %v2882_v12 }
 0x169   : > { %v1731_v27 = vmax.f32 %v1699_v24, 0.0  ;;  %v1700_v9 = vadd.f32 %v2887_v15, %v1661_v8  ;;  %v2275_v28 = vpop.f32.mrb[16].mxu1 }
 0x16a   : > { %v1729_v29 = vmax.f32 %v1697_v25, 0.0  ;;  %v1698_v30 = vadd.f32 %v2887_v15, %v1659_v26  ;;  %v2343_v31 = vpop.f32.mrb[16].mxu0  ;;  %v952_v10 = vpop.f32.mrb[17].mxu1 }
 0x16b   : > { %1764 = vst.msk [vmem:[%s2897_s14 + $0x70] sm:$0xff] %vm1749_vm2, %v1731_v27  ;;  %v1732_v32 = vmax.f32 %v1700_v9, 0.0  ;;  %v2375_v33 = vadd.f32 %v2343_v31, %v2275_v28  ;;  %v1544_v34 = vpop.f32.mrb[17].mxu0  ;;  %v2276_v35 = vpop.f32.mrb[18].mxu1 }
 0x16c   : > { %1762 = vst.msk [vmem:[%s2897_s14 + $0x60] sm:$0xff] %vm1749_vm2, %v1729_v29  ;;  %v1730_v36 = vmax.f32 %v1698_v30, 0.0  ;;  %v2376_v37 = vadd.f32 %v1544_v34, %v952_v10  ;;  %v2344_v38 = vpop.f32.mrb[18].mxu0  ;;  %v955_v39 = vpop.f32.mrb[19].mxu1 }
 0x16d   : > { %1765 = vst.msk [vmem:[%s2897_s14 + $0x78] sm:$0xff] %vm1749_vm2, %v1732_v32  ;;  %v1664_v40 = vmul.f32 %v2375_v33, %v2882_v12  ;;  %v2377_v41 = vadd.f32 %v2344_v38, %v2276_v35  ;;  %v1547_v42 = vpop.f32.mrb[19].mxu0 }
 0x16e   : > { %1763 = vst.msk [vmem:[%s2897_s14 + $0x68] sm:$0xff] %vm1749_vm2, %v1730_v36  ;;  %v1662_v43 = vmul.f32 %v2376_v37, %v2882_v12  ;;  %v2378_v44 = vadd.f32 %v1547_v42, %v955_v39 }
 0x16f   : > { %v1703_v45 = vadd.f32 %v2887_v15, %v1664_v40  ;;  %v1665_v46 = vmul.f32 %v2377_v41, %v2882_v12 }
 0x170   : > { %v1701_v47 = vadd.f32 %v2887_v15, %v1662_v43  ;;  %v1663_v48 = vmul.f32 %v2378_v44, %v2882_v12 }
 0x171   : > { %v1735_v49 = vmax.f32 %v1703_v45, 0.0  ;;  %v1704_v50 = vadd.f32 %v2887_v15, %v1665_v46  ;;  %v2279_v51 = vpop.f32.mrb[20].mxu1 }
 0x172   : > { %v1733_v52 = vmax.f32 %v1701_v47, 0.0  ;;  %v1702_v53 = vadd.f32 %v2887_v15, %v1663_v48  ;;  %v2347_v54 = vpop.f32.mrb[20].mxu0  ;;  %v968_v55 = vpop.f32.mrb[21].mxu1 }
 0x173   : > { %1768 = vst.msk [vmem:[%s2897_s14 + $0x90] sm:$0xff] %vm1749_vm2, %v1735_v49  ;;  %v1736_v56 = vmax.f32 %v1704_v50, 0.0  ;;  %v2379_v57 = vadd.f32 %v2347_v54, %v2279_v51  ;;  %v1560_v58 = vpop.f32.mrb[21].mxu0  ;;  %v2280_v59 = vpop.f32.mrb[22].mxu1 }
 0x174   : > { %1766 = vst.msk [vmem:[%s2897_s14 + $0x80] sm:$0xff] %vm1749_vm2, %v1733_v52  ;;  %v1734_v60 = vmax.f32 %v1702_v53, 0.0  ;;  %v2380_v61 = vadd.f32 %v1560_v58, %v968_v55  ;;  %v2348_v62 = vpop.f32.mrb[22].mxu0  ;;  %v971_v63 = vpop.f32.mrb[23].mxu1 }
 0x175   : > { %1769 = vst.msk [vmem:[%s2897_s14 + $0x98] sm:$0xff] %vm1749_vm2, %v1736_v56  ;;  %v1668_v0 = vmul.f32 %v2379_v57, %v2882_v12  ;;  %v2381_v1 = vadd.f32 %v2348_v62, %v2280_v59  ;;  %v1563_v2 = vpop.f32.mrb[23].mxu0 }
 0x176   : > { %1767 = vst.msk [vmem:[%s2897_s14 + $0x88] sm:$0xff] %vm1749_vm2, %v1734_v60  ;;  %v1666_v4 = vmul.f32 %v2380_v61, %v2882_v12  ;;  %v2382_v3 = vadd.f32 %v1563_v2, %v971_v63 }
 0x177   : > { %v1707_v5 = vadd.f32 %v2887_v15, %v1668_v0  ;;  %v1669_v11 = vmul.f32 %v2381_v1, %v2882_v12 }
 0x178   : > { %v1705_v13 = vadd.f32 %v2887_v15, %v1666_v4  ;;  %v1667_v6 = vmul.f32 %v2382_v3, %v2882_v12 }
 0x179   : > { %v1739_v14 = vmax.f32 %v1707_v5, 0.0  ;;  %v1708_v16 = vadd.f32 %v2887_v15, %v1669_v11  ;;  %v2283_v17 = vpop.f32.mrb[24].mxu1 }
 0x17a   : > { %v1737_v18 = vmax.f32 %v1705_v13, 0.0  ;;  %v1706_v19 = vadd.f32 %v2887_v15, %v1667_v6  ;;  %v2351_v20 = vpop.f32.mrb[24].mxu0  ;;  %v984_v21 = vpop.f32.mrb[25].mxu1 }
 0x17b   : > { %1772 = vst.msk [vmem:[%s2897_s14 + $0xb0] sm:$0xff] %vm1749_vm2, %v1739_v14  ;;  %v1740_v22 = vmax.f32 %v1708_v16, 0.0  ;;  %v2383_v23 = vadd.f32 %v2351_v20, %v2283_v17  ;;  %v1576_v7 = vpop.f32.mrb[25].mxu0  ;;  %v2284_v24 = vpop.f32.mrb[26].mxu1 }
 0x17c   : > { %1770 = vst.msk [vmem:[%s2897_s14 + $0xa0] sm:$0xff] %vm1749_vm2, %v1737_v18  ;;  %v1738_v8 = vmax.f32 %v1706_v19, 0.0  ;;  %v2384_v25 = vadd.f32 %v1576_v7, %v984_v21  ;;  %v2352_v26 = vpop.f32.mrb[26].mxu0  ;;  %v987_v27 = vpop.f32.mrb[27].mxu1 }
 0x17d   : > { %1773 = vst.msk [vmem:[%s2897_s14 + $0xb8] sm:$0xff] %vm1749_vm2, %v1740_v22  ;;  %v1672_v9 = vmul.f32 %v2383_v23, %v2882_v12  ;;  %v2385_v28 = vadd.f32 %v2352_v26, %v2284_v24  ;;  %v1579_v29 = vpop.f32.mrb[27].mxu0 }
 0x17e   : > { %1771 = vst.msk [vmem:[%s2897_s14 + $0xa8] sm:$0xff] %vm1749_vm2, %v1738_v8  ;;  %v1670_v30 = vmul.f32 %v2384_v25, %v2882_v12  ;;  %v2386_v31 = vadd.f32 %v1579_v29, %v987_v27 }
 0x17f   : > { %v1711_v10 = vadd.f32 %v2887_v15, %v1672_v9  ;;  %v1673_v32 = vmul.f32 %v2385_v28, %v2882_v12 }
 0x180   : > { %v1709_v33 = vadd.f32 %v2887_v15, %v1670_v30  ;;  %v1671_v34 = vmul.f32 %v2386_v31, %v2882_v12 }
 0x181   : > { %v1743_v35 = vmax.f32 %v1711_v10, 0.0  ;;  %v1712_v36 = vadd.f32 %v2887_v15, %v1673_v32  ;;  %v2287_v37 = vpop.f32.mrb[28].mxu1 }
 0x182   : > { %v1741_v38 = vmax.f32 %v1709_v33, 0.0  ;;  %v1710_v39 = vadd.f32 %v2887_v15, %v1671_v34  ;;  %v2355_v40 = vpop.f32.mrb[28].mxu0  ;;  %v1000_v41 = vpop.f32.mrb[29].mxu1 }
 0x183   : > { %1776 = vst.msk [vmem:[%s2897_s14 + $0xd0] sm:$0xff] %vm1749_vm2, %v1743_v35  ;;  %v1744_v42 = vmax.f32 %v1712_v36, 0.0  ;;  %v2387_v43 = vadd.f32 %v2355_v40, %v2287_v37  ;;  %v1592_v44 = vpop.f32.mrb[29].mxu0  ;;  %v2288_v45 = vpop.f32.mrb[30].mxu1 }
 0x184   : > { %1774 = vst.msk [vmem:[%s2897_s14 + $0xc0] sm:$0xff] %vm1749_vm2, %v1741_v38  ;;  %v1742_v46 = vmax.f32 %v1710_v39, 0.0  ;;  %v2388_v47 = vadd.f32 %v1592_v44, %v1000_v41  ;;  %v2356_v48 = vpop.f32.mrb[30].mxu0  ;;  %v1003_v49 = vpop.f32.mrb[31].mxu1 }
 0x185   : > { %1777 = vst.msk [vmem:[%s2897_s14 + $0xd8] sm:$0xff] %vm1749_vm2, %v1744_v42  ;;  %v1676_v50 = vmul.f32 %v2387_v43, %v2882_v12  ;;  %v2389_v51 = vadd.f32 %v2356_v48, %v2288_v45  ;;  %v1595_v52 = vpop.f32.mrb[31].mxu0 }
 0x186   : > { %1775 = vst.msk [vmem:[%s2897_s14 + $0xc8] sm:$0xff] %vm1749_vm2, %v1742_v46  ;;  %v1674_v53 = vmul.f32 %v2388_v47, %v2882_v12  ;;  %v2390_v54 = vadd.f32 %v1595_v52, %v1003_v49 }
 0x187   : > { %v1715_v55 = vadd.f32 %v2887_v15, %v1676_v50  ;;  %v1677_v56 = vmul.f32 %v2389_v51, %v2882_v12 }
 0x188   : > { %v1713_v57 = vadd.f32 %v2887_v15, %v1674_v53  ;;  %v1675_v58 = vmul.f32 %v2390_v54, %v2882_v12 }
 0x189   : > { %v1747_v59 = vmax.f32 %v1715_v55, 0.0  ;;  %v1716_v60 = vadd.f32 %v2887_v15, %v1677_v56 }
 0x18a   : > { %v1745_v61 = vmax.f32 %v1713_v57, 0.0  ;;  %v1714_v62 = vadd.f32 %v2887_v15, %v1675_v58 }
 0x18b   : > { %1780 = vst.msk [vmem:[%s2897_s14 + $0xf0] sm:$0xff] %vm1749_vm2, %v1747_v59  ;;  %v1748_v63 = vmax.f32 %v1716_v60, 0.0 }
 0x18c   : > { %1778 = vst.msk [vmem:[%s2897_s14 + $0xe0] sm:$0xff] %vm1749_vm2, %v1745_v61  ;;  %v1746_v0 = vmax.f32 %v1714_v62, 0.0 }
 0x18d   : > { %1781 = vst.msk [vmem:[%s2897_s14 + $0xf8] sm:$0xff] %vm1749_vm2, %v1748_v63 }
 0x18e   : > { %1779 = vst.msk [vmem:[%s2897_s14 + $0xe8] sm:$0xff] %vm1749_vm2, %v1746_v0 }
 0x18f PF: > { %s14_s17 = sadd.s32 1, %s2540_s17   ;;  %s3043_s15 = smov %s2536_s16 }
 0x190   : > { %p11_p5 = scmp.ge.s32.totalorder %s14_s17, 4   ;;  %s3044_s16 = smov %s3046_s18 }
 0x192   :  { %13 = sbr.rel (!%p11_p5) target bundleno = 2 (0x2), region = 75 }

// kernel: resnet1d_forward.16
= control target key start
LH: loop header
LB: loop body
LE: loop exit
PB: predicated region body
PF: predicated region fallthrough
CT: control target
= control target key end

     0   :  { %s995_s18 = smov 0   ;;  %s997_s19 = smov 0   ;;  %s1125_s0 = inlined_call_operand.vmem [shape: f32[2,66,32], index: 0, kind: input, shape index: {}]   ;;  %s1126_s1 = inlined_call_operand.vmem [shape: bf16[3,32,32], index: 1, kind: input, shape index: {}]   ;;  %s1127_s2 = inlined_call_operand.vmem [shape: f32[1,32], index: 2, kind: input, shape index: {}]   ;;  %s1128_s3 = inlined_call_operand.vmem [shape: f32[1,32], index: 3, kind: input, shape index: {}]   ;;  %s1129_s4 = inlined_call_operand.vmem [shape: f32[2,64,32], index: 4, kind: input, shape index: {}]   ;;  %s1130_s5 = inlined_call_operand.vmem [shape: f32[2,64,32], index: 5, kind: output, shape index: {}]  }
   0x1   :  { %s999_s20 = smov 0  }
   0x2 LB: > { %s27_s21 = sadd.s32 1, %s959_s19  ;;  %p782_p0 = scmp.ge.s32.totalorder %s963_s20, 1  ;;  %s963_s20 = sphi %s999_s20, %s15_s20   ;;  %s959_s19 = sphi %s997_s19, %s1132_s19   ;;  %s955_s18 = sphi %s995_s18, %s1131_s18  }
   0x3   : > { %p29_p1 = scmp.ge.s32.totalorder %s27_s21, 2  ;;  %p218_p2 = scmp.lt.s32.totalorder %s963_s20, 3 }
   0x5   : > { %s1134_s21 = smov (%p29_p1, %s27_s21), 0  ;;  %p219_p3 = pnand %p782_p0, %p218_p2 }
   0x6   : > { %v935_v0 = vld [vmem:[%s1126_s1 + $0x10] sm:$0xff] (!%p219_p3)   ;;  %p259_p4 = scmp.lt.s32.totalorder (!%p219_p3), %s955_s18, 1  ;;  %v936_v1 = vld [vmem:[%s1126_s1] sm:$0xff] (!%p219_p3)   ;;  %v937_v2 = vld [vmem:[%s1126_s1 + $0x18] sm:$0xff] (!%p219_p3)   ;;  %vm334_vm0 = vcmask (!%p219_p3), 261120  }
   0x7   : > { %222 = sbr.rel (%p219_p3) target bundleno = 268 (0x10c), region = 40  ;;  %854 = vmatprep.subr.bf16.mxu1 (!%p219_p3), %v935_v0  ;;  %866 = vmatprep.subr.bf16.mxu0 (!%p219_p3), %v936_v1  ;;  %v938_v3 = vld [vmem:[%s1126_s1 + $0x8] sm:$0xff] (!%p219_p3)   ;;  %v939_v4 = vld [vmem:[%s1126_s1 + $0x20] sm:$0xff] (!%p219_p3)  }
   0x8   : > { %855 = vmatpush3.bf16.msra.mxu1 (!%p219_p3), %v935_v0  ;;  %867 = vmatpush3.bf16.msra.mxu0 (!%p219_p3), %v936_v1  ;;  %v940_v18 = vld [vmem:[%s1126_s1 + $0x28] sm:$0xff] (!%p219_p3)   ;;  %v830_v47 = vld [vmem:[%s1127_s2] ss:$0 sm:$0xff] (!%p219_p3) }
   0x9   : > { %856 = vmatprep.subr.bf16.mxu1 (!%p219_p3), %v937_v2  ;;  %868 = vmatprep.subr.bf16.mxu0 (!%p219_p3), %v938_v3  ;;  %v831_v50 = vld [vmem:[%s1128_s3] ss:$0 sm:$0xff] (!%p219_p3) }
   0xc   : > { %857 = vmatpush3.bf16.msra.mxu1 (!%p219_p3), %v937_v2  ;;  %869 = vmatpush3.bf16.msra.mxu0 (!%p219_p3), %v938_v3 }
   0xd   : > { %890 = vmatprep.subr.bf16.mxu1 (!%p219_p3), %v936_v1  ;;  %878 = vmatprep.subr.bf16.mxu0 (!%p219_p3), %v939_v4 }
   0xe   : > { %s1136_s18 = smov (!%p259_p4, %s955_s18), 1 }
   0xf   : > { %s910_s30 = smul.u32 72, %s1136_s18  ;;  %s834_s13 = sshll.u32 %s1136_s18, 6 }
  0x10   : > { %s1082_s22 = scalar_lea.vmem %s1129_s4, %s834_s13  ;;  %s1092_s26 = scalar_lea.vmem %s1130_s5, %s834_s13 }
  0x11   : > { %s1034_s10 = scalar_lea.vmem %s1125_s0, %s910_s30  ;;  %v649_v56 = vld [vmem:[%s1082_s22 + $0x10] sm:$0xff]  ;;  %v647_v60 = vld [vmem:[%s1082_s22] sm:$0xff]  ;;  %v650_v63 = vld [vmem:[%s1082_s22 + $0x18] sm:$0xff] }
  0x12   : > { %v788_v5 = vld [vmem:[%s1034_s10 + $0x1] sm:$0xff]  ;;  %v789_v6 = vld [vmem:[%s1034_s10 + $0x9] sm:$0xff]  ;;  %v790_v10 = vld [vmem:[%s1034_s10 + $0x11] sm:$0xff] }
  0x13   : > { %v287_v7 = vld [vmem:[%s1034_s10] sm:$0xff]  ;;  %v313_v8 = vpack.c.bf16 %v789_v6, %v788_v5  ;;  %v288_v9 = vld [vmem:[%s1034_s10 + $0x8] sm:$0xff]  ;;  %v289_v14 = vld [vmem:[%s1034_s10 + $0x10] sm:$0xff] }
  0x14   : > { %v791_v11 = vld [vmem:[%s1034_s10 + $0x19] sm:$0xff]  ;;  %v295_v12 = vpack.c.bf16 %v288_v9, %v287_v7  ;;  %v792_v16 = vld [vmem:[%s1034_s10 + $0x21] sm:$0xff]  ;;  %v793_v19 = vld [vmem:[%s1034_s10 + $0x29] sm:$0xff] }
  0x15   : > { %v314_v13 = vpack.c.bf16 %v791_v11, %v790_v10  ;;  %v290_v15 = vld [vmem:[%s1034_s10 + $0x18] sm:$0xff]  ;;  %858 = vmatprep.mubr.msk.bf16.mxu1 %vm334_vm0, %v313_v8  ;;  %v315_v20 = vpack.c.bf16 %v793_v19, %v792_v16  ;;  %v812_v21 = vld [vmem:[%s1034_s10 + $0x2] sm:$0xff]  ;;  %v813_v22 = vld [vmem:[%s1034_s10 + $0xa] sm:$0xff] }
  0x16   : > { %v296_v17 = vpack.c.bf16 %v290_v15, %v289_v14  ;;  %870 = vmatprep.mubr.msk.bf16.mxu0 %vm334_vm0, %v295_v12  ;;  %v794_v23 = vld [vmem:[%s1034_s10 + $0x31] sm:$0xff]  ;;  %v795_v24 = vld [vmem:[%s1034_s10 + $0x39] sm:$0xff]  ;;  %v511_v25 = vpack.c.bf16 %v813_v22, %v812_v21  ;;  %v292_v27 = vld [vmem:[%s1034_s10 + $0x28] sm:$0xff] }
  0x17   : > { %859 = vmatmul.mubr.msk.bf16.vlgmr.msra.gmra.mrb[0].mxu1 %vm334_vm0, %v314_v13  ;;  %v291_v26 = vld [vmem:[%s1034_s10 + $0x20] sm:$0xff]  ;;  %v316_v28 = vpack.c.bf16 %v795_v24, %v794_v23  ;;  %v814_v30 = vld [vmem:[%s1034_s10 + $0x12] sm:$0xff]  ;;  %v817_v33 = vld [vmem:[%s1034_s10 + $0x2a] sm:$0xff] }
  0x18   : > { %871 = vmatmul.mubr.msk.bf16.vlgmr.msra.gmra.mrb[0].mxu0 %vm334_vm0, %v296_v17  ;;  %892 = vmatpush3.bf16.msra.mxu1 %v936_v1  ;;  %v297_v29 = vpack.c.bf16 %v292_v27, %v291_v26  ;;  %v815_v31 = vld [vmem:[%s1034_s10 + $0x1a] sm:$0xff]  ;;  %v816_v32 = vld [vmem:[%s1034_s10 + $0x22] sm:$0xff]  ;;  %v293_v36 = vld [vmem:[%s1034_s10 + $0x30] sm:$0xff] }
  0x19   : > { %879 = vmatpush3.bf16.msra.mxu0 %v939_v4  ;;  %862 = vmatprep.mubr.msk.bf16.mxu1 %vm334_vm0, %v315_v20  ;;  %v512_v34 = vpack.c.bf16 %v815_v31, %v814_v30  ;;  %v513_v35 = vpack.c.bf16 %v817_v33, %v816_v32  ;;  %v294_v37 = vld [vmem:[%s1034_s10 + $0x38] sm:$0xff]  ;;  %v653_v20 = vld [vmem:[%s1082_s22 + $0x30] sm:$0xff]  ;;  %v651_v24 = vld [vmem:[%s1082_s22 + $0x20] sm:$0xff] }
  0x1a   : > { %880 = vmatprep.subr.bf16.mxu0 %v940_v18  ;;  %891 = vmatprep.subr.bf16.mxu1 %v938_v3  ;;  %v818_v38 = vld [vmem:[%s1034_s10 + $0x32] sm:$0xff]  ;;  %v819_v39 = vld [vmem:[%s1034_s10 + $0x3a] sm:$0xff]  ;;  %v298_v40 = vpack.c.bf16 %v294_v37, %v293_v36  ;;  %v652_v31 = vld [vmem:[%s1082_s22 + $0x28] sm:$0xff] }
  0x1b   : > { %882 = vmatprep.mubr.msk.bf16.mxu0 %vm334_vm0, %v511_v25  ;;  %v514_v41 = vpack.c.bf16 %v819_v39, %v818_v38  ;;  %v654_v27 = vld [vmem:[%s1082_s22 + $0x38] sm:$0xff] }
  0x1c   : > { %893 = vmatpush3.bf16.msra.mxu1 %v938_v3  ;;  %v648_v3 = vld [vmem:[%s1082_s22 + $0x8] sm:$0xff] }
  0x1d   : > { %881 = vmatpush3.bf16.msra.mxu0 %v940_v18 }
  0x1f   : > { %863 = vmatmul.mubr.msk.bf16.gmra.mrb[4].mxu1 %vm334_vm0, %v316_v28 }
  0x20   : > { %874 = vmatprep.mubr.msk.bf16.mxu1 %vm334_vm0, %v297_v29 }
  0x24   : > { %883 = vmatmul.mubr.msk.bf16.vlgmr.msra.gmra.mrb[0].mxu0 %vm334_vm0, %v512_v34 }
  0x25   : > { %886 = vmatprep.mubr.msk.bf16.mxu0 %vm334_vm0, %v513_v35 }
  0x2b   : > { %875 = vmatmul.mubr.msk.bf16.vlgmr.msra.gmra.mrb[4].mxu1 %vm334_vm0, %v298_v40 }
  0x2c   : > { %887 = vmatmul.mubr.msk.bf16.gmra.mrb[4].mxu0 %vm334_vm0, %v514_v41 }
  0xea   : > { %v860_v42 = vpop.f32.mrb[0].mxu1 }
  0xeb   : > { %v381_v43 = vpop.f32.mrb[1].mxu1 }
  0xec   : > { %v861_v44 = vpop.f32.mrb[2].mxu1 }
  0xed   : > { %v384_v45 = vpop.f32.mrb[3].mxu1 }
  0xf7   : > { %v884_v46 = vpop.f32.mrb[0].mxu0 }
  0xf8   : > { %v894_v48 = vadd.f32 %v884_v46, %v860_v42  ;;  %v578_v49 = vpop.f32.mrb[1].mxu0 }
  0xf9   : > { %v895_v51 = vadd.f32 %v578_v49, %v381_v43  ;;  %v885_v52 = vpop.f32.mrb[2].mxu0 }
  0xfa   : > { %v626_v53 = vmul.f32 %v894_v48, %v830_v47  ;;  %v896_v54 = vadd.f32 %v885_v52, %v861_v44  ;;  %v581_v55 = vpop.f32.mrb[3].mxu0 }
  0xfb   : > { %v624_v57 = vmul.f32 %v895_v51, %v830_v47  ;;  %v897_v58 = vadd.f32 %v581_v55, %v384_v45 }
  0xfc   : > { %v641_v59 = vadd.f32 %v831_v50, %v626_v53  ;;  %v627_v61 = vmul.f32 %v896_v54, %v830_v47 }
  0xfd   : > { %v639_v62 = vadd.f32 %v831_v50, %v624_v57  ;;  %v625_v0 = vmul.f32 %v897_v58, %v830_v47 }
  0xfe   : > { %v657_v1 = vadd.f32 %v649_v56, %v641_v59  ;;  %v642_v2 = vadd.f32 %v831_v50, %v627_v61  ;;  %v876_v4 = vpop.f32.mrb[4].mxu1 }
  0xff   : > { %v655_v5 = vadd.f32 %v647_v60, %v639_v62  ;;  %v640_v6 = vadd.f32 %v831_v50, %v625_v0  ;;  %v888_v7 = vpop.f32.mrb[4].mxu0  ;;  %v486_v8 = vpop.f32.mrb[5].mxu1 }
 0x100   : > { %665 = vst.msk [vmem:[%s1092_s26 + $0x10] sm:$0xff] %vm334_vm0, %v657_v1  ;;  %v658_v9 = vadd.f32 %v650_v63, %v642_v2  ;;  %v898_v10 = vadd.f32 %v888_v7, %v876_v4  ;;  %v594_v11 = vpop.f32.mrb[5].mxu0  ;;  %v877_v12 = vpop.f32.mrb[6].mxu1 }
 0x101   : > { %663 = vst.msk [vmem:[%s1092_s26] sm:$0xff] %vm334_vm0, %v655_v5  ;;  %v656_v13 = vadd.f32 %v648_v3, %v640_v6  ;;  %v899_v14 = vadd.f32 %v594_v11, %v486_v8  ;;  %v889_v15 = vpop.f32.mrb[6].mxu0  ;;  %v489_v16 = vpop.f32.mrb[7].mxu1 }
 0x102   : > { %666 = vst.msk [vmem:[%s1092_s26 + $0x18] sm:$0xff] %vm334_vm0, %v658_v9  ;;  %v630_v17 = vmul.f32 %v898_v10, %v830_v47  ;;  %v900_v18 = vadd.f32 %v889_v15, %v877_v12  ;;  %v597_v19 = vpop.f32.mrb[7].mxu0 }
 0x103   : > { %664 = vst.msk [vmem:[%s1092_s26 + $0x8] sm:$0xff] %vm334_vm0, %v656_v13  ;;  %v628_v21 = vmul.f32 %v899_v14, %v830_v47  ;;  %v901_v22 = vadd.f32 %v597_v19, %v489_v16 }
 0x104   : > { %v645_v23 = vadd.f32 %v831_v50, %v630_v17  ;;  %v631_v25 = vmul.f32 %v900_v18, %v830_v47 }
 0x105   : > { %v643_v26 = vadd.f32 %v831_v50, %v628_v21  ;;  %v629_v28 = vmul.f32 %v901_v22, %v830_v47 }
 0x106   : > { %v661_v29 = vadd.f32 %v653_v20, %v645_v23  ;;  %v646_v30 = vadd.f32 %v831_v50, %v631_v25 }
 0x107   : > { %v659_v32 = vadd.f32 %v651_v24, %v643_v26  ;;  %v644_v33 = vadd.f32 %v831_v50, %v629_v28 }
 0x108   : > { %669 = vst.msk [vmem:[%s1092_s26 + $0x30] sm:$0xff] %vm334_vm0, %v661_v29  ;;  %v662_v34 = vadd.f32 %v654_v27, %v646_v30 }
 0x109   : > { %667 = vst.msk [vmem:[%s1092_s26 + $0x20] sm:$0xff] %vm334_vm0, %v659_v32  ;;  %v660_v35 = vadd.f32 %v652_v31, %v644_v33 }
 0x10a   : > { %670 = vst.msk [vmem:[%s1092_s26 + $0x38] sm:$0xff] %vm334_vm0, %v662_v34 }
 0x10b   : > { %668 = vst.msk [vmem:[%s1092_s26 + $0x28] sm:$0xff] %vm334_vm0, %v660_v35 }
 0x10c PF: > { %s15_s20 = sadd.s32 1, %s963_s20   ;;  %s1131_s18 = smov %s959_s19 }
 0x10d   : > { %p12_p5 = scmp.ge.s32.totalorder %s15_s20, 4   ;;  %s1132_s19 = smov %s1134_s21 }
 0x10f   :  { %14 = sbr.rel (!%p12_p5) target bundleno = 2 (0x2), region = 78 }

// kernel: resnet1d_forward.18
= control target key start
LH: loop header
LB: loop body
LE: loop exit
PB: predicated region body
PF: predicated region fallthrough
CT: control target
= control target key end

     0   :  { %s795_s21 = smov 0   ;;  %s797_s22 = smov 0   ;;  %s876_s0 = inlined_call_operand.vmem [shape: f32[2,16,128], index: 0, kind: input, shape index: {}]   ;;  %s877_s1 = inlined_call_operand.vmem [shape: f32[1,32], index: 1, kind: input, shape index: {}]   ;;  %s878_s2 = inlined_call_operand.vmem [shape: f32[1,32], index: 2, kind: input, shape index: {}]   ;;  %s879_s3 = inlined_call_operand.vmem [shape: bf16[3,32,32], index: 3, kind: input, shape index: {}]   ;;  %s880_s4 = inlined_call_operand.vmem [shape: f32[1,32], index: 4, kind: input, shape index: {}]   ;;  %s881_s5 = inlined_call_operand.vmem [shape: f32[1,32], index: 5, kind: input, shape index: {}]   ;;  %s882_s6 = inlined_call_operand.vmem [shape: f32[2,16,32], index: 6, kind: output, shape index: {}]  }
   0x1   :  { %s799_s23 = smov 0  }
   0x2 LB: > { %s28_s24 = sadd.s32 1, %s749_s22  ;;  %p627_p0 = scmp.ge.s32.totalorder %s753_s23, 1  ;;  %s753_s23 = sphi %s799_s23, %s16_s23   ;;  %s749_s22 = sphi %s797_s22, %s884_s22   ;;  %s745_s21 = sphi %s795_s21, %s883_s21  }
   0x3   : > { %p30_p1 = scmp.ge.s32.totalorder %s28_s24, 2  ;;  %p226_p2 = scmp.lt.s32.totalorder %s753_s23, 3 }
   0x5   : > { %s886_s24 = smov (%p30_p1, %s28_s24), 0  ;;  %p227_p3 = pnand %p627_p0, %p226_p2 }
   0x6   : > { %v632_v0 = vld [vmem:[%s877_s1] ss:$0 sm:$0xff] (!%p227_p3)  ;;  %s755_s29 = smov (!%p227_p3), 32   ;;  %p260_p4 = scmp.lt.s32.totalorder (!%p227_p3), %s745_s21, 1  ;;  %v756_v3 = vmov (!%p227_p3), 0.0   ;;  %v726_v4 = vld [vmem:[%s879_s3 + $0x8] sm:$0xff] (!%p227_p3)  }
   0x7   : > { %230 = sbr.rel (%p227_p3) target bundleno = 472 (0x1d8), region = 44  ;;  %v633_v1 = vld [vmem:[%s878_s2] ss:$0 sm:$0xff] (!%p227_p3)  ;;  %305 = vrot.lane.b32.xlu0 (!%p227_p3), %v632_v0, %s755_s29  ;;  %674 = vmatprep.subr.bf16.mxu0 (!%p227_p3), %v756_v3  ;;  %vm757_vm0 = vmmov (!%p227_p3), 0   ;;  %s758_s10 = smov (!%p227_p3), 64   ;;  %v728_v5 = vld [vmem:[%s879_s3 + $0x10] sm:$0xff] (!%p227_p3)  }
   0x8   : > { %310 = vrot.lane.b32.xlu1 (!%p227_p3), %v633_v1, %s755_s29  ;;  %v725_v2 = vld [vmem:[%s879_s3] sm:$0xff] (!%p227_p3)   ;;  %666 = vmatprep.subr.bf16.mxu1 (!%p227_p3), %v756_v3  ;;  %v729_v6 = vld [vmem:[%s879_s3 + $0x18] sm:$0xff] (!%p227_p3)   ;;  %vm338_vm1 = vcmask (!%p227_p3), 261120   ;;  %v730_v17 = vld [vmem:[%s879_s3 + $0x28] sm:$0xff] (!%p227_p3)   ;;  %s759_s27 = smov (!%p227_p3), 96  }
   0x9   : > { %675 = vmatpush3.bf16.msra.mxu0 (!%p227_p3), %v725_v2  ;;  %678 = vmatprep.mubr.msk.bf16.mxu0 (!%p227_p3), %vm757_vm0, %v756_v3  ;;  %v727_v15 = vld [vmem:[%s879_s3 + $0x20] sm:$0xff] (!%p227_p3)  }
   0xa   : > { %676 = vmatprep.subr.bf16.mxu0 (!%p227_p3), %v756_v3  ;;  %670 = vmatprep.mubr.msk.bf16.mxu1 (!%p227_p3), %vm757_vm0, %v756_v3  ;;  %v651_v43 = vld [vmem:[%s880_s4] ss:$0 sm:$0xff] (!%p227_p3) }
   0xb   : > { %439 = vrot.lane.b32.xlu0 (!%p227_p3), %v632_v0, %s758_s10  ;;  %667 = vmatpush3.bf16.msra.mxu1 (!%p227_p3), %v728_v5  ;;  %v652_v46 = vld [vmem:[%s881_s5] ss:$0 sm:$0xff] (!%p227_p3) }
   0xc   : > { %444 = vrot.lane.b32.xlu1 (!%p227_p3), %v633_v1, %s758_s10  ;;  %668 = vmatprep.subr.bf16.mxu1 (!%p227_p3), %v756_v3 }
   0xd   : > { %677 = vmatpush3.bf16.msra.mxu0 (!%p227_p3), %v726_v4 }
   0xe   : > { %s888_s21 = smov (!%p260_p4, %s745_s21), 1  ;;  %682 = vmatprep.subr.bf16.mxu0 %v756_v3 }
   0xf   : > { %s655_s11 = sshll.u32 %s888_s21, 4  ;;  %669 = vmatpush3.bf16.msra.mxu1 %v729_v6 }
  0x10   : > { %s264_s16 = scalar_lea.vmem %s876_s0, %s655_s11 }
  0x11   : > { %v278_v7 = vld [vmem:[%s264_s16] sm:$0xff]  ;;  %v279_v8 = vld [vmem:[%s264_s16 + $0x8] sm:$0xff] }
  0x12   : > { %v287_v9 = vmul.f32 %v632_v0, %v278_v7  ;;  %v288_v10 = vmul.f32 %v632_v0, %v279_v8 }
  0x14   : > { %v296_v11 = vadd.f32 %v633_v1, %v287_v9  ;;  %v297_v12 = vadd.f32 %v633_v1, %v288_v10 }
  0x16   : > { %v298_v13 = vmax.f32 %v296_v11, 0.0  ;;  %v299_v14 = vmax.f32 %v297_v12, 0.0 }
  0x18   : > { %v300_v16 = vpack.c.bf16 %v299_v14, %v298_v13 }
  0x1a   : > { %679 = vmatmul.mubr.msk.bf16.vlgmr.msra.gmra.mrb[0].mxu0 %vm338_vm1, %v300_v16 }
  0x1b   : > { %683 = vmatpush3.bf16.msra.mxu0 %v727_v15  ;;  %686 = vmatprep.mubr.msk.bf16.mxu0 %vm757_vm0, %v756_v3 }
  0x1c   : > { %684 = vmatprep.subr.bf16.mxu0 %v756_v3 }
  0x1f   : > { %685 = vmatpush3.bf16.msra.mxu0 %v730_v17 }
  0x79   : > { %v306_v18 = vpop.permute.xlu0 %305 }
  0x7a   : > { %v311_v19 = vpop.permute.xlu1 %310  ;;  %v308_v20 = vmul.f32 %v306_v18, %v278_v7  ;;  %v309_v21 = vmul.f32 %v306_v18, %v279_v8 }
  0x7c   : > { %v313_v22 = vadd.f32 %v311_v19, %v308_v20  ;;  %v314_v23 = vadd.f32 %v311_v19, %v309_v21 }
  0x7d   : > { %v440_v24 = vpop.permute.xlu0 %439 }
  0x7e   : > { %v445_v25 = vpop.permute.xlu1 %444  ;;  %v315_v26 = vmax.f32 %v313_v22, 0.0  ;;  %v316_v27 = vmax.f32 %v314_v23, 0.0  ;;  %v442_v28 = vmul.f32 %v440_v24, %v278_v7  ;;  %v443_v29 = vmul.f32 %v440_v24, %v279_v8 }
  0x80   : > { %v447_v30 = vadd.f32 %v445_v25, %v442_v28  ;;  %v448_v31 = vadd.f32 %v445_v25, %v443_v29  ;;  %v317_v32 = vpack.c.bf16 %v316_v27, %v315_v26 }
  0x82   : > { %v449_v33 = vmax.f32 %v447_v30, 0.0  ;;  %v450_v34 = vmax.f32 %v448_v31, 0.0  ;;  %324 = vrot.lane.b32.xlu0 %v317_v32, %s759_s27 }
  0x84   : > { %v451_v35 = vpack.c.bf16 %v450_v34, %v449_v33 }
  0x86   : > { %458 = vrot.lane.b32.xlu1 %v451_v35, %s758_s10  ;;  %s273_s10 = scalar_lea.vmem %s882_s6, %s655_s11 }
  0xf4   : > { %v325_v36 = vpop.permute.xlu0 %324 }
  0xf5   : > { %671 = vmatmul.mubr.msk.bf16.vlgmr.msra.gmra.mrb[0].mxu1 %vm338_vm1, %v325_v36 }
  0xf8   : > { %v459_v37 = vpop.permute.xlu1 %458 }
  0xf9   : > { %687 = vmatmul.mubr.msk.bf16.vlgmr.msra.gmra.mrb[0].mxu0 %vm338_vm1, %v459_v37 }
 0x1c8   : > { %v376_v38 = vpop.f32.mrb[0].mxu1 }
 0x1c9   : > { %v672_v39 = vpop.f32.mrb[1].mxu1 }
 0x1ca   : > { %v379_v40 = vpop.f32.mrb[2].mxu1 }
 0x1cb   : > { %v673_v41 = vpop.f32.mrb[3].mxu1 }
 0x1cc   : > { %v509_v42 = vpop.f32.mrb[0].mxu0 }
 0x1cd   : > { %v690_v44 = vadd.f32 %v509_v42, %v376_v38  ;;  %v688_v45 = vpop.f32.mrb[1].mxu0 }
 0x1ce   : > { %v512_v47 = vpop.f32.mrb[2].mxu0 }
 0x1cf   : > { %v525_v48 = vmul.f32 %v690_v44, %v651_v43  ;;  %v691_v49 = vadd.f32 %v512_v47, %v379_v40  ;;  %v689_v50 = vpop.f32.mrb[3].mxu0 }
 0x1d1   : > { %v534_v51 = vadd.f32 %v652_v46, %v525_v48  ;;  %v526_v52 = vmul.f32 %v691_v49, %v651_v43 }
 0x1d3   : > { %v536_v53 = vmax.f32 %v534_v51, 0.0  ;;  %v535_v54 = vadd.f32 %v652_v46, %v526_v52 }
 0x1d5   : > { %538 = vst.msk [vmem:[%s273_s10] sm:$0xff] %vm338_vm1, %v536_v53  ;;  %v537_v55 = vmax.f32 %v535_v54, 0.0 }
 0x1d7   : > { %539 = vst.msk [vmem:[%s273_s10 + $0x8] sm:$0xff] %vm338_vm1, %v537_v55 }
 0x1d8 PF: > { %s16_s23 = sadd.s32 1, %s753_s23   ;;  %s883_s21 = smov %s749_s22 }
 0x1d9   : > { %p13_p5 = scmp.ge.s32.totalorder %s16_s23, 4   ;;  %s884_s22 = smov %s886_s24 }
 0x1db   :  { %15 = sbr.rel (!%p13_p5) target bundleno = 2 (0x2), region = 77 }

// kernel: resnet1d_forward.17
= control target key start
LH: loop header
LB: loop body
LE: loop exit
PB: predicated region body
PF: predicated region fallthrough
CT: control target
= control target key end

     0   :  { %s351_s6 = smov 0   ;;  %s353_s7 = smov 0   ;;  %s384_s0 = inlined_call_operand.vmem [shape: f32[2,16,128], index: 0, kind: input, shape index: {}]   ;;  %s385_s1 = inlined_call_operand.vmem [shape: f32[2,16,32], index: 1, kind: output, shape index: {}]  }
   0x1   :  { %s355_s8 = smov 0  }
   0x2 LB: > { %s23_s9 = sadd.s32 1, %s332_s7  ;;  %p278_p0 = scmp.ge.s32.totalorder %s336_s8, 1  ;;  %s336_s8 = sphi %s355_s8, %s11_s8   ;;  %s332_s7 = sphi %s353_s7, %s387_s7   ;;  %s328_s6 = sphi %s351_s6, %s386_s6  }
   0x3   : > { %p25_p1 = scmp.ge.s32.totalorder %s23_s9, 2  ;;  %p108_p2 = scmp.lt.s32.totalorder %s336_s8, 3 }
   0x5   : > { %s389_s9 = smov (%p25_p1, %s23_s9), 0  ;;  %p109_p3 = pnand %p278_p0, %p108_p2 }
   0x6   : > { %p137_p4 = scmp.lt.s32.totalorder (!%p109_p3), %s328_s6, 1  ;;  %s338_s14 = smov (!%p109_p3), 64   ;;  %vm184_vm0 = vcmask (!%p109_p3), 261120  }
   0x7   : > { %112 = sbr.rel (%p109_p3) target bundleno = 144 (0x90), region = 24  ;;  %s339_s15 = smov (!%p109_p3), 96  }
   0x8   : > { %s340_s16 = smov (!%p109_p3), 32  }
   0xe   : > { %s391_s6 = smov (!%p137_p4, %s328_s6), 1 }
   0xf   : > { %s285_s10 = sshll.u32 %s391_s6, 4 }
  0x10   : > { %s144_s13 = scalar_lea.vmem %s384_s0, %s285_s10  ;;  %s154_s19 = scalar_lea.vmem %s385_s1, %s285_s10 }
  0x11   : > { %v156_v0 = vld [vmem:[%s144_s13] sm:$0xff]  ;;  %v157_v1 = vld [vmem:[%s144_s13 + $0x8] sm:$0xff] }
  0x12   : > { %168 = vrot.lane.b32.xlu1 %v156_v0, %s338_s14  ;;  %160 = vrot.lane.b32.xlu0 %v156_v0, %s339_s15 }
  0x16   : > { %170 = vrot.lane.b32.xlu1 %v157_v1, %s338_s14  ;;  %162 = vrot.lane.b32.xlu0 %v157_v1, %s339_s15 }
  0x1a   : > { %178 = vrot.lane.b32.xlu1 %v157_v1, %s340_s16  ;;  %176 = vrot.lane.b32.xlu0 %v156_v0, %s340_s16 }
  0x84   : > { %v169_v2 = vpop.permute.xlu1 %168  ;;  %v161_v3 = vpop.permute.xlu0 %160 }
  0x85   : > { %v166_v4 = vmax.f32 %v156_v0, %v161_v3 }
  0x87   : > { %v174_v9 = vmax.f32 %v166_v4, %v169_v2 }
  0x88   : > { %v171_v5 = vpop.permute.xlu1 %170  ;;  %v163_v6 = vpop.permute.xlu0 %162 }
  0x89   : > { %v167_v7 = vmax.f32 %v157_v1, %v163_v6 }
  0x8b   : > { %v175_v8 = vmax.f32 %v167_v7, %v171_v5 }
  0x8c   : > { %v179_v10 = vpop.permute.xlu1 %178  ;;  %v177_v11 = vpop.permute.xlu0 %176 }
  0x8d   : > { %v183_v12 = vmax.f32 %v175_v8, %v179_v10  ;;  %v182_v13 = vmax.f32 %v174_v9, %v177_v11 }
  0x8f   : > { %186 = vst.msk [vmem:[%s154_s19 + $0x8] sm:$0xff] %vm184_vm0, %v183_v12  ;;  %185 = vst.msk [vmem:[%s154_s19] sm:$0xff] %vm184_vm0, %v182_v13 }
  0x90 PF: > { %s11_s8 = sadd.s32 1, %s336_s8   ;;  %s386_s6 = smov %s332_s7 }
  0x91   : > { %p8_p5 = scmp.ge.s32.totalorder %s11_s8, 4   ;;  %s387_s7 = smov %s389_s9 }
  0x93   :  { %10 = sbr.rel (!%p8_p5) target bundleno = 2 (0x2), region = 54 }

// kernel: resnet1d_forward.19
= control target key start
LH: loop header
LB: loop body
LE: loop exit
PB: predicated region body
PF: predicated region fallthrough
CT: control target
= control target key end

     0   :  { %s781_s18 = smov 0   ;;  %s783_s19 = smov 0   ;;  %s853_s0 = inlined_call_operand.vmem [shape: f32[2,18,32], index: 0, kind: input, shape index: {}]   ;;  %s854_s1 = inlined_call_operand.vmem [shape: bf16[3,32,32], index: 1, kind: input, shape index: {}]   ;;  %s855_s2 = inlined_call_operand.vmem [shape: f32[1,32], index: 2, kind: input, shape index: {}]   ;;  %s856_s3 = inlined_call_operand.vmem [shape: f32[1,32], index: 3, kind: input, shape index: {}]   ;;  %s857_s4 = inlined_call_operand.vmem [shape: f32[2,16,32], index: 4, kind: input, shape index: {}]   ;;  %s858_s5 = inlined_call_operand.vmem [shape: f32[2,16,32], index: 5, kind: output, shape index: {}]  }
   0x1   :  { %s785_s20 = smov 0  }
   0x2 LB: > { %s27_s21 = sadd.s32 1, %s743_s19  ;;  %p620_p0 = scmp.ge.s32.totalorder %s747_s20, 1  ;;  %s747_s20 = sphi %s785_s20, %s15_s20   ;;  %s743_s19 = sphi %s783_s19, %s860_s19   ;;  %s739_s18 = sphi %s781_s18, %s859_s18  }
   0x3   : > { %p29_p1 = scmp.ge.s32.totalorder %s27_s21, 2  ;;  %p218_p2 = scmp.lt.s32.totalorder %s747_s20, 3 }
   0x5   : > { %s862_s21 = smov (%p29_p1, %s27_s21), 0  ;;  %p219_p3 = pnand %p620_p0, %p218_p2 }
   0x6   : > { %v719_v0 = vld [vmem:[%s854_s1] sm:$0xff] (!%p219_p3)   ;;  %v749_v1 = vmov (!%p219_p3), 0.0   ;;  %v720_v2 = vld [vmem:[%s854_s1 + $0x8] sm:$0xff] (!%p219_p3)   ;;  %vm750_vm0 = vmmov (!%p219_p3), 0   ;;  %p259_p4 = scmp.lt.s32.totalorder (!%p219_p3), %s739_s18, 1  ;;  %v722_v3 = vld [vmem:[%s854_s1 + $0x10] sm:$0xff] (!%p219_p3)  }
   0x7   : > { %222 = sbr.rel (%p219_p3) target bundleno = 256 (0x100), region = 40  ;;  %670 = vmatprep.subr.bf16.mxu0 (!%p219_p3), %v749_v1  ;;  %662 = vmatprep.subr.bf16.mxu1 (!%p219_p3), %v749_v1  ;;  %v723_v4 = vld [vmem:[%s854_s1 + $0x18] sm:$0xff] (!%p219_p3)   ;;  %v721_v5 = vld [vmem:[%s854_s1 + $0x20] sm:$0xff] (!%p219_p3)   ;;  %vm316_vm1 = vcmask (!%p219_p3), 261120   ;;  %v724_v12 = vld [vmem:[%s854_s1 + $0x28] sm:$0xff] (!%p219_p3)  }
   0x8   : > { %671 = vmatpush3.bf16.msra.mxu0 (!%p219_p3), %v719_v0  ;;  %674 = vmatprep.mubr.msk.bf16.mxu0 (!%p219_p3), %vm750_vm0, %v749_v1  ;;  %v647_v21 = vld [vmem:[%s855_s2] ss:$0 sm:$0xff] (!%p219_p3) }
   0x9   : > { %672 = vmatprep.subr.bf16.mxu0 (!%p219_p3), %v749_v1  ;;  %666 = vmatprep.mubr.msk.bf16.mxu1 (!%p219_p3), %vm750_vm0, %v749_v1  ;;  %v648_v24 = vld [vmem:[%s856_s3] ss:$0 sm:$0xff] (!%p219_p3) }
   0xa   : > { %663 = vmatpush3.bf16.msra.mxu1 (!%p219_p3), %v722_v3 }
   0xb   : > { %664 = vmatprep.subr.bf16.mxu1 (!%p219_p3), %v749_v1 }
   0xc   : > { %673 = vmatpush3.bf16.msra.mxu0 (!%p219_p3), %v720_v2 }
   0xd   : > { %678 = vmatprep.subr.bf16.mxu0 (!%p219_p3), %v749_v1 }
   0xe   : > { %s864_s18 = smov (!%p259_p4, %s739_s18), 1  ;;  %665 = vmatpush3.bf16.msra.mxu1 %v723_v4 }
   0xf   : > { %s692_s28 = smul.u32 24, %s864_s18  ;;  %s651_s13 = sshll.u32 %s864_s18, 4 }
  0x10   : > { %s272_s22 = scalar_lea.vmem %s857_s4, %s651_s13  ;;  %s282_s26 = scalar_lea.vmem %s858_s5, %s651_s13 }
  0x11   : > { %s263_s8 = scalar_lea.vmem %s853_s0, %s692_s28  ;;  %v503_v29 = vld [vmem:[%s272_s22] sm:$0xff]  ;;  %v504_v32 = vld [vmem:[%s272_s22 + $0x8] sm:$0xff] }
  0x12   : > { %v287_v6 = vld [vmem:[%s263_s8] sm:$0xff]  ;;  %v288_v7 = vld [vmem:[%s263_s8 + $0x8] sm:$0xff] }
  0x13   : > { %v626_v8 = vld [vmem:[%s263_s8 + $0x1] sm:$0xff]  ;;  %v289_v9 = vpack.c.bf16 %v288_v7, %v287_v6  ;;  %v627_v10 = vld [vmem:[%s263_s8 + $0x9] sm:$0xff] }
  0x14   : > { %v298_v11 = vpack.c.bf16 %v627_v10, %v626_v8  ;;  %v638_v13 = vld [vmem:[%s263_s8 + $0x2] sm:$0xff]  ;;  %v639_v14 = vld [vmem:[%s263_s8 + $0xa] sm:$0xff] }
  0x15   : > { %675 = vmatmul.mubr.msk.bf16.vlgmr.msra.gmra.mrb[0].mxu0 %vm316_vm1, %v289_v9  ;;  %v421_v15 = vpack.c.bf16 %v639_v14, %v638_v13 }
  0x16   : > { %679 = vmatpush3.bf16.msra.mxu0 %v721_v5  ;;  %667 = vmatmul.mubr.msk.bf16.vlgmr.msra.gmra.mrb[0].mxu1 %vm316_vm1, %v298_v11 }
  0x17   : > { %680 = vmatprep.subr.bf16.mxu0 %v749_v1  ;;  %682 = vmatprep.mubr.msk.bf16.mxu0 %vm750_vm0, %v749_v1 }
  0x1a   : > { %681 = vmatpush3.bf16.msra.mxu0 %v724_v12 }
  0x21   : > { %683 = vmatmul.mubr.msk.bf16.vlgmr.msra.gmra.mrb[0].mxu0 %vm316_vm1, %v421_v15 }
  0xe9   : > { %v354_v16 = vpop.f32.mrb[0].mxu1 }
  0xea   : > { %v668_v17 = vpop.f32.mrb[1].mxu1 }
  0xeb   : > { %v357_v18 = vpop.f32.mrb[2].mxu1 }
  0xec   : > { %v669_v19 = vpop.f32.mrb[3].mxu1 }
  0xf4   : > { %v476_v20 = vpop.f32.mrb[0].mxu0 }
  0xf5   : > { %v686_v22 = vadd.f32 %v476_v20, %v354_v16  ;;  %v684_v23 = vpop.f32.mrb[1].mxu0 }
  0xf6   : > { %v479_v25 = vpop.f32.mrb[2].mxu0 }
  0xf7   : > { %v492_v26 = vmul.f32 %v686_v22, %v647_v21  ;;  %v687_v27 = vadd.f32 %v479_v25, %v357_v18  ;;  %v685_v28 = vpop.f32.mrb[3].mxu0 }
  0xf9   : > { %v501_v30 = vadd.f32 %v648_v24, %v492_v26  ;;  %v493_v31 = vmul.f32 %v687_v27, %v647_v21 }
  0xfb   : > { %v505_v33 = vadd.f32 %v503_v29, %v501_v30  ;;  %v502_v34 = vadd.f32 %v648_v24, %v493_v31 }
  0xfd   : > { %507 = vst.msk [vmem:[%s282_s26] sm:$0xff] %vm316_vm1, %v505_v33  ;;  %v506_v35 = vadd.f32 %v504_v32, %v502_v34 }
  0xff   : > { %508 = vst.msk [vmem:[%s282_s26 + $0x8] sm:$0xff] %vm316_vm1, %v506_v35 }
 0x100 PF: > { %s15_s20 = sadd.s32 1, %s747_s20   ;;  %s859_s18 = smov %s743_s19 }
 0x101   : > { %p12_p5 = scmp.ge.s32.totalorder %s15_s20, 4   ;;  %s860_s19 = smov %s862_s21 }
 0x103   :  { %14 = sbr.rel (!%p12_p5) target bundleno = 2 (0x2), region = 78 }

// kernel: resnet1d_forward.20
= control target key start
LH: loop header
LB: loop body
LE: loop exit
PB: predicated region body
PF: predicated region fallthrough
CT: control target
= control target key end

     0   :  { %s823_s21 = smov 0   ;;  %s825_s22 = smov 0   ;;  %s896_s0 = inlined_call_operand.vmem [shape: f32[2,18,32], index: 0, kind: input, shape index: {}]   ;;  %s897_s1 = inlined_call_operand.vmem [shape: f32[1,32], index: 1, kind: input, shape index: {}]   ;;  %s898_s2 = inlined_call_operand.vmem [shape: f32[1,32], index: 2, kind: input, shape index: {}]   ;;  %s899_s3 = inlined_call_operand.vmem [shape: bf16[3,32,64], index: 3, kind: input, shape index: {}]   ;;  %s900_s4 = inlined_call_operand.vmem [shape: f32[1,64], index: 4, kind: input, shape index: {}]   ;;  %s901_s5 = inlined_call_operand.vmem [shape: f32[1,64], index: 5, kind: input, shape index: {}]   ;;  %s902_s6 = inlined_call_operand.vmem [shape: f32[2,16,64], index: 6, kind: output, shape index: {}]  }
   0x1   :  { %s827_s23 = smov 0  }
   0x2 LB: > { %s28_s24 = sadd.s32 1, %s780_s22  ;;  %p658_p0 = scmp.ge.s32.totalorder %s784_s23, 1  ;;  %s784_s23 = sphi %s827_s23, %s16_s23   ;;  %s780_s22 = sphi %s825_s22, %s904_s22   ;;  %s776_s21 = sphi %s823_s21, %s903_s21  }
   0x3   : > { %p30_p1 = scmp.ge.s32.totalorder %s28_s24, 2  ;;  %p226_p2 = scmp.lt.s32.totalorder %s784_s23, 3 }
   0x5   : > { %s906_s24 = smov (%p30_p1, %s28_s24), 0  ;;  %p227_p3 = pnand %p658_p0, %p226_p2 }
   0x6   : > { %v756_v0 = vld [vmem:[%s899_s3] sm:$0xff] (!%p227_p3)   ;;  %v786_v1 = vmov (!%p227_p3), 0.0   ;;  %v757_v2 = vld [vmem:[%s899_s3 + $0x8] sm:$0xff] (!%p227_p3)   ;;  %vm787_vm0 = vmmov (!%p227_p3), 0   ;;  %p260_p4 = scmp.lt.s32.totalorder (!%p227_p3), %s776_s21, 1  ;;  %v759_v3 = vld [vmem:[%s899_s3 + $0x10] sm:$0xff] (!%p227_p3)   ;;  %v300_v4 = vlaneseq (!%p227_p3) }
   0x7   : > { %230 = sbr.rel (%p227_p3) target bundleno = 263 (0x107), region = 44  ;;  %707 = vmatprep.subr.bf16.mxu0 (!%p227_p3), %v786_v1  ;;  %699 = vmatprep.subr.bf16.mxu1 (!%p227_p3), %v786_v1  ;;  %v760_v5 = vld [vmem:[%s899_s3 + $0x18] sm:$0xff] (!%p227_p3)   ;;  %v662_v6 = vld [vmem:[%s897_s1] ss:$0 sm:$0xff] (!%p227_p3)  ;;  %vm357_vm2 = vcmask (!%p227_p3), 261120   ;;  %v761_v37 = vld [vmem:[%s899_s3 + $0x28] sm:$0xff] (!%p227_p3)  }
   0x8   : > { %708 = vmatpush3.bf16.msra.mxu0 (!%p227_p3), %v756_v0  ;;  %711 = vmatprep.mubr.msk.bf16.mxu0 (!%p227_p3), %vm787_vm0, %v786_v1  ;;  %v663_v7 = vld [vmem:[%s898_s2] ss:$0 sm:$0xff] (!%p227_p3)  ;;  %v301_v10 = vshrl.u32 (!%p227_p3), %v300_v4, 7  ;;  %vm562_vm4 = vcmask (!%p227_p3), 523264  }
   0x9   : > { %709 = vmatprep.subr.bf16.mxu0 (!%p227_p3), %v786_v1  ;;  %703 = vmatprep.mubr.msk.bf16.mxu1 (!%p227_p3), %vm787_vm0, %v786_v1  ;;  %v758_v31 = vld [vmem:[%s899_s3 + $0x20] sm:$0xff] (!%p227_p3)  }
   0xa   : > { %700 = vmatpush3.bf16.msra.mxu1 (!%p227_p3), %v759_v3  ;;  %v302_v23 = vadd.s32 (!%p227_p3), 8, %v301_v10  ;;  %vm306_vm1 = vcmp.ge.s32.totalorder (!%p227_p3), %v301_v10, 1  ;;  %v685_v47 = vld [vmem:[%s900_s4] ss:$0 sm:$0xff] (!%p227_p3) }
   0xb   : > { %701 = vmatprep.subr.bf16.mxu1 (!%p227_p3), %v786_v1  ;;  %v686_v50 = vld [vmem:[%s901_s5] ss:$0 sm:$0xff] (!%p227_p3) }
   0xc   : > { %710 = vmatpush3.bf16.msra.mxu0 (!%p227_p3), %v757_v2  ;;  %v469_v34 = vadd.s32 (!%p227_p3), 2, %v302_v23 }
   0xd   : > { %715 = vmatprep.subr.bf16.mxu0 (!%p227_p3), %v786_v1 }
   0xe   : > { %s908_s21 = smov (!%p260_p4, %s776_s21), 1  ;;  %702 = vmatpush3.bf16.msra.mxu1 %v760_v5  ;;  %vm473_vm3 = vcmp.lt.s32.totalorder %v469_v34, 17 }
   0xf   : > { %s729_s7 = smul.u32 24, %s908_s21  ;;  %s689_s29 = sshll.u32 %s908_s21, 4 }
  0x10   : > { %s273_s8 = scalar_lea.vmem %s902_s6, %s689_s29 }
  0x11   : > { %s264_s14 = scalar_lea.vmem %s896_s0, %s729_s7 }
  0x12   : > { %v278_v8 = vld [vmem:[%s264_s14] sm:$0xff]  ;;  %v279_v9 = vld [vmem:[%s264_s14 + $0x8] sm:$0xff] }
  0x13   : > { %v664_v11 = vld [vmem:[%s264_s14 + $0x1] sm:$0xff]  ;;  %v287_v12 = vmul.f32 %v662_v6, %v278_v8  ;;  %v288_v13 = vmul.f32 %v662_v6, %v279_v9  ;;  %v665_v14 = vld [vmem:[%s264_s14 + $0x9] sm:$0xff] }
  0x14   : > { %v323_v15 = vmul.f32 %v664_v11, %v662_v6  ;;  %v677_v16 = vld [vmem:[%s264_s14 + $0xa] sm:$0xff]  ;;  %v324_v17 = vmul.f32 %v665_v14, %v662_v6  ;;  %v676_v21 = vld [vmem:[%s264_s14 + $0x2] sm:$0xff] }
  0x15   : > { %v296_v18 = vadd.f32 %v663_v7, %v287_v12  ;;  %v297_v19 = vadd.f32 %v663_v7, %v288_v13  ;;  %v463_v22 = vmul.f32 %v677_v16, %v662_v6  ;;  %v462_v29 = vmul.f32 %v676_v21, %v662_v6 }
  0x16   : > { %v325_v20 = vadd.f32 %v663_v7, %v323_v15  ;;  %v326_v24 = vadd.f32 %v663_v7, %v324_v17 }
  0x17   : > { %v298_v25 = vmax.f32 %v296_v18, 0.0  ;;  %v299_v26 = vmax.f32 %v297_v19, 0.0  ;;  %v465_v32 = vadd.f32 %v663_v7, %v463_v22  ;;  %v464_v36 = vadd.f32 %v663_v7, %v462_v29 }
  0x18   : > { %v327_v27 = vmax.f32 %v325_v20, 0.0  ;;  %v328_v28 = vmax.f32 %v326_v24, 0.0 }
  0x19   : > { %v312_v30 = vsel %vm306_vm1, %v298_v25, 0.0  ;;  %v467_v38 = vmax.f32 %v465_v32, 0.0  ;;  %v466_v39 = vmax.f32 %v464_v36, 0.0 }
  0x1a   : > { %v314_v33 = vpack.c.bf16 %v299_v26, %v312_v30  ;;  %v339_v35 = vpack.c.bf16 %v328_v28, %v327_v27 }
  0x1b   : > { %v477_v40 = vsel %vm473_vm3, %v467_v38, 0.0 }
  0x1c   : > { %712 = vmatmul.mubr.msk.bf16.vlgmr.msra.gmra.mrb[0].mxu0 %vm357_vm2, %v314_v33  ;;  %704 = vmatmul.mubr.msk.bf16.vlgmr.msra.gmra.mrb[0].mxu1 %vm357_vm2, %v339_v35  ;;  %v478_v41 = vpack.c.bf16 %v477_v40, %v466_v39 }
  0x1d   : > { %716 = vmatpush3.bf16.msra.mxu0 %v758_v31  ;;  %719 = vmatprep.mubr.msk.bf16.mxu0 %vm787_vm0, %v786_v1 }
  0x1e   : > { %717 = vmatprep.subr.bf16.mxu0 %v786_v1 }
  0x21   : > { %718 = vmatpush3.bf16.msra.mxu0 %v761_v37 }
  0x28   : > { %720 = vmatmul.mubr.msk.bf16.vlgmr.msra.gmra.mrb[0].mxu0 %vm357_vm2, %v478_v41 }
  0xef   : > { %v395_v42 = vpop.f32.mrb[0].mxu1 }
  0xf0   : > { %v705_v43 = vpop.f32.mrb[1].mxu1 }
  0xf1   : > { %v398_v44 = vpop.f32.mrb[2].mxu1 }
  0xf2   : > { %v706_v45 = vpop.f32.mrb[3].mxu1 }
  0xfb   : > { %v533_v46 = vpop.f32.mrb[0].mxu0 }
  0xfc   : > { %v723_v48 = vadd.f32 %v533_v46, %v395_v42  ;;  %v721_v49 = vpop.f32.mrb[1].mxu0 }
  0xfd   : > { %v536_v51 = vpop.f32.mrb[2].mxu0 }
  0xfe   : > { %v549_v52 = vmul.f32 %v723_v48, %v685_v47  ;;  %v724_v53 = vadd.f32 %v536_v51, %v398_v44  ;;  %v722_v54 = vpop.f32.mrb[3].mxu0 }
 0x100   : > { %v558_v55 = vadd.f32 %v686_v50, %v549_v52  ;;  %v550_v56 = vmul.f32 %v724_v53, %v685_v47 }
 0x102   : > { %v560_v57 = vmax.f32 %v558_v55, 0.0  ;;  %v559_v58 = vadd.f32 %v686_v50, %v550_v56 }
 0x104   : > { %563 = vst.msk [vmem:[%s273_s8] sm:$0xff] %vm562_vm4, %v560_v57  ;;  %v561_v59 = vmax.f32 %v559_v58, 0.0 }
 0x106   : > { %564 = vst.msk [vmem:[%s273_s8 + $0x8] sm:$0xff] %vm562_vm4, %v561_v59 }
 0x107 PF: > { %s16_s23 = sadd.s32 1, %s784_s23   ;;  %s903_s21 = smov %s780_s22 }
 0x108   : > { %p13_p5 = scmp.ge.s32.totalorder %s16_s23, 4   ;;  %s904_s22 = smov %s906_s24 }
 0x10a   :  { %15 = sbr.rel (!%p13_p5) target bundleno = 2 (0x2), region = 79 }

// kernel: resnet1d_forward.21
= control target key start
LH: loop header
LB: loop body
LE: loop exit
PB: predicated region body
PF: predicated region fallthrough
CT: control target
= control target key end

     0   :  { %s867_s18 = smov 0   ;;  %s869_s19 = smov 0   ;;  %s965_s0 = inlined_call_operand.vmem [shape: f32[2,18,64], index: 0, kind: input, shape index: {}]   ;;  %s966_s1 = inlined_call_operand.vmem [shape: bf16[3,64,64], index: 1, kind: input, shape index: {}]   ;;  %s967_s2 = inlined_call_operand.vmem [shape: f32[1,64], index: 2, kind: input, shape index: {}]   ;;  %s968_s3 = inlined_call_operand.vmem [shape: f32[1,64], index: 3, kind: input, shape index: {}]   ;;  %s969_s4 = inlined_call_operand.vmem [shape: f32[2,16,64], index: 4, kind: input, shape index: {}]   ;;  %s970_s5 = inlined_call_operand.vmem [shape: f32[2,16,64], index: 5, kind: output, shape index: {}]  }
   0x1   :  { %s871_s20 = smov 0  }
   0x2 LB: > { %s27_s21 = sadd.s32 1, %s829_s19  ;;  %p668_p0 = scmp.ge.s32.totalorder %s833_s20, 1  ;;  %s833_s20 = sphi %s871_s20, %s15_s20   ;;  %s829_s19 = sphi %s869_s19, %s972_s19   ;;  %s825_s18 = sphi %s867_s18, %s971_s18  }
   0x3   : > { %p29_p1 = scmp.ge.s32.totalorder %s27_s21, 2  ;;  %p218_p2 = scmp.lt.s32.totalorder %s833_s20, 3 }
   0x5   : > { %s974_s21 = smov (%p29_p1, %s27_s21), 0  ;;  %p219_p3 = pnand %p668_p0, %p218_p2 }
   0x6   : > { %v799_v0 = vld [vmem:[%s966_s1] sm:$0xff] (!%p219_p3)   ;;  %v835_v1 = vmov (!%p219_p3), 0.0   ;;  %v800_v2 = vld [vmem:[%s966_s1 + $0x8] sm:$0xff] (!%p219_p3)   ;;  %vm836_vm0 = vmmov (!%p219_p3), 0   ;;  %p259_p4 = scmp.lt.s32.totalorder (!%p219_p3), %s825_s18, 1  ;;  %v801_v4 = vld [vmem:[%s966_s1 + $0x10] sm:$0xff] (!%p219_p3)  }
   0x7   : > { %222 = sbr.rel (%p219_p3) target bundleno = 262 (0x106), region = 40  ;;  %742 = vmatprep.subr.bf16.mxu0 (!%p219_p3), %v835_v1  ;;  %730 = vmatprep.subr.bf16.mxu1 (!%p219_p3), %v835_v1  ;;  %v803_v3 = vld [vmem:[%s966_s1 + $0x20] sm:$0xff] (!%p219_p3)   ;;  %v805_v5 = vld [vmem:[%s966_s1 + $0x28] sm:$0xff] (!%p219_p3)   ;;  %v802_v6 = vld [vmem:[%s966_s1 + $0x18] sm:$0xff] (!%p219_p3)   ;;  %vm336_vm1 = vcmask (!%p219_p3), 523264  }
   0x8   : > { %743 = vmatpush3.bf16.msra.mxu0 (!%p219_p3), %v799_v0  ;;  %750 = vmatprep.mubr.msk.bf16.mxu0 (!%p219_p3), %vm836_vm0, %v835_v1  ;;  %v807_v8 = vld [vmem:[%s966_s1 + $0x30] sm:$0xff] (!%p219_p3)   ;;  %v804_v11 = vld [vmem:[%s966_s1 + $0x40] sm:$0xff] (!%p219_p3)   ;;  %v809_v12 = vld [vmem:[%s966_s1 + $0x38] sm:$0xff] (!%p219_p3)  }
   0x9   : > { %744 = vmatprep.subr.bf16.mxu0 (!%p219_p3), %v835_v1  ;;  %738 = vmatprep.mubr.msk.bf16.mxu1 (!%p219_p3), %vm836_vm0, %v835_v1  ;;  %v806_v16 = vld [vmem:[%s966_s1 + $0x48] sm:$0xff] (!%p219_p3)   ;;  %v808_v17 = vld [vmem:[%s966_s1 + $0x50] sm:$0xff] (!%p219_p3)   ;;  %v810_v18 = vld [vmem:[%s966_s1 + $0x58] sm:$0xff] (!%p219_p3)  }
   0xa   : > { %731 = vmatpush3.bf16.msra.mxu1 (!%p219_p3), %v803_v3  ;;  %v709_v27 = vld [vmem:[%s967_s2] ss:$0 sm:$0xff] (!%p219_p3) }
   0xb   : > { %732 = vmatprep.subr.bf16.mxu1 (!%p219_p3), %v835_v1  ;;  %v710_v30 = vld [vmem:[%s968_s3] ss:$0 sm:$0xff] (!%p219_p3) }
   0xc   : > { %745 = vmatpush3.bf16.msra.mxu0 (!%p219_p3), %v800_v2 }
   0xd   : > { %746 = vmatprep.subr.bf16.mxu0 (!%p219_p3), %v835_v1 }
   0xe   : > { %s976_s18 = smov (!%p259_p4, %s825_s18), 1  ;;  %733 = vmatpush3.bf16.msra.mxu1 %v805_v5 }
   0xf   : > { %s772_s30 = smul.u32 24, %s976_s18  ;;  %734 = vmatprep.subr.bf16.mxu1 %v835_v1  ;;  %s713_s29 = sshll.u32 %s976_s18, 4 }
  0x10   : > { %747 = vmatpush3.bf16.msra.mxu0 %v801_v4  ;;  %s272_s9 = scalar_lea.vmem %s969_s4, %s713_s29  ;;  %s282_s13 = scalar_lea.vmem %s970_s5, %s713_s29 }
  0x11   : > { %s911_s12 = scalar_lea.vmem %s965_s0, %s772_s30  ;;  %748 = vmatprep.subr.bf16.mxu0 %v835_v1  ;;  %v551_v35 = vld [vmem:[%s272_s9] sm:$0xff]  ;;  %v552_v38 = vld [vmem:[%s272_s9 + $0x8] sm:$0xff] }
  0x12   : > { %v287_v7 = vld [vmem:[%s911_s12] sm:$0xff]  ;;  %v288_v9 = vld [vmem:[%s911_s12 + $0x8] sm:$0xff]  ;;  %735 = vmatpush3.bf16.msra.mxu1 %v807_v8 }
  0x13   : > { %v289_v10 = vpack.c.bf16 %v288_v9, %v287_v7  ;;  %v674_v13 = vld [vmem:[%s911_s12 + $0x1] sm:$0xff]  ;;  %v675_v14 = vld [vmem:[%s911_s12 + $0x9] sm:$0xff]  ;;  %736 = vmatprep.subr.bf16.mxu1 %v835_v1 }
  0x14   : > { %749 = vmatpush3.bf16.msra.mxu0 %v802_v6  ;;  %v302_v15 = vpack.c.bf16 %v675_v14, %v674_v13  ;;  %v694_v19 = vld [vmem:[%s911_s12 + $0x2] sm:$0xff]  ;;  %v695_v20 = vld [vmem:[%s911_s12 + $0xa] sm:$0xff] }
  0x15   : > { %754 = vmatprep.subr.bf16.mxu0 %v835_v1  ;;  %v453_v21 = vpack.c.bf16 %v695_v20, %v694_v19 }
  0x16   : > { %737 = vmatpush3.bf16.msra.mxu1 %v809_v12 }
  0x17   : > { %751 = vmatmul.mubr.msk.bf16.vlgmr.msra.gmra.mrb[0].mxu0 %vm336_vm1, %v289_v10 }
  0x18   : > { %755 = vmatpush3.bf16.msra.mxu0 %v804_v11  ;;  %762 = vmatprep.mubr.msk.bf16.mxu0 %vm836_vm0, %v835_v1 }
  0x19   : > { %756 = vmatprep.subr.bf16.mxu0 %v835_v1  ;;  %739 = vmatmul.mubr.msk.bf16.vlgmr.msra.gmra.mrb[0].mxu1 %vm336_vm1, %v302_v15 }
  0x1c   : > { %757 = vmatpush3.bf16.msra.mxu0 %v806_v16 }
  0x1d   : > { %758 = vmatprep.subr.bf16.mxu0 %v835_v1 }
  0x20   : > { %759 = vmatpush3.bf16.msra.mxu0 %v808_v17 }
  0x21   : > { %760 = vmatprep.subr.bf16.mxu0 %v835_v1 }
  0x24   : > { %761 = vmatpush3.bf16.msra.mxu0 %v810_v18 }
  0x27   : > { %763 = vmatmul.mubr.msk.bf16.vlgmr.msra.gmra.mrb[0].mxu0 %vm336_vm1, %v453_v21 }
  0xec   : > { %v374_v22 = vpop.f32.mrb[0].mxu1 }
  0xed   : > { %v740_v23 = vpop.f32.mrb[1].mxu1 }
  0xee   : > { %v377_v24 = vpop.f32.mrb[2].mxu1 }
  0xef   : > { %v741_v25 = vpop.f32.mrb[3].mxu1 }
  0xfa   : > { %v524_v26 = vpop.f32.mrb[0].mxu0 }
  0xfb   : > { %v766_v28 = vadd.f32 %v524_v26, %v374_v22  ;;  %v764_v29 = vpop.f32.mrb[1].mxu0 }
  0xfc   : > { %v527_v31 = vpop.f32.mrb[2].mxu0 }
  0xfd   : > { %v540_v32 = vmul.f32 %v766_v28, %v709_v27  ;;  %v767_v33 = vadd.f32 %v527_v31, %v377_v24  ;;  %v765_v34 = vpop.f32.mrb[3].mxu0 }
  0xff   : > { %v549_v36 = vadd.f32 %v710_v30, %v540_v32  ;;  %v541_v37 = vmul.f32 %v767_v33, %v709_v27 }
 0x101   : > { %v553_v39 = vadd.f32 %v551_v35, %v549_v36  ;;  %v550_v40 = vadd.f32 %v710_v30, %v541_v37 }
 0x103   : > { %555 = vst.msk [vmem:[%s282_s13] sm:$0xff] %vm336_vm1, %v553_v39  ;;  %v554_v41 = vadd.f32 %v552_v38, %v550_v40 }
 0x105   : > { %556 = vst.msk [vmem:[%s282_s13 + $0x8] sm:$0xff] %vm336_vm1, %v554_v41 }
 0x106 PF: > { %s15_s20 = sadd.s32 1, %s833_s20   ;;  %s971_s18 = smov %s829_s19 }
 0x107   : > { %p12_p5 = scmp.ge.s32.totalorder %s15_s20, 4   ;;  %s972_s19 = smov %s974_s21 }
 0x109   :  { %14 = sbr.rel (!%p12_p5) target bundleno = 2 (0x2), region = 78 }

// kernel: resnet1d_forward.23
= control target key start
LH: loop header
LB: loop body
LE: loop exit
PB: predicated region body
PF: predicated region fallthrough
CT: control target
= control target key end

     0   :  { %s856_s21 = smov 0   ;;  %s858_s22 = smov 0   ;;  %s951_s0 = inlined_call_operand.vmem [shape: f32[2,8,256], index: 0, kind: input, shape index: {}]   ;;  %s952_s1 = inlined_call_operand.vmem [shape: f32[1,64], index: 1, kind: input, shape index: {}]   ;;  %s953_s2 = inlined_call_operand.vmem [shape: f32[1,64], index: 2, kind: input, shape index: {}]   ;;  %s954_s3 = inlined_call_operand.vmem [shape: bf16[3,64,64], index: 3, kind: input, shape index: {}]   ;;  %s955_s4 = inlined_call_operand.vmem [shape: f32[1,64], index: 4, kind: input, shape index: {}]   ;;  %s956_s5 = inlined_call_operand.vmem [shape: f32[1,64], index: 5, kind: input, shape index: {}]   ;;  %s957_s6 = inlined_call_operand.vmem [shape: f32[2,8,64], index: 6, kind: output, shape index: {}]  }
   0x1   :  { %s860_s23 = smov 0  }
   0x2 LB: > { %s28_s24 = sadd.s32 1, %s812_s22  ;;  %p657_p0 = scmp.ge.s32.totalorder %s816_s23, 1  ;;  %s816_s23 = sphi %s860_s23, %s16_s23   ;;  %s812_s22 = sphi %s858_s22, %s959_s22   ;;  %s808_s21 = sphi %s856_s21, %s958_s21  }
   0x3   : > { %p30_p1 = scmp.ge.s32.totalorder %s28_s24, 2  ;;  %p226_p2 = scmp.lt.s32.totalorder %s816_s23, 3 }
   0x5   : > { %s961_s24 = smov (%p30_p1, %s28_s24), 0  ;;  %p227_p3 = pnand %p657_p0, %p226_p2 }
   0x6   : > { %v661_v0 = vld [vmem:[%s952_s1] ss:$0 sm:$0xff] (!%p227_p3)  ;;  %v295_v2 = vlaneseq (!%p227_p3)  ;;  %p258_p4 = scmp.lt.s32.totalorder (!%p227_p3), %s808_s21, 1  ;;  %s818_s29 = smov (!%p227_p3), 64   ;;  %v819_v5 = vmov (!%p227_p3), 0.0   ;;  %v783_v6 = vld [vmem:[%s954_s3 + $0x8] sm:$0xff] (!%p227_p3)  }
   0x7   : > { %230 = sbr.rel (%p227_p3) target bundleno = 469 (0x1d5), region = 44  ;;  %v662_v1 = vld [vmem:[%s953_s2] ss:$0 sm:$0xff] (!%p227_p3)  ;;  %313 = vrot.lane.b32.xlu0 (!%p227_p3), %v661_v0, %s818_s29  ;;  %726 = vmatprep.subr.bf16.mxu0 (!%p227_p3), %v819_v5  ;;  %vm820_vm0 = vmmov (!%p227_p3), 0   ;;  %v784_v10 = vld [vmem:[%s954_s3 + $0x10] sm:$0xff] (!%p227_p3)   ;;  %v785_v14 = vld [vmem:[%s954_s3 + $0x18] sm:$0xff] (!%p227_p3)  }
   0x8   : > { %v782_v3 = vld [vmem:[%s954_s3] sm:$0xff] (!%p227_p3)   ;;  %v296_v4 = vshrl.u32 (!%p227_p3), %v295_v2, 7  ;;  %714 = vmatprep.subr.bf16.mxu1 (!%p227_p3), %v819_v5  ;;  %734 = vmatprep.mubr.msk.bf16.mxu0 (!%p227_p3), %vm820_vm0, %v819_v5  ;;  %vm364_vm4 = vcmask (!%p227_p3), 523264   ;;  %v791_v20 = vld [vmem:[%s954_s3 + $0x28] sm:$0xff] (!%p227_p3)   ;;  %v792_v24 = vld [vmem:[%s954_s3 + $0x30] sm:$0xff] (!%p227_p3)  }
   0x9   : > { %727 = vmatpush3.bf16.msra.mxu0 (!%p227_p3), %v782_v3  ;;  %722 = vmatprep.mubr.msk.bf16.mxu1 (!%p227_p3), %vm820_vm0, %v819_v5  ;;  %v790_v16 = vld [vmem:[%s954_s3 + $0x20] sm:$0xff] (!%p227_p3)   ;;  %v787_v23 = vld [vmem:[%s954_s3 + $0x48] sm:$0xff] (!%p227_p3)   ;;  %v788_v26 = vld [vmem:[%s954_s3 + $0x50] sm:$0xff] (!%p227_p3)  }
   0xa   : > { %728 = vmatprep.subr.bf16.mxu0 (!%p227_p3), %v819_v5  ;;  %v299_v7 = vmul.u32 (!%p227_p3), 4, %v296_v4  ;;  %v786_v19 = vld [vmem:[%s954_s3 + $0x40] sm:$0xff] (!%p227_p3)   ;;  %715 = vmatpush3.bf16.msra.mxu1 (!%p227_p3), %v790_v16  ;;  %v793_v27 = vld [vmem:[%s954_s3 + $0x38] sm:$0xff] (!%p227_p3)  }
   0xb   : > { %317 = vrot.lane.b32.xlu0 (!%p227_p3), %v662_v1, %s818_s29  ;;  %716 = vmatprep.subr.bf16.mxu1 (!%p227_p3), %v819_v5  ;;  %v789_v29 = vld [vmem:[%s954_s3 + $0x58] sm:$0xff] (!%p227_p3)   ;;  %v694_v45 = vld [vmem:[%s955_s4] ss:$0 sm:$0xff] (!%p227_p3) }
   0xc   : > { %vm300_vm1 = vcmp.ge.s32.totalorder (!%p227_p3), %v299_v7, 0  ;;  %vm301_vm2 = vcmp.lt.s32.totalorder (!%p227_p3), %v299_v7, 16  ;;  %v479_v21 = vadd.s32 (!%p227_p3), 2, %v299_v7  ;;  %v322_v31 = vadd.s32 (!%p227_p3), 1, %v299_v7  ;;  %v695_v48 = vld [vmem:[%s956_s5] ss:$0 sm:$0xff] (!%p227_p3) }
   0xd   : > { %729 = vmatpush3.bf16.msra.mxu0 (!%p227_p3), %v783_v6  ;;  %vm302_vm3 = vmand (!%p227_p3), %vm300_vm1, %vm301_vm2 }
   0xe   : > { %s963_s21 = smov (!%p258_p4, %s808_s21), 1  ;;  %730 = vmatprep.subr.bf16.mxu0 %v819_v5  ;;  %717 = vmatpush3.bf16.msra.mxu1 %v791_v20  ;;  %vm480_vm5 = vcmp.ge.s32.totalorder %v479_v21, 0  ;;  %vm481_vm6 = vcmp.lt.s32.totalorder %v479_v21, 16  ;;  %vm323_vm8 = vcmp.ge.s32.totalorder %v322_v31, 0  ;;  %vm324_vm9 = vcmp.lt.s32.totalorder %v322_v31, 16 }
   0xf   : > { %s698_s10 = sshll.u32 %s963_s21, 4  ;;  %718 = vmatprep.subr.bf16.mxu1 %v819_v5  ;;  %vm482_vm7 = vmand %vm480_vm5, %vm481_vm6 }
  0x10   : > { %s262_s13 = scalar_lea.vmem %s951_s0, %s698_s10  ;;  %vm325_vm10 = vmand %vm323_vm8, %vm324_vm9 }
  0x11   : > { %v277_v8 = vld [vmem:[%s262_s13] sm:$0xff]  ;;  %v475_v13 = vld [vmem:[%s262_s13 + $0x8] sm:$0xff]  ;;  %731 = vmatpush3.bf16.msra.mxu0 %v784_v10 }
  0x12   : > { %v285_v9 = vmul.f32 %v661_v0, %v277_v8  ;;  %732 = vmatprep.subr.bf16.mxu0 %v819_v5  ;;  %v476_v18 = vmul.f32 %v661_v0, %v475_v13  ;;  %719 = vmatpush3.bf16.msra.mxu1 %v792_v24 }
  0x13   : > { %720 = vmatprep.subr.bf16.mxu1 %v819_v5 }
  0x14   : > { %v293_v11 = vadd.f32 %v662_v1, %v285_v9  ;;  %v477_v22 = vadd.f32 %v662_v1, %v476_v18 }
  0x15   : > { %733 = vmatpush3.bf16.msra.mxu0 %v785_v14 }
  0x16   : > { %v294_v12 = vmax.f32 %v293_v11, 0.0  ;;  %738 = vmatprep.subr.bf16.mxu0 %v819_v5  ;;  %v478_v25 = vmax.f32 %v477_v22, 0.0  ;;  %721 = vmatpush3.bf16.msra.mxu1 %v793_v27 }
  0x18   : > { %v303_v15 = vsel %vm302_vm3, %v294_v12, 0.0  ;;  %v483_v28 = vsel %vm482_vm7, %v478_v25, 0.0 }
  0x19   : > { %v304_v17 = vpack.c.bf16 %v303_v15, %v303_v15  ;;  %v484_v30 = vpack.c.bf16 %v483_v28, %v483_v28 }
  0x1b   : > { %735 = vmatmul.mubr.msk.bf16.vlgmr.msra.gmra.mrb[0].mxu0 %vm364_vm4, %v304_v17 }
  0x1c   : > { %739 = vmatpush3.bf16.msra.mxu0 %v786_v19  ;;  %746 = vmatprep.mubr.msk.bf16.mxu0 %vm820_vm0, %v819_v5 }
  0x1d   : > { %740 = vmatprep.subr.bf16.mxu0 %v819_v5 }
  0x20   : > { %741 = vmatpush3.bf16.msra.mxu0 %v787_v23 }
  0x21   : > { %742 = vmatprep.subr.bf16.mxu0 %v819_v5 }
  0x24   : > { %743 = vmatpush3.bf16.msra.mxu0 %v788_v26 }
  0x25   : > { %744 = vmatprep.subr.bf16.mxu0 %v819_v5 }
  0x28   : > { %745 = vmatpush3.bf16.msra.mxu0 %v789_v29 }
  0x2b   : > { %747 = vmatmul.mubr.msk.bf16.vlgmr.msra.gmra.mrb[0].mxu0 %vm364_vm4, %v484_v30 }
  0x79   : > { %v314_v32 = vpop.permute.xlu0 %313 }
  0x7a   : > { %v316_v33 = vmul.f32 %v314_v32, %v277_v8 }
  0x7d   : > { %v318_v34 = vpop.permute.xlu0 %317 }
  0x7e   : > { %v320_v35 = vadd.f32 %v318_v34, %v316_v33 }
  0x80   : > { %v321_v36 = vmax.f32 %v320_v35, 0.0 }
  0x82   : > { %v326_v37 = vsel %vm325_vm10, %v321_v36, 0.0 }
  0x83   : > { %v327_v38 = vpack.c.bf16 %v326_v37, %v326_v37 }
  0x85   : > { %338 = vrot.lane.b32.xlu1 %v327_v38, %s818_s29  ;;  %s660_s29 = sshll.u32 %s963_s21, 3 }
  0x86   : > { %s269_s25 = scalar_lea.vmem %s957_s6, %s660_s29 }
  0xf7   : > { %v339_v39 = vpop.permute.xlu1 %338 }
  0xf8   : > { %723 = vmatmul.mubr.msk.bf16.vlgmr.msra.gmra.mrb[0].mxu1 %vm364_vm4, %v339_v39 }
  0xfe   : > { %v555_v40 = vpop.f32.mrb[0].mxu0 }
  0xff   : > { %v748_v41 = vpop.f32.mrb[1].mxu0 }
 0x100   : > { %v558_v42 = vpop.f32.mrb[2].mxu0 }
 0x101   : > { %v749_v43 = vpop.f32.mrb[3].mxu0 }
 0x1cb   : > { %v402_v44 = vpop.f32.mrb[0].mxu1 }
 0x1cc   : > { %v750_v46 = vadd.f32 %v555_v40, %v402_v44  ;;  %v724_v47 = vpop.f32.mrb[1].mxu1 }
 0x1cd   : > { %v405_v49 = vpop.f32.mrb[2].mxu1 }
 0x1ce   : > { %v569_v50 = vmul.f32 %v750_v46, %v694_v45  ;;  %v725_v51 = vpop.f32.mrb[3].mxu1 }
 0x1d0   : > { %v577_v52 = vadd.f32 %v695_v48, %v569_v50 }
 0x1d2   : > { %v578_v53 = vmax.f32 %v577_v52, 0.0 }
 0x1d4   : > { %579 = vst.msk [vmem:[%s269_s25] sm:$0xff] %vm364_vm4, %v578_v53 }
 0x1d5 PF: > { %s16_s23 = sadd.s32 1, %s816_s23   ;;  %s958_s21 = smov %s812_s22 }
 0x1d6   : > { %p13_p5 = scmp.ge.s32.totalorder %s16_s23, 4   ;;  %s959_s22 = smov %s961_s24 }
 0x1d8   :  { %15 = sbr.rel (!%p13_p5) target bundleno = 2 (0x2), region = 77 }

// kernel: resnet1d_forward.22
= control target key start
LH: loop header
LB: loop body
LE: loop exit
PB: predicated region body
PF: predicated region fallthrough
CT: control target
= control target key end

     0   :  { %s315_s6 = smov 0   ;;  %s317_s7 = smov 0   ;;  %s345_s0 = inlined_call_operand.vmem [shape: f32[2,8,256], index: 0, kind: input, shape index: {}]   ;;  %s346_s1 = inlined_call_operand.vmem [shape: f32[2,8,64], index: 1, kind: output, shape index: {}]  }
   0x1   :  { %s319_s8 = smov 0  }
   0x2 LB: > { %s23_s9 = sadd.s32 1, %s298_s7  ;;  %p248_p0 = scmp.ge.s32.totalorder %s302_s8, 1  ;;  %s302_s8 = sphi %s319_s8, %s11_s8   ;;  %s298_s7 = sphi %s317_s7, %s348_s7   ;;  %s294_s6 = sphi %s315_s6, %s347_s6  }
   0x3   : > { %p25_p1 = scmp.ge.s32.totalorder %s23_s9, 2  ;;  %p107_p2 = scmp.lt.s32.totalorder %s302_s8, 3 }
   0x5   : > { %s350_s9 = smov (%p25_p1, %s23_s9), 0  ;;  %p108_p3 = pnand %p248_p0, %p107_p2 }
   0x6   : > { %p133_p4 = scmp.lt.s32.totalorder (!%p108_p3), %s294_s6, 1  ;;  %s304_s14 = smov (!%p108_p3), 64   ;;  %vm162_vm0 = vcmask (!%p108_p3), 523264  }
   0x7   : > { %111 = sbr.rel (%p108_p3) target bundleno = 140 (0x8c), region = 24 }
   0xe   : > { %s352_s6 = smov (!%p133_p4, %s294_s6), 1 }
   0xf   : > { %s254_s10 = sshll.u32 %s352_s6, 4  ;;  %s251_s15 = sshll.u32 %s352_s6, 3 }
  0x10   : > { %s141_s13 = scalar_lea.vmem %s345_s0, %s254_s10  ;;  %s148_s18 = scalar_lea.vmem %s346_s1, %s251_s15 }
  0x11   : > { %v149_v0 = vld [vmem:[%s141_s13] sm:$0xff]  ;;  %v155_v1 = vld [vmem:[%s141_s13 + $0x8] sm:$0xff] }
  0x12   : > { %151 = vrot.lane.b32.xlu0 %v149_v0, %s304_s14 }
  0x16   : > { %158 = vrot.lane.b32.xlu0 %v155_v1, %s304_s14 }
  0x84   : > { %v152_v2 = vpop.permute.xlu0 %151 }
  0x85   : > { %v154_v3 = vmax.f32 %v149_v0, %v152_v2 }
  0x87   : > { %v156_v4 = vmax.f32 %v154_v3, %v155_v1 }
  0x88   : > { %v159_v5 = vpop.permute.xlu0 %158 }
  0x89   : > { %v161_v6 = vmax.f32 %v156_v4, %v159_v5 }
  0x8b   : > { %163 = vst.msk [vmem:[%s148_s18] sm:$0xff] %vm162_vm0, %v161_v6 }
  0x8c PF: > { %s11_s8 = sadd.s32 1, %s302_s8   ;;  %s347_s6 = smov %s298_s7 }
  0x8d   : > { %p8_p5 = scmp.ge.s32.totalorder %s11_s8, 4   ;;  %s348_s7 = smov %s350_s9 }
  0x8f   :  { %10 = sbr.rel (!%p8_p5) target bundleno = 2 (0x2), region = 54 }

// kernel: resnet1d_forward.24
= control target key start
LH: loop header
LB: loop body
LE: loop exit
PB: predicated region body
PF: predicated region fallthrough
CT: control target
= control target key end

     0   :  { %s823_s18 = smov 0   ;;  %s825_s19 = smov 0   ;;  %s917_s0 = inlined_call_operand.vmem [shape: f32[2,10,64], index: 0, kind: input, shape index: {}]   ;;  %s918_s1 = inlined_call_operand.vmem [shape: bf16[3,64,64], index: 1, kind: input, shape index: {}]   ;;  %s919_s2 = inlined_call_operand.vmem [shape: f32[1,64], index: 2, kind: input, shape index: {}]   ;;  %s920_s3 = inlined_call_operand.vmem [shape: f32[1,64], index: 3, kind: input, shape index: {}]   ;;  %s921_s4 = inlined_call_operand.vmem [shape: f32[2,8,64], index: 4, kind: input, shape index: {}]   ;;  %s922_s5 = inlined_call_operand.vmem [shape: f32[2,8,64], index: 5, kind: output, shape index: {}]  }
   0x1   :  { %s827_s20 = smov 0  }
   0x2 LB: > { %s27_s21 = sadd.s32 1, %s785_s19  ;;  %p630_p0 = scmp.ge.s32.totalorder %s789_s20, 1  ;;  %s789_s20 = sphi %s827_s20, %s15_s20   ;;  %s785_s19 = sphi %s825_s19, %s924_s19   ;;  %s781_s18 = sphi %s823_s18, %s923_s18  }
   0x3   : > { %p29_p1 = scmp.ge.s32.totalorder %s27_s21, 2  ;;  %p215_p2 = scmp.lt.s32.totalorder %s789_s20, 3 }
   0x5   : > { %s926_s21 = smov (%p29_p1, %s27_s21), 0  ;;  %p216_p3 = pnand %p630_p0, %p215_p2 }
   0x6   : > { %v755_v0 = vld [vmem:[%s918_s1] sm:$0xff] (!%p216_p3)   ;;  %v791_v1 = vmov (!%p216_p3), 0.0   ;;  %v756_v2 = vld [vmem:[%s918_s1 + $0x8] sm:$0xff] (!%p216_p3)   ;;  %vm792_vm0 = vmmov (!%p216_p3), 0   ;;  %p252_p4 = scmp.lt.s32.totalorder (!%p216_p3), %s781_s18, 1  ;;  %v757_v4 = vld [vmem:[%s918_s1 + $0x10] sm:$0xff] (!%p216_p3)  }
   0x7   : > { %219 = sbr.rel (%p216_p3) target bundleno = 260 (0x104), region = 40  ;;  %700 = vmatprep.subr.bf16.mxu0 (!%p216_p3), %v791_v1  ;;  %688 = vmatprep.subr.bf16.mxu1 (!%p216_p3), %v791_v1  ;;  %v759_v3 = vld [vmem:[%s918_s1 + $0x20] sm:$0xff] (!%p216_p3)   ;;  %v761_v5 = vld [vmem:[%s918_s1 + $0x28] sm:$0xff] (!%p216_p3)   ;;  %v758_v6 = vld [vmem:[%s918_s1 + $0x18] sm:$0xff] (!%p216_p3)   ;;  %vm321_vm1 = vcmask (!%p216_p3), 523264  }
   0x8   : > { %701 = vmatpush3.bf16.msra.mxu0 (!%p216_p3), %v755_v0  ;;  %708 = vmatprep.mubr.msk.bf16.mxu0 (!%p216_p3), %vm792_vm0, %v791_v1  ;;  %v763_v8 = vld [vmem:[%s918_s1 + $0x30] sm:$0xff] (!%p216_p3)   ;;  %v760_v10 = vld [vmem:[%s918_s1 + $0x40] sm:$0xff] (!%p216_p3)   ;;  %v765_v11 = vld [vmem:[%s918_s1 + $0x38] sm:$0xff] (!%p216_p3)  }
   0x9   : > { %702 = vmatprep.subr.bf16.mxu0 (!%p216_p3), %v791_v1  ;;  %696 = vmatprep.mubr.msk.bf16.mxu1 (!%p216_p3), %vm792_vm0, %v791_v1  ;;  %v762_v14 = vld [vmem:[%s918_s1 + $0x48] sm:$0xff] (!%p216_p3)   ;;  %v764_v15 = vld [vmem:[%s918_s1 + $0x50] sm:$0xff] (!%p216_p3)   ;;  %v766_v16 = vld [vmem:[%s918_s1 + $0x58] sm:$0xff] (!%p216_p3)  }
   0xa   : > { %689 = vmatpush3.bf16.msra.mxu1 (!%p216_p3), %v759_v3  ;;  %v668_v24 = vld [vmem:[%s919_s2] ss:$0 sm:$0xff] (!%p216_p3) }
   0xb   : > { %690 = vmatprep.subr.bf16.mxu1 (!%p216_p3), %v791_v1  ;;  %v669_v27 = vld [vmem:[%s920_s3] ss:$0 sm:$0xff] (!%p216_p3) }
   0xc   : > { %703 = vmatpush3.bf16.msra.mxu0 (!%p216_p3), %v756_v2 }
   0xd   : > { %704 = vmatprep.subr.bf16.mxu0 (!%p216_p3), %v791_v1 }
   0xe   : > { %s928_s18 = smov (!%p252_p4, %s781_s18), 1  ;;  %691 = vmatpush3.bf16.msra.mxu1 %v761_v5 }
   0xf   : > { %s672_s30 = sshll.u32 %s928_s18, 4  ;;  %692 = vmatprep.subr.bf16.mxu1 %v791_v1  ;;  %s633_s29 = sshll.u32 %s928_s18, 3 }
  0x10   : > { %s864_s10 = scalar_lea.vmem %s917_s0, %s672_s30  ;;  %705 = vmatpush3.bf16.msra.mxu0 %v757_v4  ;;  %s263_s9 = scalar_lea.vmem %s921_s4, %s633_s29 }
  0x11   : > { %v274_v7 = vld [vmem:[%s864_s10] sm:$0xff]  ;;  %706 = vmatprep.subr.bf16.mxu0 %v791_v1  ;;  %s270_s13 = scalar_lea.vmem %s922_s5, %s633_s29 }
  0x12   : > { %v275_v9 = vpack.c.bf16 %v274_v7, %v274_v7  ;;  %693 = vmatpush3.bf16.msra.mxu1 %v763_v8  ;;  %v635_v12 = vld [vmem:[%s864_s10 + $0x1] sm:$0xff] }
  0x13   : > { %694 = vmatprep.subr.bf16.mxu1 %v791_v1  ;;  %v287_v13 = vpack.c.bf16 %v635_v12, %v635_v12  ;;  %v654_v17 = vld [vmem:[%s864_s10 + $0x2] sm:$0xff] }
  0x14   : > { %707 = vmatpush3.bf16.msra.mxu0 %v758_v6  ;;  %v435_v18 = vpack.c.bf16 %v654_v17, %v654_v17  ;;  %v529_v31 = vld [vmem:[%s263_s9] sm:$0xff] }
  0x15   : > { %712 = vmatprep.subr.bf16.mxu0 %v791_v1 }
  0x16   : > { %695 = vmatpush3.bf16.msra.mxu1 %v765_v11 }
  0x17   : > { %709 = vmatmul.mubr.msk.bf16.vlgmr.msra.gmra.mrb[0].mxu0 %vm321_vm1, %v275_v9 }
  0x18   : > { %713 = vmatpush3.bf16.msra.mxu0 %v760_v10  ;;  %720 = vmatprep.mubr.msk.bf16.mxu0 %vm792_vm0, %v791_v1 }
  0x19   : > { %714 = vmatprep.subr.bf16.mxu0 %v791_v1  ;;  %697 = vmatmul.mubr.msk.bf16.vlgmr.msra.gmra.mrb[0].mxu1 %vm321_vm1, %v287_v13 }
  0x1c   : > { %715 = vmatpush3.bf16.msra.mxu0 %v762_v14 }
  0x1d   : > { %716 = vmatprep.subr.bf16.mxu0 %v791_v1 }
  0x20   : > { %717 = vmatpush3.bf16.msra.mxu0 %v764_v15 }
  0x21   : > { %718 = vmatprep.subr.bf16.mxu0 %v791_v1 }
  0x24   : > { %719 = vmatpush3.bf16.msra.mxu0 %v766_v16 }
  0x27   : > { %721 = vmatmul.mubr.msk.bf16.vlgmr.msra.gmra.mrb[0].mxu0 %vm321_vm1, %v435_v18 }
  0xec   : > { %v359_v19 = vpop.f32.mrb[0].mxu1 }
  0xed   : > { %v698_v20 = vpop.f32.mrb[1].mxu1 }
  0xee   : > { %v362_v21 = vpop.f32.mrb[2].mxu1 }
  0xef   : > { %v699_v22 = vpop.f32.mrb[3].mxu1 }
  0xfa   : > { %v506_v23 = vpop.f32.mrb[0].mxu0 }
  0xfb   : > { %v724_v25 = vadd.f32 %v506_v23, %v359_v19  ;;  %v722_v26 = vpop.f32.mrb[1].mxu0 }
  0xfc   : > { %v509_v28 = vpop.f32.mrb[2].mxu0 }
  0xfd   : > { %v520_v29 = vmul.f32 %v724_v25, %v668_v24  ;;  %v723_v30 = vpop.f32.mrb[3].mxu0 }
  0xff   : > { %v528_v32 = vadd.f32 %v669_v27, %v520_v29 }
 0x101   : > { %v530_v33 = vadd.f32 %v529_v31, %v528_v32 }
 0x103   : > { %531 = vst.msk [vmem:[%s270_s13] sm:$0xff] %vm321_vm1, %v530_v33 }
 0x104 PF: > { %s15_s20 = sadd.s32 1, %s789_s20   ;;  %s923_s18 = smov %s785_s19 }
 0x105   : > { %p12_p5 = scmp.ge.s32.totalorder %s15_s20, 4   ;;  %s924_s19 = smov %s926_s21 }
 0x107   :  { %14 = sbr.rel (!%p12_p5) target bundleno = 2 (0x2), region = 78 }

// kernel: resnet1d_forward.25
= control target key start
LH: loop header
LB: loop body
LE: loop exit
PB: predicated region body
PF: predicated region fallthrough
CT: control target
= control target key end

     0   :  { %v241_v3 = vmov 0.0|0.0   ;;  %vm242_vm0 = vmmov 0   ;;  %v243_v6 = vmov 0.0   ;;  %s326_s0 = inlined_call_operand.vmem [shape: f32[2,4,64], index: 0, kind: input, shape index: {}]   ;;  %s327_s1 = inlined_call_operand.vmem [shape: f32[1,1,64], index: 1, kind: input, shape index: {}]   ;;  %s328_s2 = inlined_call_operand.vmem [shape: f32[1,1,64], index: 2, kind: input, shape index: {}]   ;;  %s329_s3 = inlined_call_operand.vmem [shape: f32[64,2], index: 3, kind: input, shape index: {}]   ;;  %s330_s4 = inlined_call_operand.vmem [shape: f32[1,2], index: 4, kind: input, shape index: {}]   ;;  %s331_s5 = inlined_call_operand.hbm [shape: f32[2,2], index: 5, kind: output, shape index: {}]  }
   0x1   :  { %v61_v0 = vld [vmem:[%s329_s3] sm:$0xff]  ;;  %v62_v1 = vld [vmem:[%s329_s3 + $0x8] sm:$0xff]  ;;  %v63_v2 = vld [vmem:[%s329_s3 + $0x10] sm:$0xff]  ;;  %201 = vmatprep.subr.bf16.mxu0 %v241_v3  ;;  %198 = vmatprep.mubr.msk.f32.mxu0 %vm242_vm0, %v243_v6 }
   0x2   :  { %v202_v4 = vpack.c.bf16 %v62_v1, %v61_v0  ;;  %v64_v5 = vld [vmem:[%s329_s3 + $0x18] sm:$0xff]  ;;  %v21_v7 = vld [vmem:[%s326_s0] sm:$0xf]  ;;  %v22_v9 = vld [vmem:[%s326_s0 + $0x4] sm:$0xf] }
   0x3   :  { %v205_v8 = vpack.c.bf16 %v64_v5, %v63_v2  ;;  %v169_v10 = vld [vmem:[%s327_s1] ss:$0 sm:$0xff]  ;;  %v66_v13 = vld [vmem:[%s329_s3 + $0x28] sm:$0xff] }
   0x4   :  { %203 = vmatpush3.bf16.msra.mxu0 %v202_v4  ;;  %v170_v11 = vld [vmem:[%s328_s2] ss:$0 sm:$0xff]  ;;  %v30_v14 = vmul.f32 %v169_v10, %v21_v7  ;;  %v31_v15 = vmul.f32 %v169_v10, %v22_v9 }
   0x5   :  { %204 = vmatprep.subr.bf16.mxu0 %v241_v3  ;;  %v65_v12 = vld [vmem:[%s329_s3 + $0x20] sm:$0xff] }
   0x6   :  { %10 = vsyncpa [#allocation3], 0  ;;  %v39_v16 = vadd.f32 %v170_v11, %v30_v14  ;;  %v40_v17 = vadd.f32 %v170_v11, %v31_v15  ;;  %v208_v18 = vpack.c.bf16 %v66_v13, %v65_v12  ;;  %vm43_vm1 = vcmask 519168   ;;  %v67_v19 = vld [vmem:[%s329_s3 + $0x30] sm:$0xff]  ;;  %v68_v20 = vld [vmem:[%s329_s3 + $0x38] sm:$0xff]  ;;  %s244_s15 = smov [#allocation2]  }
   0x7   :  { %v211_v25 = vpack.c.bf16 %v68_v20, %v67_v19  ;;  %vm78_vm2 = vcmask 1041409   ;;  %vm80_vm3 = vcmask 523264   ;;  %v171_v41 = vld [vmem:[%s330_s4] ss:$0 sm:$0xff]  ;;  %s161_s16 = sshll.u32 %s244_s15, 4  ;;  %vm153_vm4 = vcmask 9216   ;;  %s162_s16 = int_to_ptr.vmem [resolvable:$true] %s161_s16 }
   0x8   :  { %206 = vmatpush3.bf16.msra.mxu0 %v205_v8  ;;  %v41_v21 = vmax.f32 %v39_v16, 0.0  ;;  %v42_v22 = vmax.f32 %v40_v17, 0.0  ;;  %s217_s17 = scalar_lea.vmem %s162_s16, 32  ;;  %p222_p1 = scmp.lt.s32.totalorder %s162_s16, %s162_s16 }
   0x9   :  { %207 = vmatprep.subr.bf16.mxu0 %v241_v3  ;;  %p218_p0 = scmp.ne.s32.totalorder %s162_s16, %s217_s17  ;;  %p223_p2 = scmp.lt.s32.totalorder %s217_s17, %s217_s17 }
   0xa   :  { %v44_v23 = vsel %vm43_vm1, %v41_v21, 0.0  ;;  %v51_v24 = vsel %vm43_vm1, %v42_v22, 0.0 }
   0xb   :  { %v45_v26 = vrot.slane %v44_v23, 4  ;;  %v52_v27 = vrot.slane %v51_v24, 4  ;;  %p224_p3 = por %p223_p2, %p222_p1 }
   0xc   :  { %209 = vmatpush3.bf16.msra.mxu0 %v208_v18 }
   0xd   :  { %210 = vmatprep.subr.bf16.mxu0 %v241_v3  ;;  %v46_v28 = vadd.f32 %v45_v26, %v44_v23  ;;  %v53_v29 = vadd.f32 %v52_v27, %v51_v24  ;;  %p225_p4 = pnand %p224_p3, %p218_p0 }
   0xf   :  { %v47_v30 = vrot.slane %v46_v28, 2  ;;  %v54_v31 = vrot.slane %v53_v29, 2 }
  0x10   :  { %212 = vmatpush3.bf16.msra.mxu0 %v211_v25 }
  0x11   :  { %v48_v32 = vadd.f32 %v47_v30, %v46_v28  ;;  %v55_v33 = vadd.f32 %v54_v31, %v53_v29 }
  0x13   :  { %v49_v34 = vrot.slane %v48_v32, 1  ;;  %v56_v35 = vrot.slane %v55_v33, 1 }
  0x15   :  { %v50_v36 = vadd.f32 %v49_v34, %v48_v32  ;;  %v57_v37 = vadd.f32 %v56_v35, %v55_v33 }
  0x17   :  { %v59_v38 = vmul.f32 0.25, %v50_v36  ;;  %v60_v39 = vmul.f32 0.25, %v57_v37 }
  0x19   :  { %v79_v40 = vsel %vm78_vm2, %v60_v39, %v59_v38 }
  0x1a   :  { %199 = vmatmul.mubr.msk.f32.vlgmr.msra.gmra.mrb[0].mxu0 %vm80_vm3, %v79_v40 }
  0xed   :  { %v149_v42 = vpop.f32.mrb[0].mxu0 }
  0xee   :  { %v150_v43 = vadd.f32 %v171_v41, %v149_v42  ;;  %v200_v44 = vpop.f32.mrb[1].mxu0 }
  0xf0   :  { %154 = vst.msk [vmem:[#allocation2] sm:$0x3] %vm153_vm4, %v150_v43 }
  0xf1   :  { %228 = shalt.err (!%p225_p4)
}
  0xf2   :  { %s229_s20 = scalar_lea.hbm %s331_s5, 32 }
  0xf3   :  { %p230_p5 = scmp.ne.s32.totalorder %s331_s5, %s229_s20  ;;  %p233_p6 = scmp.lt.u32.totalorder %s229_s20, %s331_s5 }
  0xf5   :  { %p235_p7 = pnand %p233_p6, %p230_p5 }
  0xf7   :  { %238 = shalt.err (!%p235_p7)
}
  0xf8   :  { %164 = dma.vmem_to_hbm [thread:$0]  %s162_s16, 32, %s331_s5, [#allocation3]  }
  0xf9   :  { %239 = dma.done.wait [#allocation3], 32  }
  0xfa   :  { %240 = vsyncadd [#allocation3], 4294967264 }
  0xfb   :  { %168 = vsyncpa [#allocation3], 1 }

</bundles_post_ra>
